<compile_context>
chip_gen: v7x
topology: tpu7x:2x2x1
jax: 0.10.0
libtpu: 0.0.40
codegen_flags: <defaults>
</compile_context>

<pallas_src>
import jax
import jax.numpy as jnp
from jax import lax
from jax.experimental import pallas as pl
from jax.experimental.pallas import tpu as pltpu

# ----------------------------- small synthetic config -----------------------------
BATCH = 8
DIM = 128            # cfg.dim
MLP_DIM = 256        # cfg.mlp_dim
DATA_DIM = 28 * 28   # MNIST flattened
LATENT_NDIM = 8      # cfg.latent_ndim
LATENT_BINS = 4      # cfg.latent_bins
LATENT_GROUP = 2     # cfg.latent_group_size
PRIOR_DEPTH = 2
ENCODER_DEPTH = 2
DECODER_DEPTH = 2
MSE_WEIGHT = 5.0
IMG_MEAN = 0.1307
IMG_STD = 0.3081

VOCAB = LATENT_BINS ** LATENT_GROUP            # 16
PAD_VOCAB = (VOCAB + 127) // 128 * 128         # 128 (lane-dense head width)
SEQ_LEN = LATENT_NDIM // LATENT_GROUP          # 4
EPS = 1e-6

# ----------------------------- in-kernel math helpers -----------------------------


def _rmsnorm(x):
    ms = jnp.mean(x * x, axis=-1, keepdims=True)
    return x * lax.rsqrt(ms + EPS)


def _silu(x):
    return x * jax.nn.sigmoid(x)


def _vec_mod_block(x, cond_n_bf, wk, wc, wv, scale):
    # VectorModulatedMLP residual: x + wv(silu(wk(norm(x)) * (1 + wc(norm(c))))) * scale
    k = jnp.dot(_rmsnorm(x).astype(jnp.bfloat16), wk, preferred_element_type=jnp.float32)
    m = jnp.dot(cond_n_bf, wc, preferred_element_type=jnp.float32)
    s = _silu(k * (1.0 + m))
    return x + jnp.dot(s.astype(jnp.bfloat16), wv, preferred_element_type=jnp.float32) * scale


def _relu2_block(x, w1, w2, scale):
    # prior residual block: x + w2(relu(w1(norm(x)))^2) * scale
    h = jnp.dot(_rmsnorm(x).astype(jnp.bfloat16), w1, preferred_element_type=jnp.float32)
    h = jnp.maximum(h, 0.0)
    h = h * h
    return x + jnp.dot(h.astype(jnp.bfloat16), w2, preferred_element_type=jnp.float32) * scale


# ----------------------------- the fused kernel -----------------------------


def _fused_forward_kernel(
    data_ref, cond_ref,
    enc_in_w_ref, enc_in_b_ref, enc_wk_ref, enc_wc_ref, enc_wv_ref, enc_scale_ref,
    fsq_w_ref,
    prior_w1_ref, prior_w2_ref, prior_scale_ref,
    heads_ref, mlp_wk_ref, mlp_embed_ref, mlp_wv_ref, mlp_scale_ref,
    dec_in_w_ref, dec_in_b_ref, dec_wk_ref, dec_wc_ref, dec_wv_ref, dec_scale_ref,
    dec_head_w_ref,
    xent_ref, sse_ref,
):
    f32 = jnp.float32
    bf16 = jnp.bfloat16
    n = data_ref.shape[0]

    data = data_ref[...]                        # (N, 784) f32
    cond = cond_ref[...]                        # (N, DIM) f32
    cond_n_bf = _rmsnorm(cond).astype(bf16)     # hoisted norm(cond), reused by all mod blocks

    # ---------------- encoder ----------------
    h = jnp.dot(data.astype(bf16), enc_in_w_ref[...],
                preferred_element_type=f32) + enc_in_b_ref[...]
    for d in range(ENCODER_DEPTH):
        h = _vec_mod_block(h, cond_n_bf, enc_wk_ref[d], enc_wc_ref[d],
                           enc_wv_ref[d], enc_scale_ref[d])

    # ---------------- FSQ quantize (stays in VMEM) ----------------
    z = jnp.dot(_rmsnorm(h).astype(bf16), fsq_w_ref[...], preferred_element_type=f32)
    latents = jnp.tanh(z)
    scaled = (latents + 1.0) * ((LATENT_BINS - 1) / 2.0)
    ids = jnp.round(scaled)                                     # (N, LATENT_NDIM) exact ints
    latents_ste = ids * (2.0 / (LATENT_BINS - 1)) - 1.0         # forward value of latents_ste

    # pack group token ids without lane slicing: masked lane reductions
    lane = lax.broadcasted_iota(jnp.int32, ids.shape, 1)
    toks = []
    for s in range(SEQ_LEN):
        t = jnp.zeros((n, 1), f32)
        for g in range(LATENT_GROUP):
            sel = (lane == (s * LATENT_GROUP + g)).astype(f32)
            t = t + float(LATENT_BINS ** g) * jnp.sum(ids * sel, axis=-1, keepdims=True)
        toks.append(t)                                          # (N, 1) float token id

    # ---------------- AR prior + per-token cross entropy ----------------
    xc = cond
    for d in range(PRIOR_DEPTH):
        xc = _relu2_block(xc, prior_w1_ref[d], prior_w2_ref[d], prior_scale_ref[d])

    col = lax.broadcasted_iota(jnp.int32, (n, PAD_VOCAB), 1)
    valid = col < VOCAB
    xent_rows = jnp.zeros((n, 1), f32)
    for s in range(SEQ_LEN):
        xcn_bf = _rmsnorm(xc).astype(bf16)                      # shared by head + mlp block
        logits = jnp.dot(xcn_bf, heads_ref[s], preferred_element_type=f32)  # (N, PAD_VOCAB)
        logits = jnp.where(valid, logits, -1e30)                # mask padded vocab columns
        onehot = (col == toks[s].astype(jnp.int32)).astype(f32)
        m = jnp.max(logits, axis=-1, keepdims=True)
        lse = m + jnp.log(jnp.sum(jnp.exp(logits - m), axis=-1, keepdims=True))
        picked = jnp.sum(logits * onehot, axis=-1, keepdims=True)
        xent_rows = xent_rows + (lse - picked)
        if s < SEQ_LEN - 1:
            # embedding lookup of the just-predicted token: one-hot matmul on the MXU
            mod = jnp.dot(onehot.astype(bf16), mlp_embed_ref[s], preferred_element_type=f32)
            k = jnp.dot(xcn_bf, mlp_wk_ref[s], preferred_element_type=f32)
            sact = _silu(k * (1.0 + mod))
            xc = xc + jnp.dot(sact.astype(bf16), mlp_wv_ref[s],
                              preferred_element_type=f32) * mlp_scale_ref[s]
    xent_ref[...] = xent_rows                                   # per-row sum over SEQ_LEN heads

    # ---------------- decoder + fused MSE partial reduction ----------------
    dh = jnp.dot((1.732 * latents_ste).astype(bf16), dec_in_w_ref[...],
                 preferred_element_type=f32) + dec_in_b_ref[...]
    for d in range(DECODER_DEPTH):
        dh = _vec_mod_block(dh, cond_n_bf, dec_wk_ref[d], dec_wc_ref[d],
                            dec_wv_ref[d], dec_scale_ref[d])
    recon = jnp.dot(_rmsnorm(dh).astype(bf16), dec_head_w_ref[...],
                    preferred_element_type=f32)                 # (N, 784), stays in VMEM
    diff = data - recon
    sse_ref[...] = jnp.sum(diff * diff, axis=-1, keepdims=True)


# ----------------------------- pallas_call wrapper -----------------------------


def _spec(shape):
    nd = len(shape)
    return pl.BlockSpec(shape, lambda i, _nd=nd: (0,) * _nd)


def fused_forward(data, cond, p):
    n = data.shape[0]
    args = (
        data, cond,
        p["enc_in_w"], p["enc_in_b"], p["enc_wk"], p["enc_wc"], p["enc_wv"], p["enc_scale"],
        p["fsq_w"],
        p["prior_w1"], p["prior_w2"], p["prior_scale"],
        p["heads"], p["mlp_wk"], p["mlp_embed"], p["mlp_wv"], p["mlp_scale"],
        p["dec_in_w"], p["dec_in_b"], p["dec_wk"], p["dec_wc"], p["dec_wv"], p["dec_scale"],
        p["dec_head_w"],
    )
    out_shape = (jax.ShapeDtypeStruct((n, 1), jnp.float32),   # per-row xent sum over heads
                 jax.ShapeDtypeStruct((n, 1), jnp.float32))   # per-row recon SSE
    return pl.pallas_call(
        _fused_forward_kernel,
        grid=(1,),
        in_specs=[_spec(a.shape) for a in args],
        out_specs=tuple(_spec(o.shape) for o in out_shape),
        out_shape=out_shape,
        compiler_params=pltpu.CompilerParams(dimension_semantics=("arbitrary",)),
    )(*args)


# ----------------------------- parameters -----------------------------
# NOTE: zero-initialized parameters in the reference get small deterministic random values
# so the compute path is exercised.  Weight matrices are stored in bf16 (MXU operands);
# biases / scales / embeddings used elementwise stay f32.
# TODO(synk): FusedLinear(scale=True) source not provided; assumed = learned per-output
#             scale applied after the matmul (initialized to 1).


def init_params(key):
    keys = iter(jax.random.split(key, 64))

    def nrm(shape, scale, dtype=jnp.bfloat16):
        return (jax.random.normal(next(keys), shape, jnp.float32) * scale).astype(dtype)

    params = dict(
        digit_embed=nrm((11, DIM), 0.5, jnp.float32),
        enc_in_w=nrm((DATA_DIM, DIM), DATA_DIM ** -0.5),
        enc_in_b=jnp.zeros((1, DIM), jnp.float32),
        enc_wk=nrm((ENCODER_DEPTH, DIM, MLP_DIM), DIM ** -0.5),
        enc_wc=nrm((ENCODER_DEPTH, DIM, MLP_DIM), 0.02),
        enc_wv=nrm((ENCODER_DEPTH, MLP_DIM, DIM), 0.02),
        enc_scale=jnp.ones((ENCODER_DEPTH, 1, DIM), jnp.float32),
        fsq_w=nrm((DIM, LATENT_NDIM), 0.02),
        prior_w1=nrm((PRIOR_DEPTH, DIM, MLP_DIM), DIM ** -0.5),
        prior_w2=nrm((PRIOR_DEPTH, MLP_DIM, DIM), 0.02),
        prior_scale=jnp.ones((PRIOR_DEPTH, 1, DIM), jnp.float32),
        heads=nrm((SEQ_LEN, DIM, PAD_VOCAB), 0.02),            # padded vocab, masked in-kernel
        mlp_wk=nrm((SEQ_LEN - 1, DIM, MLP_DIM), DIM ** -0.5),
        mlp_wv=nrm((SEQ_LEN - 1, MLP_DIM, DIM), 0.02),
        mlp_scale=jnp.ones((SEQ_LEN - 1, 1, DIM), jnp.float32),
        dec_in_w=nrm((LATENT_NDIM, DIM), LATENT_NDIM ** -0.5),
        dec_in_b=jnp.zeros((1, DIM), jnp.float32),
        dec_wk=nrm((DECODER_DEPTH, DIM, MLP_DIM), DIM ** -0.5),
        dec_wc=nrm((DECODER_DEPTH, DIM, MLP_DIM), 0.02),
        dec_wv=nrm((DECODER_DEPTH, MLP_DIM, DIM), 0.02),
        dec_scale=jnp.ones((DECODER_DEPTH, 1, DIM), jnp.float32),
        dec_head_w=nrm((DIM, DATA_DIM), 0.02),
    )
    # embedding tables, zero-padded to PAD_VOCAB rows (one-hot lookup never hits padding)
    emb = nrm((SEQ_LEN - 1, VOCAB, MLP_DIM), 0.5 * 0.02, jnp.float32)  # make_embedding * 0.5
    emb_pad = jnp.zeros((SEQ_LEN - 1, PAD_VOCAB, MLP_DIM), jnp.float32).at[:, :VOCAB].set(emb)
    params["mlp_embed"] = emb_pad.astype(jnp.bfloat16)
    return params


# ----------------------------- forward (MnistVectorFSQ.forward) -----------------------------


@jax.jit
def mnist_vector_fsq_forward(params, images, labels, mask_key):
    # image preprocessing (tiny, stays in XLA)
    data = images.astype(jnp.float32) / 255.0
    data = data.reshape(data.shape[0], -1)
    data = (data - IMG_MEAN) / IMG_STD                          # (N, 784)

    # conditioning: digit embedding with random label-dropout (8-row gather, stays in XLA)
    cond = jnp.take(params["digit_embed"], labels + 1, axis=0)  # (N, DIM)
    mask = (jax.random.uniform(mask_key, labels.shape) > 0.15)[..., None]
    cond = cond * mask.astype(cond.dtype)

    # one fused Pallas kernel: encoder -> FSQ -> AR prior xent -> decoder -> SSE
    xent_rows, sse_rows = fused_forward(data, cond, params)

    xent = jnp.mean(xent_rows) / SEQ_LEN                        # mean over heads, then batch
    mse = jnp.mean(sse_rows) / DATA_DIM                         # mean over all pixels
    return xent + MSE_WEIGHT * mse


# ----------------------------- main -----------------------------

if __name__ == "__main__":
    key = jax.random.PRNGKey(0)
    pkey, ikey, lkey, mkey = jax.random.split(key, 4)

    params = init_params(pkey)
    images = jax.random.randint(ikey, (BATCH, 28, 28), 0, 256, dtype=jnp.int32).astype(jnp.uint8)
    labels = jax.random.randint(lkey, (BATCH,), 0, 10, dtype=jnp.int32)

    loss = mnist_vector_fsq_forward(params, images, labels, mkey)
    loss = jax.block_until_ready(loss)
    assert bool(jnp.isfinite(loss)), f"non-finite loss: {loss}"
    print("KERNEL_OK")
</pallas_src>

<mosaic_0001>
module attributes {stable_mosaic.version = 11 : i64} {
  func.func @_fused_forward_kernel(%arg0: i32, %arg1: memref<8x784xf32, #tpu.memory_space<vmem>>, %arg2: memref<8x128xf32, #tpu.memory_space<vmem>>, %arg3: memref<784x128xbf16, #tpu.memory_space<vmem>>, %arg4: memref<1x128xf32, #tpu.memory_space<vmem>>, %arg5: memref<2x128x256xbf16, #tpu.memory_space<vmem>>, %arg6: memref<2x128x256xbf16, #tpu.memory_space<vmem>>, %arg7: memref<2x256x128xbf16, #tpu.memory_space<vmem>>, %arg8: memref<2x1x128xf32, #tpu.memory_space<vmem>>, %arg9: memref<128x8xbf16, #tpu.memory_space<vmem>>, %arg10: memref<2x128x256xbf16, #tpu.memory_space<vmem>>, %arg11: memref<2x256x128xbf16, #tpu.memory_space<vmem>>, %arg12: memref<2x1x128xf32, #tpu.memory_space<vmem>>, %arg13: memref<4x128x128xbf16, #tpu.memory_space<vmem>>, %arg14: memref<3x128x256xbf16, #tpu.memory_space<vmem>>, %arg15: memref<3x128x256xbf16, #tpu.memory_space<vmem>>, %arg16: memref<3x256x128xbf16, #tpu.memory_space<vmem>>, %arg17: memref<3x1x128xf32, #tpu.memory_space<vmem>>, %arg18: memref<8x128xbf16, #tpu.memory_space<vmem>>, %arg19: memref<1x128xf32, #tpu.memory_space<vmem>>, %arg20: memref<2x128x256xbf16, #tpu.memory_space<vmem>>, %arg21: memref<2x128x256xbf16, #tpu.memory_space<vmem>>, %arg22: memref<2x256x128xbf16, #tpu.memory_space<vmem>>, %arg23: memref<2x1x128xf32, #tpu.memory_space<vmem>>, %arg24: memref<128x784xbf16, #tpu.memory_space<vmem>>, %arg25: memref<8x1xf32, #tpu.memory_space<vmem>>, %arg26: memref<8x1xf32, #tpu.memory_space<vmem>>) attributes {dimension_semantics = [#tpu.dimension_semantics<arbitrary>], iteration_bounds = array<i64: 1>, scalar_prefetch = 0 : i64, scratch_operands = 0 : i64, tpu.core_type = #tpu.core_type<tc>, window_params = [{pipeline_mode = #tpu.pipeline_mode<synchronous>, transform_indices = @transform_0, window_bounds = array<i64: 8, 784>}, {pipeline_mode = #tpu.pipeline_mode<synchronous>, transform_indices = @transform_1, window_bounds = array<i64: 8, 128>}, {pipeline_mode = #tpu.pipeline_mode<synchronous>, transform_indices = @transform_2, window_bounds = array<i64: 784, 128>}, {pipeline_mode = #tpu.pipeline_mode<synchronous>, transform_indices = @transform_3, window_bounds = array<i64: 1, 128>}, {pipeline_mode = #tpu.pipeline_mode<synchronous>, transform_indices = @transform_4, window_bounds = array<i64: 2, 128, 256>}, {pipeline_mode = #tpu.pipeline_mode<synchronous>, transform_indices = @transform_5, window_bounds = array<i64: 2, 128, 256>}, {pipeline_mode = #tpu.pipeline_mode<synchronous>, transform_indices = @transform_6, window_bounds = array<i64: 2, 256, 128>}, {pipeline_mode = #tpu.pipeline_mode<synchronous>, transform_indices = @transform_7, window_bounds = array<i64: 2, 1, 128>}, {pipeline_mode = #tpu.pipeline_mode<synchronous>, transform_indices = @transform_8, window_bounds = array<i64: 128, 8>}, {pipeline_mode = #tpu.pipeline_mode<synchronous>, transform_indices = @transform_9, window_bounds = array<i64: 2, 128, 256>}, {pipeline_mode = #tpu.pipeline_mode<synchronous>, transform_indices = @transform_10, window_bounds = array<i64: 2, 256, 128>}, {pipeline_mode = #tpu.pipeline_mode<synchronous>, transform_indices = @transform_11, window_bounds = array<i64: 2, 1, 128>}, {pipeline_mode = #tpu.pipeline_mode<synchronous>, transform_indices = @transform_12, window_bounds = array<i64: 4, 128, 128>}, {pipeline_mode = #tpu.pipeline_mode<synchronous>, transform_indices = @transform_13, window_bounds = array<i64: 3, 128, 256>}, {pipeline_mode = #tpu.pipeline_mode<synchronous>, transform_indices = @transform_14, window_bounds = array<i64: 3, 128, 256>}, {pipeline_mode = #tpu.pipeline_mode<synchronous>, transform_indices = @transform_15, window_bounds = array<i64: 3, 256, 128>}, {pipeline_mode = #tpu.pipeline_mode<synchronous>, transform_indices = @transform_16, window_bounds = array<i64: 3, 1, 128>}, {pipeline_mode = #tpu.pipeline_mode<synchronous>, transform_indices = @transform_17, window_bounds = array<i64: 8, 128>}, {pipeline_mode = #tpu.pipeline_mode<synchronous>, transform_indices = @transform_18, window_bounds = array<i64: 1, 128>}, {pipeline_mode = #tpu.pipeline_mode<synchronous>, transform_indices = @transform_19, window_bounds = array<i64: 2, 128, 256>}, {pipeline_mode = #tpu.pipeline_mode<synchronous>, transform_indices = @transform_20, window_bounds = array<i64: 2, 128, 256>}, {pipeline_mode = #tpu.pipeline_mode<synchronous>, transform_indices = @transform_21, window_bounds = array<i64: 2, 256, 128>}, {pipeline_mode = #tpu.pipeline_mode<synchronous>, transform_indices = @transform_22, window_bounds = array<i64: 2, 1, 128>}, {pipeline_mode = #tpu.pipeline_mode<synchronous>, transform_indices = @transform_23, window_bounds = array<i64: 128, 784>}, {pipeline_mode = #tpu.pipeline_mode<synchronous>, transform_indices = @transform_24, window_bounds = array<i64: 8, 1>}, {pipeline_mode = #tpu.pipeline_mode<synchronous>, transform_indices = @transform_25, window_bounds = array<i64: 8, 1>}]} {
    %c0 = arith.constant 0 : index
    %c0_0 = arith.constant 0 : index
    %0 = vector.load %arg1[%c0, %c0_0] : memref<8x784xf32, #tpu.memory_space<vmem>>, vector<8x784xf32>
    %c0_1 = arith.constant 0 : index
    %c0_2 = arith.constant 0 : index
    %1 = vector.load %arg2[%c0_1, %c0_2] : memref<8x128xf32, #tpu.memory_space<vmem>>, vector<8x128xf32>
    %2 = arith.mulf %1, %1 : vector<8x128xf32>
    %cst = arith.constant dense<0.000000e+00> : vector<8xf32>
    %3 = vector.multi_reduction <add>, %2, %cst [1] : vector<8x128xf32> to vector<8xf32>
    %4 = vector.shape_cast %3 : vector<8xf32> to vector<8x1xf32>
    %cst_3 = arith.constant 1.280000e+02 : f32
    %5 = vector.broadcast %cst_3 : f32 to vector<8x1xf32>
    %6 = arith.divf %4, %5 : vector<8x1xf32>
    %cst_4 = arith.constant 9.99999997E-7 : f32
    %7 = vector.broadcast %cst_4 : f32 to vector<8x1xf32>
    %8 = arith.addf %6, %7 : vector<8x1xf32>
    %9 = math.rsqrt %8 : vector<8x1xf32>
    %10 = vector.broadcast %9 : vector<8x1xf32> to vector<8x128xf32>
    %11 = arith.mulf %1, %10 : vector<8x128xf32>
    %12 = arith.truncf %11 : vector<8x128xf32> to vector<8x128xbf16>
    %13 = arith.truncf %0 : vector<8x784xf32> to vector<8x784xbf16>
    %c0_5 = arith.constant 0 : index
    %c0_6 = arith.constant 0 : index
    %14 = vector.load %arg3[%c0_5, %c0_6] : memref<784x128xbf16, #tpu.memory_space<vmem>>, vector<784x128xbf16>
    %cst_7 = arith.constant dense<0.000000e+00> : vector<8x128xf32>
    %15 = tpu.matmul %13, %14, %cst_7 {dimension_numbers = #tpu.dot_dimension_numbers<[1], [0], [0], [1], [0, 0, 1, 1], [], []>} : vector<8x784xbf16>, vector<784x128xbf16>, vector<8x128xf32> -> vector<8x128xf32>
    %c0_8 = arith.constant 0 : index
    %c0_9 = arith.constant 0 : index
    %16 = vector.load %arg4[%c0_8, %c0_9] : memref<1x128xf32, #tpu.memory_space<vmem>>, vector<1x128xf32>
    %17 = vector.broadcast %16 : vector<1x128xf32> to vector<8x128xf32>
    %18 = arith.addf %15, %17 : vector<8x128xf32>
    %c0_10 = arith.constant 0 : index
    %c0_11 = arith.constant 0 : index
    %c0_12 = arith.constant 0 : index
    %19 = vector.load %arg5[%c0_10, %c0_11, %c0_12] : memref<2x128x256xbf16, #tpu.memory_space<vmem>>, vector<1x128x256xbf16>
    %20 = vector.shape_cast %19 : vector<1x128x256xbf16> to vector<128x256xbf16>
    %c0_13 = arith.constant 0 : index
    %c0_14 = arith.constant 0 : index
    %c0_15 = arith.constant 0 : index
    %21 = vector.load %arg6[%c0_13, %c0_14, %c0_15] : memref<2x128x256xbf16, #tpu.memory_space<vmem>>, vector<1x128x256xbf16>
    %22 = vector.shape_cast %21 : vector<1x128x256xbf16> to vector<128x256xbf16>
    %c0_16 = arith.constant 0 : index
    %c0_17 = arith.constant 0 : index
    %c0_18 = arith.constant 0 : index
    %23 = vector.load %arg7[%c0_16, %c0_17, %c0_18] : memref<2x256x128xbf16, #tpu.memory_space<vmem>>, vector<1x256x128xbf16>
    %24 = vector.shape_cast %23 : vector<1x256x128xbf16> to vector<256x128xbf16>
    %c0_19 = arith.constant 0 : index
    %c0_20 = arith.constant 0 : index
    %c0_21 = arith.constant 0 : index
    %25 = vector.load %arg8[%c0_19, %c0_20, %c0_21] : memref<2x1x128xf32, #tpu.memory_space<vmem>>, vector<1x1x128xf32>
    %26 = vector.shape_cast %25 : vector<1x1x128xf32> to vector<1x128xf32>
    %27 = arith.mulf %18, %18 : vector<8x128xf32>
    %cst_22 = arith.constant dense<0.000000e+00> : vector<8xf32>
    %28 = vector.multi_reduction <add>, %27, %cst_22 [1] : vector<8x128xf32> to vector<8xf32>
    %29 = vector.shape_cast %28 : vector<8xf32> to vector<8x1xf32>
    %cst_23 = arith.constant 1.280000e+02 : f32
    %30 = vector.broadcast %cst_23 : f32 to vector<8x1xf32>
    %31 = arith.divf %29, %30 : vector<8x1xf32>
    %cst_24 = arith.constant 9.99999997E-7 : f32
    %32 = vector.broadcast %cst_24 : f32 to vector<8x1xf32>
    %33 = arith.addf %31, %32 : vector<8x1xf32>
    %34 = math.rsqrt %33 : vector<8x1xf32>
    %35 = vector.broadcast %34 : vector<8x1xf32> to vector<8x128xf32>
    %36 = arith.mulf %18, %35 : vector<8x128xf32>
    %37 = arith.truncf %36 : vector<8x128xf32> to vector<8x128xbf16>
    %cst_25 = arith.constant dense<0.000000e+00> : vector<8x256xf32>
    %38 = tpu.matmul %37, %20, %cst_25 {dimension_numbers = #tpu.dot_dimension_numbers<[1], [0], [0], [1], [0, 0, 1, 1], [], []>} : vector<8x128xbf16>, vector<128x256xbf16>, vector<8x256xf32> -> vector<8x256xf32>
    %cst_26 = arith.constant dense<0.000000e+00> : vector<8x256xf32>
    %39 = tpu.matmul %12, %22, %cst_26 {dimension_numbers = #tpu.dot_dimension_numbers<[1], [0], [0], [1], [0, 0, 1, 1], [], []>} : vector<8x128xbf16>, vector<128x256xbf16>, vector<8x256xf32> -> vector<8x256xf32>
    %cst_27 = arith.constant 1.000000e+00 : f32
    %40 = vector.broadcast %cst_27 : f32 to vector<8x256xf32>
    %41 = arith.addf %40, %39 : vector<8x256xf32>
    %42 = arith.mulf %38, %41 : vector<8x256xf32>
    %43 = arith.negf %42 : vector<8x256xf32>
    %44 = math.exp %43 : vector<8x256xf32>
    %cst_28 = arith.constant 1.000000e+00 : f32
    %45 = vector.broadcast %cst_28 : f32 to vector<8x256xf32>
    %46 = arith.addf %45, %44 : vector<8x256xf32>
    %47 = arith.divf %45, %46 : vector<8x256xf32>
    %48 = arith.mulf %42, %47 : vector<8x256xf32>
    %49 = arith.truncf %48 : vector<8x256xf32> to vector<8x256xbf16>
    %cst_29 = arith.constant dense<0.000000e+00> : vector<8x128xf32>
    %50 = tpu.matmul %49, %24, %cst_29 {dimension_numbers = #tpu.dot_dimension_numbers<[1], [0], [0], [1], [0, 0, 1, 1], [], []>} : vector<8x256xbf16>, vector<256x128xbf16>, vector<8x128xf32> -> vector<8x128xf32>
    %51 = vector.broadcast %26 : vector<1x128xf32> to vector<8x128xf32>
    %52 = arith.mulf %50, %51 : vector<8x128xf32>
    %53 = arith.addf %18, %52 : vector<8x128xf32>
    %c1 = arith.constant 1 : index
    %c0_30 = arith.constant 0 : index
    %c0_31 = arith.constant 0 : index
    %54 = vector.load %arg5[%c1, %c0_30, %c0_31] : memref<2x128x256xbf16, #tpu.memory_space<vmem>>, vector<1x128x256xbf16>
    %55 = vector.shape_cast %54 : vector<1x128x256xbf16> to vector<128x256xbf16>
    %c1_32 = arith.constant 1 : index
    %c0_33 = arith.constant 0 : index
    %c0_34 = arith.constant 0 : index
    %56 = vector.load %arg6[%c1_32, %c0_33, %c0_34] : memref<2x128x256xbf16, #tpu.memory_space<vmem>>, vector<1x128x256xbf16>
    %57 = vector.shape_cast %56 : vector<1x128x256xbf16> to vector<128x256xbf16>
    %c1_35 = arith.constant 1 : index
    %c0_36 = arith.constant 0 : index
    %c0_37 = arith.constant 0 : index
    %58 = vector.load %arg7[%c1_35, %c0_36, %c0_37] : memref<2x256x128xbf16, #tpu.memory_space<vmem>>, vector<1x256x128xbf16>
    %59 = vector.shape_cast %58 : vector<1x256x128xbf16> to vector<256x128xbf16>
    %c1_38 = arith.constant 1 : index
    %c0_39 = arith.constant 0 : index
    %c0_40 = arith.constant 0 : index
    %60 = vector.load %arg8[%c1_38, %c0_39, %c0_40] : memref<2x1x128xf32, #tpu.memory_space<vmem>>, vector<1x1x128xf32>
    %61 = vector.shape_cast %60 : vector<1x1x128xf32> to vector<1x128xf32>
    %62 = arith.mulf %53, %53 : vector<8x128xf32>
    %cst_41 = arith.constant dense<0.000000e+00> : vector<8xf32>
    %63 = vector.multi_reduction <add>, %62, %cst_41 [1] : vector<8x128xf32> to vector<8xf32>
    %64 = vector.shape_cast %63 : vector<8xf32> to vector<8x1xf32>
    %cst_42 = arith.constant 1.280000e+02 : f32
    %65 = vector.broadcast %cst_42 : f32 to vector<8x1xf32>
    %66 = arith.divf %64, %65 : vector<8x1xf32>
    %cst_43 = arith.constant 9.99999997E-7 : f32
    %67 = vector.broadcast %cst_43 : f32 to vector<8x1xf32>
    %68 = arith.addf %66, %67 : vector<8x1xf32>
    %69 = math.rsqrt %68 : vector<8x1xf32>
    %70 = vector.broadcast %69 : vector<8x1xf32> to vector<8x128xf32>
    %71 = arith.mulf %53, %70 : vector<8x128xf32>
    %72 = arith.truncf %71 : vector<8x128xf32> to vector<8x128xbf16>
    %cst_44 = arith.constant dense<0.000000e+00> : vector<8x256xf32>
    %73 = tpu.matmul %72, %55, %cst_44 {dimension_numbers = #tpu.dot_dimension_numbers<[1], [0], [0], [1], [0, 0, 1, 1], [], []>} : vector<8x128xbf16>, vector<128x256xbf16>, vector<8x256xf32> -> vector<8x256xf32>
    %cst_45 = arith.constant dense<0.000000e+00> : vector<8x256xf32>
    %74 = tpu.matmul %12, %57, %cst_45 {dimension_numbers = #tpu.dot_dimension_numbers<[1], [0], [0], [1], [0, 0, 1, 1], [], []>} : vector<8x128xbf16>, vector<128x256xbf16>, vector<8x256xf32> -> vector<8x256xf32>
    %cst_46 = arith.constant 1.000000e+00 : f32
    %75 = vector.broadcast %cst_46 : f32 to vector<8x256xf32>
    %76 = arith.addf %75, %74 : vector<8x256xf32>
    %77 = arith.mulf %73, %76 : vector<8x256xf32>
    %78 = arith.negf %77 : vector<8x256xf32>
    %79 = math.exp %78 : vector<8x256xf32>
    %cst_47 = arith.constant 1.000000e+00 : f32
    %80 = vector.broadcast %cst_47 : f32 to vector<8x256xf32>
    %81 = arith.addf %80, %79 : vector<8x256xf32>
    %82 = arith.divf %80, %81 : vector<8x256xf32>
    %83 = arith.mulf %77, %82 : vector<8x256xf32>
    %84 = arith.truncf %83 : vector<8x256xf32> to vector<8x256xbf16>
    %cst_48 = arith.constant dense<0.000000e+00> : vector<8x128xf32>
    %85 = tpu.matmul %84, %59, %cst_48 {dimension_numbers = #tpu.dot_dimension_numbers<[1], [0], [0], [1], [0, 0, 1, 1], [], []>} : vector<8x256xbf16>, vector<256x128xbf16>, vector<8x128xf32> -> vector<8x128xf32>
    %86 = vector.broadcast %61 : vector<1x128xf32> to vector<8x128xf32>
    %87 = arith.mulf %85, %86 : vector<8x128xf32>
    %88 = arith.addf %53, %87 : vector<8x128xf32>
    %89 = arith.mulf %88, %88 : vector<8x128xf32>
    %cst_49 = arith.constant dense<0.000000e+00> : vector<8xf32>
    %90 = vector.multi_reduction <add>, %89, %cst_49 [1] : vector<8x128xf32> to vector<8xf32>
    %91 = vector.shape_cast %90 : vector<8xf32> to vector<8x1xf32>
    %cst_50 = arith.constant 1.280000e+02 : f32
    %92 = vector.broadcast %cst_50 : f32 to vector<8x1xf32>
    %93 = arith.divf %91, %92 : vector<8x1xf32>
    %cst_51 = arith.constant 9.99999997E-7 : f32
    %94 = vector.broadcast %cst_51 : f32 to vector<8x1xf32>
    %95 = arith.addf %93, %94 : vector<8x1xf32>
    %96 = math.rsqrt %95 : vector<8x1xf32>
    %97 = vector.broadcast %96 : vector<8x1xf32> to vector<8x128xf32>
    %98 = arith.mulf %88, %97 : vector<8x128xf32>
    %99 = arith.truncf %98 : vector<8x128xf32> to vector<8x128xbf16>
    %c0_52 = arith.constant 0 : index
    %c0_53 = arith.constant 0 : index
    %100 = vector.load %arg9[%c0_52, %c0_53] : memref<128x8xbf16, #tpu.memory_space<vmem>>, vector<128x8xbf16>
    %cst_54 = arith.constant dense<0.000000e+00> : vector<8x8xf32>
    %101 = tpu.matmul %99, %100, %cst_54 {dimension_numbers = #tpu.dot_dimension_numbers<[1], [0], [0], [1], [0, 0, 1, 1], [], []>} : vector<8x128xbf16>, vector<128x8xbf16>, vector<8x8xf32> -> vector<8x8xf32>
    %102 = math.tanh %101 : vector<8x8xf32>
    %cst_55 = arith.constant 1.000000e+00 : f32
    %103 = vector.broadcast %cst_55 : f32 to vector<8x8xf32>
    %104 = arith.addf %102, %103 : vector<8x8xf32>
    %cst_56 = arith.constant 1.500000e+00 : f32
    %105 = vector.broadcast %cst_56 : f32 to vector<8x8xf32>
    %106 = arith.mulf %104, %105 : vector<8x8xf32>
    %107 = math.roundeven %106 : vector<8x8xf32>
    %cst_57 = arith.constant 0.666666686 : f32
    %108 = vector.broadcast %cst_57 : f32 to vector<8x8xf32>
    %109 = arith.mulf %107, %108 : vector<8x8xf32>
    %cst_58 = arith.constant 1.000000e+00 : f32
    %110 = vector.broadcast %cst_58 : f32 to vector<8x8xf32>
    %111 = arith.subf %109, %110 : vector<8x8xf32>
    %112 = tpu.iota {dimensions = array<i32: 1>} : vector<8x8xi32>
    %cst_59 = arith.constant 0.000000e+00 : f32
    %113 = vector.broadcast %cst_59 : f32 to vector<8x1xf32>
    %c0_i32 = arith.constant 0 : i32
    %114 = vector.broadcast %c0_i32 : i32 to vector<8x8xi32>
    %115 = arith.cmpi eq, %112, %114 : vector<8x8xi32>
    %116 = arith.extui %115 : vector<8x8xi1> to vector<8x8xi32>
    %117 = arith.sitofp %116 : vector<8x8xi32> to vector<8x8xf32>
    %118 = arith.mulf %107, %117 : vector<8x8xf32>
    %cst_60 = arith.constant dense<0.000000e+00> : vector<8xf32>
    %119 = vector.multi_reduction <add>, %118, %cst_60 [1] : vector<8x8xf32> to vector<8xf32>
    %120 = vector.shape_cast %119 : vector<8xf32> to vector<8x1xf32>
    %cst_61 = arith.constant 1.000000e+00 : f32
    %121 = vector.broadcast %cst_61 : f32 to vector<8x1xf32>
    %122 = arith.mulf %121, %120 : vector<8x1xf32>
    %123 = arith.addf %113, %122 : vector<8x1xf32>
    %c1_i32 = arith.constant 1 : i32
    %124 = vector.broadcast %c1_i32 : i32 to vector<8x8xi32>
    %125 = arith.cmpi eq, %112, %124 : vector<8x8xi32>
    %126 = arith.extui %125 : vector<8x8xi1> to vector<8x8xi32>
    %127 = arith.sitofp %126 : vector<8x8xi32> to vector<8x8xf32>
    %128 = arith.mulf %107, %127 : vector<8x8xf32>
    %cst_62 = arith.constant dense<0.000000e+00> : vector<8xf32>
    %129 = vector.multi_reduction <add>, %128, %cst_62 [1] : vector<8x8xf32> to vector<8xf32>
    %130 = vector.shape_cast %129 : vector<8xf32> to vector<8x1xf32>
    %cst_63 = arith.constant 4.000000e+00 : f32
    %131 = vector.broadcast %cst_63 : f32 to vector<8x1xf32>
    %132 = arith.mulf %131, %130 : vector<8x1xf32>
    %133 = arith.addf %123, %132 : vector<8x1xf32>
    %cst_64 = arith.constant 0.000000e+00 : f32
    %134 = vector.broadcast %cst_64 : f32 to vector<8x1xf32>
    %c2_i32 = arith.constant 2 : i32
    %135 = vector.broadcast %c2_i32 : i32 to vector<8x8xi32>
    %136 = arith.cmpi eq, %112, %135 : vector<8x8xi32>
    %137 = arith.extui %136 : vector<8x8xi1> to vector<8x8xi32>
    %138 = arith.sitofp %137 : vector<8x8xi32> to vector<8x8xf32>
    %139 = arith.mulf %107, %138 : vector<8x8xf32>
    %cst_65 = arith.constant dense<0.000000e+00> : vector<8xf32>
    %140 = vector.multi_reduction <add>, %139, %cst_65 [1] : vector<8x8xf32> to vector<8xf32>
    %141 = vector.shape_cast %140 : vector<8xf32> to vector<8x1xf32>
    %cst_66 = arith.constant 1.000000e+00 : f32
    %142 = vector.broadcast %cst_66 : f32 to vector<8x1xf32>
    %143 = arith.mulf %142, %141 : vector<8x1xf32>
    %144 = arith.addf %134, %143 : vector<8x1xf32>
    %c3_i32 = arith.constant 3 : i32
    %145 = vector.broadcast %c3_i32 : i32 to vector<8x8xi32>
    %146 = arith.cmpi eq, %112, %145 : vector<8x8xi32>
    %147 = arith.extui %146 : vector<8x8xi1> to vector<8x8xi32>
    %148 = arith.sitofp %147 : vector<8x8xi32> to vector<8x8xf32>
    %149 = arith.mulf %107, %148 : vector<8x8xf32>
    %cst_67 = arith.constant dense<0.000000e+00> : vector<8xf32>
    %150 = vector.multi_reduction <add>, %149, %cst_67 [1] : vector<8x8xf32> to vector<8xf32>
    %151 = vector.shape_cast %150 : vector<8xf32> to vector<8x1xf32>
    %cst_68 = arith.constant 4.000000e+00 : f32
    %152 = vector.broadcast %cst_68 : f32 to vector<8x1xf32>
    %153 = arith.mulf %152, %151 : vector<8x1xf32>
    %154 = arith.addf %144, %153 : vector<8x1xf32>
    %cst_69 = arith.constant 0.000000e+00 : f32
    %155 = vector.broadcast %cst_69 : f32 to vector<8x1xf32>
    %c4_i32 = arith.constant 4 : i32
    %156 = vector.broadcast %c4_i32 : i32 to vector<8x8xi32>
    %157 = arith.cmpi eq, %112, %156 : vector<8x8xi32>
    %158 = arith.extui %157 : vector<8x8xi1> to vector<8x8xi32>
    %159 = arith.sitofp %158 : vector<8x8xi32> to vector<8x8xf32>
    %160 = arith.mulf %107, %159 : vector<8x8xf32>
    %cst_70 = arith.constant dense<0.000000e+00> : vector<8xf32>
    %161 = vector.multi_reduction <add>, %160, %cst_70 [1] : vector<8x8xf32> to vector<8xf32>
    %162 = vector.shape_cast %161 : vector<8xf32> to vector<8x1xf32>
    %cst_71 = arith.constant 1.000000e+00 : f32
    %163 = vector.broadcast %cst_71 : f32 to vector<8x1xf32>
    %164 = arith.mulf %163, %162 : vector<8x1xf32>
    %165 = arith.addf %155, %164 : vector<8x1xf32>
    %c5_i32 = arith.constant 5 : i32
    %166 = vector.broadcast %c5_i32 : i32 to vector<8x8xi32>
    %167 = arith.cmpi eq, %112, %166 : vector<8x8xi32>
    %168 = arith.extui %167 : vector<8x8xi1> to vector<8x8xi32>
    %169 = arith.sitofp %168 : vector<8x8xi32> to vector<8x8xf32>
    %170 = arith.mulf %107, %169 : vector<8x8xf32>
    %cst_72 = arith.constant dense<0.000000e+00> : vector<8xf32>
    %171 = vector.multi_reduction <add>, %170, %cst_72 [1] : vector<8x8xf32> to vector<8xf32>
    %172 = vector.shape_cast %171 : vector<8xf32> to vector<8x1xf32>
    %cst_73 = arith.constant 4.000000e+00 : f32
    %173 = vector.broadcast %cst_73 : f32 to vector<8x1xf32>
    %174 = arith.mulf %173, %172 : vector<8x1xf32>
    %175 = arith.addf %165, %174 : vector<8x1xf32>
    %cst_74 = arith.constant 0.000000e+00 : f32
    %176 = vector.broadcast %cst_74 : f32 to vector<8x1xf32>
    %c6_i32 = arith.constant 6 : i32
    %177 = vector.broadcast %c6_i32 : i32 to vector<8x8xi32>
    %178 = arith.cmpi eq, %112, %177 : vector<8x8xi32>
    %179 = arith.extui %178 : vector<8x8xi1> to vector<8x8xi32>
    %180 = arith.sitofp %179 : vector<8x8xi32> to vector<8x8xf32>
    %181 = arith.mulf %107, %180 : vector<8x8xf32>
    %cst_75 = arith.constant dense<0.000000e+00> : vector<8xf32>
    %182 = vector.multi_reduction <add>, %181, %cst_75 [1] : vector<8x8xf32> to vector<8xf32>
    %183 = vector.shape_cast %182 : vector<8xf32> to vector<8x1xf32>
    %cst_76 = arith.constant 1.000000e+00 : f32
    %184 = vector.broadcast %cst_76 : f32 to vector<8x1xf32>
    %185 = arith.mulf %184, %183 : vector<8x1xf32>
    %186 = arith.addf %176, %185 : vector<8x1xf32>
    %c7_i32 = arith.constant 7 : i32
    %187 = vector.broadcast %c7_i32 : i32 to vector<8x8xi32>
    %188 = arith.cmpi eq, %112, %187 : vector<8x8xi32>
    %189 = arith.extui %188 : vector<8x8xi1> to vector<8x8xi32>
    %190 = arith.sitofp %189 : vector<8x8xi32> to vector<8x8xf32>
    %191 = arith.mulf %107, %190 : vector<8x8xf32>
    %cst_77 = arith.constant dense<0.000000e+00> : vector<8xf32>
    %192 = vector.multi_reduction <add>, %191, %cst_77 [1] : vector<8x8xf32> to vector<8xf32>
    %193 = vector.shape_cast %192 : vector<8xf32> to vector<8x1xf32>
    %cst_78 = arith.constant 4.000000e+00 : f32
    %194 = vector.broadcast %cst_78 : f32 to vector<8x1xf32>
    %195 = arith.mulf %194, %193 : vector<8x1xf32>
    %196 = arith.addf %186, %195 : vector<8x1xf32>
    %c0_79 = arith.constant 0 : index
    %c0_80 = arith.constant 0 : index
    %c0_81 = arith.constant 0 : index
    %197 = vector.load %arg10[%c0_79, %c0_80, %c0_81] : memref<2x128x256xbf16, #tpu.memory_space<vmem>>, vector<1x128x256xbf16>
    %198 = vector.shape_cast %197 : vector<1x128x256xbf16> to vector<128x256xbf16>
    %c0_82 = arith.constant 0 : index
    %c0_83 = arith.constant 0 : index
    %c0_84 = arith.constant 0 : index
    %199 = vector.load %arg11[%c0_82, %c0_83, %c0_84] : memref<2x256x128xbf16, #tpu.memory_space<vmem>>, vector<1x256x128xbf16>
    %200 = vector.shape_cast %199 : vector<1x256x128xbf16> to vector<256x128xbf16>
    %c0_85 = arith.constant 0 : index
    %c0_86 = arith.constant 0 : index
    %c0_87 = arith.constant 0 : index
    %201 = vector.load %arg12[%c0_85, %c0_86, %c0_87] : memref<2x1x128xf32, #tpu.memory_space<vmem>>, vector<1x1x128xf32>
    %202 = vector.shape_cast %201 : vector<1x1x128xf32> to vector<1x128xf32>
    %203 = arith.mulf %1, %1 : vector<8x128xf32>
    %cst_88 = arith.constant dense<0.000000e+00> : vector<8xf32>
    %204 = vector.multi_reduction <add>, %203, %cst_88 [1] : vector<8x128xf32> to vector<8xf32>
    %205 = vector.shape_cast %204 : vector<8xf32> to vector<8x1xf32>
    %cst_89 = arith.constant 1.280000e+02 : f32
    %206 = vector.broadcast %cst_89 : f32 to vector<8x1xf32>
    %207 = arith.divf %205, %206 : vector<8x1xf32>
    %cst_90 = arith.constant 9.99999997E-7 : f32
    %208 = vector.broadcast %cst_90 : f32 to vector<8x1xf32>
    %209 = arith.addf %207, %208 : vector<8x1xf32>
    %210 = math.rsqrt %209 : vector<8x1xf32>
    %211 = vector.broadcast %210 : vector<8x1xf32> to vector<8x128xf32>
    %212 = arith.mulf %1, %211 : vector<8x128xf32>
    %213 = arith.truncf %212 : vector<8x128xf32> to vector<8x128xbf16>
    %cst_91 = arith.constant dense<0.000000e+00> : vector<8x256xf32>
    %214 = tpu.matmul %213, %198, %cst_91 {dimension_numbers = #tpu.dot_dimension_numbers<[1], [0], [0], [1], [0, 0, 1, 1], [], []>} : vector<8x128xbf16>, vector<128x256xbf16>, vector<8x256xf32> -> vector<8x256xf32>
    %cst_92 = arith.constant 0.000000e+00 : f32
    %215 = vector.broadcast %cst_92 : f32 to vector<8x256xf32>
    %216 = arith.maximumf %214, %215 : vector<8x256xf32>
    %217 = arith.mulf %216, %216 : vector<8x256xf32>
    %218 = arith.truncf %217 : vector<8x256xf32> to vector<8x256xbf16>
    %cst_93 = arith.constant dense<0.000000e+00> : vector<8x128xf32>
    %219 = tpu.matmul %218, %200, %cst_93 {dimension_numbers = #tpu.dot_dimension_numbers<[1], [0], [0], [1], [0, 0, 1, 1], [], []>} : vector<8x256xbf16>, vector<256x128xbf16>, vector<8x128xf32> -> vector<8x128xf32>
    %220 = vector.broadcast %202 : vector<1x128xf32> to vector<8x128xf32>
    %221 = arith.mulf %219, %220 : vector<8x128xf32>
    %222 = arith.addf %1, %221 : vector<8x128xf32>
    %c1_94 = arith.constant 1 : index
    %c0_95 = arith.constant 0 : index
    %c0_96 = arith.constant 0 : index
    %223 = vector.load %arg10[%c1_94, %c0_95, %c0_96] : memref<2x128x256xbf16, #tpu.memory_space<vmem>>, vector<1x128x256xbf16>
    %224 = vector.shape_cast %223 : vector<1x128x256xbf16> to vector<128x256xbf16>
    %c1_97 = arith.constant 1 : index
    %c0_98 = arith.constant 0 : index
    %c0_99 = arith.constant 0 : index
    %225 = vector.load %arg11[%c1_97, %c0_98, %c0_99] : memref<2x256x128xbf16, #tpu.memory_space<vmem>>, vector<1x256x128xbf16>
    %226 = vector.shape_cast %225 : vector<1x256x128xbf16> to vector<256x128xbf16>
    %c1_100 = arith.constant 1 : index
    %c0_101 = arith.constant 0 : index
    %c0_102 = arith.constant 0 : index
    %227 = vector.load %arg12[%c1_100, %c0_101, %c0_102] : memref<2x1x128xf32, #tpu.memory_space<vmem>>, vector<1x1x128xf32>
    %228 = vector.shape_cast %227 : vector<1x1x128xf32> to vector<1x128xf32>
    %229 = arith.mulf %222, %222 : vector<8x128xf32>
    %cst_103 = arith.constant dense<0.000000e+00> : vector<8xf32>
    %230 = vector.multi_reduction <add>, %229, %cst_103 [1] : vector<8x128xf32> to vector<8xf32>
    %231 = vector.shape_cast %230 : vector<8xf32> to vector<8x1xf32>
    %cst_104 = arith.constant 1.280000e+02 : f32
    %232 = vector.broadcast %cst_104 : f32 to vector<8x1xf32>
    %233 = arith.divf %231, %232 : vector<8x1xf32>
    %cst_105 = arith.constant 9.99999997E-7 : f32
    %234 = vector.broadcast %cst_105 : f32 to vector<8x1xf32>
    %235 = arith.addf %233, %234 : vector<8x1xf32>
    %236 = math.rsqrt %235 : vector<8x1xf32>
    %237 = vector.broadcast %236 : vector<8x1xf32> to vector<8x128xf32>
    %238 = arith.mulf %222, %237 : vector<8x128xf32>
    %239 = arith.truncf %238 : vector<8x128xf32> to vector<8x128xbf16>
    %cst_106 = arith.constant dense<0.000000e+00> : vector<8x256xf32>
    %240 = tpu.matmul %239, %224, %cst_106 {dimension_numbers = #tpu.dot_dimension_numbers<[1], [0], [0], [1], [0, 0, 1, 1], [], []>} : vector<8x128xbf16>, vector<128x256xbf16>, vector<8x256xf32> -> vector<8x256xf32>
    %cst_107 = arith.constant 0.000000e+00 : f32
    %241 = vector.broadcast %cst_107 : f32 to vector<8x256xf32>
    %242 = arith.maximumf %240, %241 : vector<8x256xf32>
    %243 = arith.mulf %242, %242 : vector<8x256xf32>
    %244 = arith.truncf %243 : vector<8x256xf32> to vector<8x256xbf16>
    %cst_108 = arith.constant dense<0.000000e+00> : vector<8x128xf32>
    %245 = tpu.matmul %244, %226, %cst_108 {dimension_numbers = #tpu.dot_dimension_numbers<[1], [0], [0], [1], [0, 0, 1, 1], [], []>} : vector<8x256xbf16>, vector<256x128xbf16>, vector<8x128xf32> -> vector<8x128xf32>
    %246 = vector.broadcast %228 : vector<1x128xf32> to vector<8x128xf32>
    %247 = arith.mulf %245, %246 : vector<8x128xf32>
    %248 = arith.addf %222, %247 : vector<8x128xf32>
    %249 = tpu.iota {dimensions = array<i32: 1>} : vector<8x128xi32>
    %c16_i32 = arith.constant 16 : i32
    %250 = vector.broadcast %c16_i32 : i32 to vector<8x128xi32>
    %251 = arith.cmpi slt, %249, %250 : vector<8x128xi32>
    %cst_109 = arith.constant 0.000000e+00 : f32
    %252 = vector.broadcast %cst_109 : f32 to vector<8x1xf32>
    %253 = arith.mulf %248, %248 : vector<8x128xf32>
    %cst_110 = arith.constant dense<0.000000e+00> : vector<8xf32>
    %254 = vector.multi_reduction <add>, %253, %cst_110 [1] : vector<8x128xf32> to vector<8xf32>
    %255 = vector.shape_cast %254 : vector<8xf32> to vector<8x1xf32>
    %cst_111 = arith.constant 1.280000e+02 : f32
    %256 = vector.broadcast %cst_111 : f32 to vector<8x1xf32>
    %257 = arith.divf %255, %256 : vector<8x1xf32>
    %cst_112 = arith.constant 9.99999997E-7 : f32
    %258 = vector.broadcast %cst_112 : f32 to vector<8x1xf32>
    %259 = arith.addf %257, %258 : vector<8x1xf32>
    %260 = math.rsqrt %259 : vector<8x1xf32>
    %261 = vector.broadcast %260 : vector<8x1xf32> to vector<8x128xf32>
    %262 = arith.mulf %248, %261 : vector<8x128xf32>
    %263 = arith.truncf %262 : vector<8x128xf32> to vector<8x128xbf16>
    %c0_113 = arith.constant 0 : index
    %c0_114 = arith.constant 0 : index
    %c0_115 = arith.constant 0 : index
    %264 = vector.load %arg13[%c0_113, %c0_114, %c0_115] : memref<4x128x128xbf16, #tpu.memory_space<vmem>>, vector<1x128x128xbf16>
    %265 = vector.shape_cast %264 : vector<1x128x128xbf16> to vector<128x128xbf16>
    %cst_116 = arith.constant dense<0.000000e+00> : vector<8x128xf32>
    %266 = tpu.matmul %263, %265, %cst_116 {dimension_numbers = #tpu.dot_dimension_numbers<[1], [0], [0], [1], [0, 0, 1, 1], [], []>} : vector<8x128xbf16>, vector<128x128xbf16>, vector<8x128xf32> -> vector<8x128xf32>
    %cst_117 = arith.constant -1.000000e+30 : f32
    %267 = vector.broadcast %cst_117 : f32 to vector<8x128xf32>
    %268 = arith.select %251, %266, %267 : vector<8x128xi1>, vector<8x128xf32>
    %269 = arith.fptosi %133 : vector<8x1xf32> to vector<8x1xi32>
    %270 = vector.broadcast %269 : vector<8x1xi32> to vector<8x128xi32>
    %271 = arith.cmpi eq, %249, %270 : vector<8x128xi32>
    %272 = arith.extui %271 : vector<8x128xi1> to vector<8x128xi32>
    %273 = arith.sitofp %272 : vector<8x128xi32> to vector<8x128xf32>
    %cst_118 = arith.constant dense<0xFF800000> : vector<8xf32>
    %274 = vector.multi_reduction <maximumf>, %268, %cst_118 [1] : vector<8x128xf32> to vector<8xf32>
    %275 = vector.shape_cast %274 : vector<8xf32> to vector<8x1xf32>
    %276 = vector.broadcast %275 : vector<8x1xf32> to vector<8x128xf32>
    %277 = arith.subf %268, %276 : vector<8x128xf32>
    %278 = math.exp %277 : vector<8x128xf32>
    %cst_119 = arith.constant dense<0.000000e+00> : vector<8xf32>
    %279 = vector.multi_reduction <add>, %278, %cst_119 [1] : vector<8x128xf32> to vector<8xf32>
    %280 = vector.shape_cast %279 : vector<8xf32> to vector<8x1xf32>
    %281 = math.log %280 : vector<8x1xf32>
    %282 = arith.addf %275, %281 : vector<8x1xf32>
    %283 = arith.mulf %268, %273 : vector<8x128xf32>
    %cst_120 = arith.constant dense<0.000000e+00> : vector<8xf32>
    %284 = vector.multi_reduction <add>, %283, %cst_120 [1] : vector<8x128xf32> to vector<8xf32>
    %285 = vector.shape_cast %284 : vector<8xf32> to vector<8x1xf32>
    %286 = arith.subf %282, %285 : vector<8x1xf32>
    %287 = arith.addf %252, %286 : vector<8x1xf32>
    %288 = arith.truncf %273 : vector<8x128xf32> to vector<8x128xbf16>
    %c0_121 = arith.constant 0 : index
    %c0_122 = arith.constant 0 : index
    %c0_123 = arith.constant 0 : index
    %289 = vector.load %arg15[%c0_121, %c0_122, %c0_123] : memref<3x128x256xbf16, #tpu.memory_space<vmem>>, vector<1x128x256xbf16>
    %290 = vector.shape_cast %289 : vector<1x128x256xbf16> to vector<128x256xbf16>
    %cst_124 = arith.constant dense<0.000000e+00> : vector<8x256xf32>
    %291 = tpu.matmul %288, %290, %cst_124 {dimension_numbers = #tpu.dot_dimension_numbers<[1], [0], [0], [1], [0, 0, 1, 1], [], []>} : vector<8x128xbf16>, vector<128x256xbf16>, vector<8x256xf32> -> vector<8x256xf32>
    %c0_125 = arith.constant 0 : index
    %c0_126 = arith.constant 0 : index
    %c0_127 = arith.constant 0 : index
    %292 = vector.load %arg14[%c0_125, %c0_126, %c0_127] : memref<3x128x256xbf16, #tpu.memory_space<vmem>>, vector<1x128x256xbf16>
    %293 = vector.shape_cast %292 : vector<1x128x256xbf16> to vector<128x256xbf16>
    %cst_128 = arith.constant dense<0.000000e+00> : vector<8x256xf32>
    %294 = tpu.matmul %263, %293, %cst_128 {dimension_numbers = #tpu.dot_dimension_numbers<[1], [0], [0], [1], [0, 0, 1, 1], [], []>} : vector<8x128xbf16>, vector<128x256xbf16>, vector<8x256xf32> -> vector<8x256xf32>
    %cst_129 = arith.constant 1.000000e+00 : f32
    %295 = vector.broadcast %cst_129 : f32 to vector<8x256xf32>
    %296 = arith.addf %295, %291 : vector<8x256xf32>
    %297 = arith.mulf %294, %296 : vector<8x256xf32>
    %298 = arith.negf %297 : vector<8x256xf32>
    %299 = math.exp %298 : vector<8x256xf32>
    %cst_130 = arith.constant 1.000000e+00 : f32
    %300 = vector.broadcast %cst_130 : f32 to vector<8x256xf32>
    %301 = arith.addf %300, %299 : vector<8x256xf32>
    %302 = arith.divf %300, %301 : vector<8x256xf32>
    %303 = arith.mulf %297, %302 : vector<8x256xf32>
    %304 = arith.truncf %303 : vector<8x256xf32> to vector<8x256xbf16>
    %c0_131 = arith.constant 0 : index
    %c0_132 = arith.constant 0 : index
    %c0_133 = arith.constant 0 : index
    %305 = vector.load %arg16[%c0_131, %c0_132, %c0_133] : memref<3x256x128xbf16, #tpu.memory_space<vmem>>, vector<1x256x128xbf16>
    %306 = vector.shape_cast %305 : vector<1x256x128xbf16> to vector<256x128xbf16>
    %cst_134 = arith.constant dense<0.000000e+00> : vector<8x128xf32>
    %307 = tpu.matmul %304, %306, %cst_134 {dimension_numbers = #tpu.dot_dimension_numbers<[1], [0], [0], [1], [0, 0, 1, 1], [], []>} : vector<8x256xbf16>, vector<256x128xbf16>, vector<8x128xf32> -> vector<8x128xf32>
    %c0_135 = arith.constant 0 : index
    %c0_136 = arith.constant 0 : index
    %c0_137 = arith.constant 0 : index
    %308 = vector.load %arg17[%c0_135, %c0_136, %c0_137] : memref<3x1x128xf32, #tpu.memory_space<vmem>>, vector<1x1x128xf32>
    %309 = vector.shape_cast %308 : vector<1x1x128xf32> to vector<1x128xf32>
    %310 = vector.broadcast %309 : vector<1x128xf32> to vector<8x128xf32>
    %311 = arith.mulf %307, %310 : vector<8x128xf32>
    %312 = arith.addf %248, %311 : vector<8x128xf32>
    %313 = arith.mulf %312, %312 : vector<8x128xf32>
    %cst_138 = arith.constant dense<0.000000e+00> : vector<8xf32>
    %314 = vector.multi_reduction <add>, %313, %cst_138 [1] : vector<8x128xf32> to vector<8xf32>
    %315 = vector.shape_cast %314 : vector<8xf32> to vector<8x1xf32>
    %cst_139 = arith.constant 1.280000e+02 : f32
    %316 = vector.broadcast %cst_139 : f32 to vector<8x1xf32>
    %317 = arith.divf %315, %316 : vector<8x1xf32>
    %cst_140 = arith.constant 9.99999997E-7 : f32
    %318 = vector.broadcast %cst_140 : f32 to vector<8x1xf32>
    %319 = arith.addf %317, %318 : vector<8x1xf32>
    %320 = math.rsqrt %319 : vector<8x1xf32>
    %321 = vector.broadcast %320 : vector<8x1xf32> to vector<8x128xf32>
    %322 = arith.mulf %312, %321 : vector<8x128xf32>
    %323 = arith.truncf %322 : vector<8x128xf32> to vector<8x128xbf16>
    %c1_141 = arith.constant 1 : index
    %c0_142 = arith.constant 0 : index
    %c0_143 = arith.constant 0 : index
    %324 = vector.load %arg13[%c1_141, %c0_142, %c0_143] : memref<4x128x128xbf16, #tpu.memory_space<vmem>>, vector<1x128x128xbf16>
    %325 = vector.shape_cast %324 : vector<1x128x128xbf16> to vector<128x128xbf16>
    %cst_144 = arith.constant dense<0.000000e+00> : vector<8x128xf32>
    %326 = tpu.matmul %323, %325, %cst_144 {dimension_numbers = #tpu.dot_dimension_numbers<[1], [0], [0], [1], [0, 0, 1, 1], [], []>} : vector<8x128xbf16>, vector<128x128xbf16>, vector<8x128xf32> -> vector<8x128xf32>
    %cst_145 = arith.constant -1.000000e+30 : f32
    %327 = vector.broadcast %cst_145 : f32 to vector<8x128xf32>
    %328 = arith.select %251, %326, %327 : vector<8x128xi1>, vector<8x128xf32>
    %329 = arith.fptosi %154 : vector<8x1xf32> to vector<8x1xi32>
    %330 = vector.broadcast %329 : vector<8x1xi32> to vector<8x128xi32>
    %331 = arith.cmpi eq, %249, %330 : vector<8x128xi32>
    %332 = arith.extui %331 : vector<8x128xi1> to vector<8x128xi32>
    %333 = arith.sitofp %332 : vector<8x128xi32> to vector<8x128xf32>
    %cst_146 = arith.constant dense<0xFF800000> : vector<8xf32>
    %334 = vector.multi_reduction <maximumf>, %328, %cst_146 [1] : vector<8x128xf32> to vector<8xf32>
    %335 = vector.shape_cast %334 : vector<8xf32> to vector<8x1xf32>
    %336 = vector.broadcast %335 : vector<8x1xf32> to vector<8x128xf32>
    %337 = arith.subf %328, %336 : vector<8x128xf32>
    %338 = math.exp %337 : vector<8x128xf32>
    %cst_147 = arith.constant dense<0.000000e+00> : vector<8xf32>
    %339 = vector.multi_reduction <add>, %338, %cst_147 [1] : vector<8x128xf32> to vector<8xf32>
    %340 = vector.shape_cast %339 : vector<8xf32> to vector<8x1xf32>
    %341 = math.log %340 : vector<8x1xf32>
    %342 = arith.addf %335, %341 : vector<8x1xf32>
    %343 = arith.mulf %328, %333 : vector<8x128xf32>
    %cst_148 = arith.constant dense<0.000000e+00> : vector<8xf32>
    %344 = vector.multi_reduction <add>, %343, %cst_148 [1] : vector<8x128xf32> to vector<8xf32>
    %345 = vector.shape_cast %344 : vector<8xf32> to vector<8x1xf32>
    %346 = arith.subf %342, %345 : vector<8x1xf32>
    %347 = arith.addf %287, %346 : vector<8x1xf32>
    %348 = arith.truncf %333 : vector<8x128xf32> to vector<8x128xbf16>
    %c1_149 = arith.constant 1 : index
    %c0_150 = arith.constant 0 : index
    %c0_151 = arith.constant 0 : index
    %349 = vector.load %arg15[%c1_149, %c0_150, %c0_151] : memref<3x128x256xbf16, #tpu.memory_space<vmem>>, vector<1x128x256xbf16>
    %350 = vector.shape_cast %349 : vector<1x128x256xbf16> to vector<128x256xbf16>
    %cst_152 = arith.constant dense<0.000000e+00> : vector<8x256xf32>
    %351 = tpu.matmul %348, %350, %cst_152 {dimension_numbers = #tpu.dot_dimension_numbers<[1], [0], [0], [1], [0, 0, 1, 1], [], []>} : vector<8x128xbf16>, vector<128x256xbf16>, vector<8x256xf32> -> vector<8x256xf32>
    %c1_153 = arith.constant 1 : index
    %c0_154 = arith.constant 0 : index
    %c0_155 = arith.constant 0 : index
    %352 = vector.load %arg14[%c1_153, %c0_154, %c0_155] : memref<3x128x256xbf16, #tpu.memory_space<vmem>>, vector<1x128x256xbf16>
    %353 = vector.shape_cast %352 : vector<1x128x256xbf16> to vector<128x256xbf16>
    %cst_156 = arith.constant dense<0.000000e+00> : vector<8x256xf32>
    %354 = tpu.matmul %323, %353, %cst_156 {dimension_numbers = #tpu.dot_dimension_numbers<[1], [0], [0], [1], [0, 0, 1, 1], [], []>} : vector<8x128xbf16>, vector<128x256xbf16>, vector<8x256xf32> -> vector<8x256xf32>
    %cst_157 = arith.constant 1.000000e+00 : f32
    %355 = vector.broadcast %cst_157 : f32 to vector<8x256xf32>
    %356 = arith.addf %355, %351 : vector<8x256xf32>
    %357 = arith.mulf %354, %356 : vector<8x256xf32>
    %358 = arith.negf %357 : vector<8x256xf32>
    %359 = math.exp %358 : vector<8x256xf32>
    %cst_158 = arith.constant 1.000000e+00 : f32
    %360 = vector.broadcast %cst_158 : f32 to vector<8x256xf32>
    %361 = arith.addf %360, %359 : vector<8x256xf32>
    %362 = arith.divf %360, %361 : vector<8x256xf32>
    %363 = arith.mulf %357, %362 : vector<8x256xf32>
    %364 = arith.truncf %363 : vector<8x256xf32> to vector<8x256xbf16>
    %c1_159 = arith.constant 1 : index
    %c0_160 = arith.constant 0 : index
    %c0_161 = arith.constant 0 : index
    %365 = vector.load %arg16[%c1_159, %c0_160, %c0_161] : memref<3x256x128xbf16, #tpu.memory_space<vmem>>, vector<1x256x128xbf16>
    %366 = vector.shape_cast %365 : vector<1x256x128xbf16> to vector<256x128xbf16>
    %cst_162 = arith.constant dense<0.000000e+00> : vector<8x128xf32>
    %367 = tpu.matmul %364, %366, %cst_162 {dimension_numbers = #tpu.dot_dimension_numbers<[1], [0], [0], [1], [0, 0, 1, 1], [], []>} : vector<8x256xbf16>, vector<256x128xbf16>, vector<8x128xf32> -> vector<8x128xf32>
    %c1_163 = arith.constant 1 : index
    %c0_164 = arith.constant 0 : index
    %c0_165 = arith.constant 0 : index
    %368 = vector.load %arg17[%c1_163, %c0_164, %c0_165] : memref<3x1x128xf32, #tpu.memory_space<vmem>>, vector<1x1x128xf32>
    %369 = vector.shape_cast %368 : vector<1x1x128xf32> to vector<1x128xf32>
    %370 = vector.broadcast %369 : vector<1x128xf32> to vector<8x128xf32>
    %371 = arith.mulf %367, %370 : vector<8x128xf32>
    %372 = arith.addf %312, %371 : vector<8x128xf32>
    %373 = arith.mulf %372, %372 : vector<8x128xf32>
    %cst_166 = arith.constant dense<0.000000e+00> : vector<8xf32>
    %374 = vector.multi_reduction <add>, %373, %cst_166 [1] : vector<8x128xf32> to vector<8xf32>
    %375 = vector.shape_cast %374 : vector<8xf32> to vector<8x1xf32>
    %cst_167 = arith.constant 1.280000e+02 : f32
    %376 = vector.broadcast %cst_167 : f32 to vector<8x1xf32>
    %377 = arith.divf %375, %376 : vector<8x1xf32>
    %cst_168 = arith.constant 9.99999997E-7 : f32
    %378 = vector.broadcast %cst_168 : f32 to vector<8x1xf32>
    %379 = arith.addf %377, %378 : vector<8x1xf32>
    %380 = math.rsqrt %379 : vector<8x1xf32>
    %381 = vector.broadcast %380 : vector<8x1xf32> to vector<8x128xf32>
    %382 = arith.mulf %372, %381 : vector<8x128xf32>
    %383 = arith.truncf %382 : vector<8x128xf32> to vector<8x128xbf16>
    %c2 = arith.constant 2 : index
    %c0_169 = arith.constant 0 : index
    %c0_170 = arith.constant 0 : index
    %384 = vector.load %arg13[%c2, %c0_169, %c0_170] : memref<4x128x128xbf16, #tpu.memory_space<vmem>>, vector<1x128x128xbf16>
    %385 = vector.shape_cast %384 : vector<1x128x128xbf16> to vector<128x128xbf16>
    %cst_171 = arith.constant dense<0.000000e+00> : vector<8x128xf32>
    %386 = tpu.matmul %383, %385, %cst_171 {dimension_numbers = #tpu.dot_dimension_numbers<[1], [0], [0], [1], [0, 0, 1, 1], [], []>} : vector<8x128xbf16>, vector<128x128xbf16>, vector<8x128xf32> -> vector<8x128xf32>
    %cst_172 = arith.constant -1.000000e+30 : f32
    %387 = vector.broadcast %cst_172 : f32 to vector<8x128xf32>
    %388 = arith.select %251, %386, %387 : vector<8x128xi1>, vector<8x128xf32>
    %389 = arith.fptosi %175 : vector<8x1xf32> to vector<8x1xi32>
    %390 = vector.broadcast %389 : vector<8x1xi32> to vector<8x128xi32>
    %391 = arith.cmpi eq, %249, %390 : vector<8x128xi32>
    %392 = arith.extui %391 : vector<8x128xi1> to vector<8x128xi32>
    %393 = arith.sitofp %392 : vector<8x128xi32> to vector<8x128xf32>
    %cst_173 = arith.constant dense<0xFF800000> : vector<8xf32>
    %394 = vector.multi_reduction <maximumf>, %388, %cst_173 [1] : vector<8x128xf32> to vector<8xf32>
    %395 = vector.shape_cast %394 : vector<8xf32> to vector<8x1xf32>
    %396 = vector.broadcast %395 : vector<8x1xf32> to vector<8x128xf32>
    %397 = arith.subf %388, %396 : vector<8x128xf32>
    %398 = math.exp %397 : vector<8x128xf32>
    %cst_174 = arith.constant dense<0.000000e+00> : vector<8xf32>
    %399 = vector.multi_reduction <add>, %398, %cst_174 [1] : vector<8x128xf32> to vector<8xf32>
    %400 = vector.shape_cast %399 : vector<8xf32> to vector<8x1xf32>
    %401 = math.log %400 : vector<8x1xf32>
    %402 = arith.addf %395, %401 : vector<8x1xf32>
    %403 = arith.mulf %388, %393 : vector<8x128xf32>
    %cst_175 = arith.constant dense<0.000000e+00> : vector<8xf32>
    %404 = vector.multi_reduction <add>, %403, %cst_175 [1] : vector<8x128xf32> to vector<8xf32>
    %405 = vector.shape_cast %404 : vector<8xf32> to vector<8x1xf32>
    %406 = arith.subf %402, %405 : vector<8x1xf32>
    %407 = arith.addf %347, %406 : vector<8x1xf32>
    %408 = arith.truncf %393 : vector<8x128xf32> to vector<8x128xbf16>
    %c2_176 = arith.constant 2 : index
    %c0_177 = arith.constant 0 : index
    %c0_178 = arith.constant 0 : index
    %409 = vector.load %arg15[%c2_176, %c0_177, %c0_178] : memref<3x128x256xbf16, #tpu.memory_space<vmem>>, vector<1x128x256xbf16>
    %410 = vector.shape_cast %409 : vector<1x128x256xbf16> to vector<128x256xbf16>
    %cst_179 = arith.constant dense<0.000000e+00> : vector<8x256xf32>
    %411 = tpu.matmul %408, %410, %cst_179 {dimension_numbers = #tpu.dot_dimension_numbers<[1], [0], [0], [1], [0, 0, 1, 1], [], []>} : vector<8x128xbf16>, vector<128x256xbf16>, vector<8x256xf32> -> vector<8x256xf32>
    %c2_180 = arith.constant 2 : index
    %c0_181 = arith.constant 0 : index
    %c0_182 = arith.constant 0 : index
    %412 = vector.load %arg14[%c2_180, %c0_181, %c0_182] : memref<3x128x256xbf16, #tpu.memory_space<vmem>>, vector<1x128x256xbf16>
    %413 = vector.shape_cast %412 : vector<1x128x256xbf16> to vector<128x256xbf16>
    %cst_183 = arith.constant dense<0.000000e+00> : vector<8x256xf32>
    %414 = tpu.matmul %383, %413, %cst_183 {dimension_numbers = #tpu.dot_dimension_numbers<[1], [0], [0], [1], [0, 0, 1, 1], [], []>} : vector<8x128xbf16>, vector<128x256xbf16>, vector<8x256xf32> -> vector<8x256xf32>
    %cst_184 = arith.constant 1.000000e+00 : f32
    %415 = vector.broadcast %cst_184 : f32 to vector<8x256xf32>
    %416 = arith.addf %415, %411 : vector<8x256xf32>
    %417 = arith.mulf %414, %416 : vector<8x256xf32>
    %418 = arith.negf %417 : vector<8x256xf32>
    %419 = math.exp %418 : vector<8x256xf32>
    %cst_185 = arith.constant 1.000000e+00 : f32
    %420 = vector.broadcast %cst_185 : f32 to vector<8x256xf32>
    %421 = arith.addf %420, %419 : vector<8x256xf32>
    %422 = arith.divf %420, %421 : vector<8x256xf32>
    %423 = arith.mulf %417, %422 : vector<8x256xf32>
    %424 = arith.truncf %423 : vector<8x256xf32> to vector<8x256xbf16>
    %c2_186 = arith.constant 2 : index
    %c0_187 = arith.constant 0 : index
    %c0_188 = arith.constant 0 : index
    %425 = vector.load %arg16[%c2_186, %c0_187, %c0_188] : memref<3x256x128xbf16, #tpu.memory_space<vmem>>, vector<1x256x128xbf16>
    %426 = vector.shape_cast %425 : vector<1x256x128xbf16> to vector<256x128xbf16>
    %cst_189 = arith.constant dense<0.000000e+00> : vector<8x128xf32>
    %427 = tpu.matmul %424, %426, %cst_189 {dimension_numbers = #tpu.dot_dimension_numbers<[1], [0], [0], [1], [0, 0, 1, 1], [], []>} : vector<8x256xbf16>, vector<256x128xbf16>, vector<8x128xf32> -> vector<8x128xf32>
    %c2_190 = arith.constant 2 : index
    %c0_191 = arith.constant 0 : index
    %c0_192 = arith.constant 0 : index
    %428 = vector.load %arg17[%c2_190, %c0_191, %c0_192] : memref<3x1x128xf32, #tpu.memory_space<vmem>>, vector<1x1x128xf32>
    %429 = vector.shape_cast %428 : vector<1x1x128xf32> to vector<1x128xf32>
    %430 = vector.broadcast %429 : vector<1x128xf32> to vector<8x128xf32>
    %431 = arith.mulf %427, %430 : vector<8x128xf32>
    %432 = arith.addf %372, %431 : vector<8x128xf32>
    %433 = arith.mulf %432, %432 : vector<8x128xf32>
    %cst_193 = arith.constant dense<0.000000e+00> : vector<8xf32>
    %434 = vector.multi_reduction <add>, %433, %cst_193 [1] : vector<8x128xf32> to vector<8xf32>
    %435 = vector.shape_cast %434 : vector<8xf32> to vector<8x1xf32>
    %cst_194 = arith.constant 1.280000e+02 : f32
    %436 = vector.broadcast %cst_194 : f32 to vector<8x1xf32>
    %437 = arith.divf %435, %436 : vector<8x1xf32>
    %cst_195 = arith.constant 9.99999997E-7 : f32
    %438 = vector.broadcast %cst_195 : f32 to vector<8x1xf32>
    %439 = arith.addf %437, %438 : vector<8x1xf32>
    %440 = math.rsqrt %439 : vector<8x1xf32>
    %441 = vector.broadcast %440 : vector<8x1xf32> to vector<8x128xf32>
    %442 = arith.mulf %432, %441 : vector<8x128xf32>
    %443 = arith.truncf %442 : vector<8x128xf32> to vector<8x128xbf16>
    %c3 = arith.constant 3 : index
    %c0_196 = arith.constant 0 : index
    %c0_197 = arith.constant 0 : index
    %444 = vector.load %arg13[%c3, %c0_196, %c0_197] : memref<4x128x128xbf16, #tpu.memory_space<vmem>>, vector<1x128x128xbf16>
    %445 = vector.shape_cast %444 : vector<1x128x128xbf16> to vector<128x128xbf16>
    %cst_198 = arith.constant dense<0.000000e+00> : vector<8x128xf32>
    %446 = tpu.matmul %443, %445, %cst_198 {dimension_numbers = #tpu.dot_dimension_numbers<[1], [0], [0], [1], [0, 0, 1, 1], [], []>} : vector<8x128xbf16>, vector<128x128xbf16>, vector<8x128xf32> -> vector<8x128xf32>
    %cst_199 = arith.constant -1.000000e+30 : f32
    %447 = vector.broadcast %cst_199 : f32 to vector<8x128xf32>
    %448 = arith.select %251, %446, %447 : vector<8x128xi1>, vector<8x128xf32>
    %449 = arith.fptosi %196 : vector<8x1xf32> to vector<8x1xi32>
    %450 = vector.broadcast %449 : vector<8x1xi32> to vector<8x128xi32>
    %451 = arith.cmpi eq, %249, %450 : vector<8x128xi32>
    %452 = arith.extui %451 : vector<8x128xi1> to vector<8x128xi32>
    %453 = arith.sitofp %452 : vector<8x128xi32> to vector<8x128xf32>
    %cst_200 = arith.constant dense<0xFF800000> : vector<8xf32>
    %454 = vector.multi_reduction <maximumf>, %448, %cst_200 [1] : vector<8x128xf32> to vector<8xf32>
    %455 = vector.shape_cast %454 : vector<8xf32> to vector<8x1xf32>
    %456 = vector.broadcast %455 : vector<8x1xf32> to vector<8x128xf32>
    %457 = arith.subf %448, %456 : vector<8x128xf32>
    %458 = math.exp %457 : vector<8x128xf32>
    %cst_201 = arith.constant dense<0.000000e+00> : vector<8xf32>
    %459 = vector.multi_reduction <add>, %458, %cst_201 [1] : vector<8x128xf32> to vector<8xf32>
    %460 = vector.shape_cast %459 : vector<8xf32> to vector<8x1xf32>
    %461 = math.log %460 : vector<8x1xf32>
    %462 = arith.addf %455, %461 : vector<8x1xf32>
    %463 = arith.mulf %448, %453 : vector<8x128xf32>
    %cst_202 = arith.constant dense<0.000000e+00> : vector<8xf32>
    %464 = vector.multi_reduction <add>, %463, %cst_202 [1] : vector<8x128xf32> to vector<8xf32>
    %465 = vector.shape_cast %464 : vector<8xf32> to vector<8x1xf32>
    %466 = arith.subf %462, %465 : vector<8x1xf32>
    %467 = arith.addf %407, %466 : vector<8x1xf32>
    %c0_203 = arith.constant 0 : index
    %c0_204 = arith.constant 0 : index
    %468 = vector.load %arg25[%c0_203, %c0_204] : memref<8x1xf32, #tpu.memory_space<vmem>>, vector<8x1xf32>
    tpu.vector_store %arg25[%c0_203, %c0_204], %467 {strides = array<i32>} : memref<8x1xf32, #tpu.memory_space<vmem>>, vector<8x1xf32>,
    %cst_205 = arith.constant 1.732000e+00 : f32
    %469 = vector.broadcast %cst_205 : f32 to vector<8x8xf32>
    %470 = arith.mulf %469, %111 : vector<8x8xf32>
    %471 = arith.truncf %470 : vector<8x8xf32> to vector<8x8xbf16>
    %c0_206 = arith.constant 0 : index
    %c0_207 = arith.constant 0 : index
    %472 = vector.load %arg18[%c0_206, %c0_207] : memref<8x128xbf16, #tpu.memory_space<vmem>>, vector<8x128xbf16>
    %cst_208 = arith.constant dense<0.000000e+00> : vector<8x128xf32>
    %473 = tpu.matmul %471, %472, %cst_208 {dimension_numbers = #tpu.dot_dimension_numbers<[1], [0], [0], [1], [0, 0, 1, 1], [], []>} : vector<8x8xbf16>, vector<8x128xbf16>, vector<8x128xf32> -> vector<8x128xf32>
    %c0_209 = arith.constant 0 : index
    %c0_210 = arith.constant 0 : index
    %474 = vector.load %arg19[%c0_209, %c0_210] : memref<1x128xf32, #tpu.memory_space<vmem>>, vector<1x128xf32>
    %475 = vector.broadcast %474 : vector<1x128xf32> to vector<8x128xf32>
    %476 = arith.addf %473, %475 : vector<8x128xf32>
    %c0_211 = arith.constant 0 : index
    %c0_212 = arith.constant 0 : index
    %c0_213 = arith.constant 0 : index
    %477 = vector.load %arg20[%c0_211, %c0_212, %c0_213] : memref<2x128x256xbf16, #tpu.memory_space<vmem>>, vector<1x128x256xbf16>
    %478 = vector.shape_cast %477 : vector<1x128x256xbf16> to vector<128x256xbf16>
    %c0_214 = arith.constant 0 : index
    %c0_215 = arith.constant 0 : index
    %c0_216 = arith.constant 0 : index
    %479 = vector.load %arg21[%c0_214, %c0_215, %c0_216] : memref<2x128x256xbf16, #tpu.memory_space<vmem>>, vector<1x128x256xbf16>
    %480 = vector.shape_cast %479 : vector<1x128x256xbf16> to vector<128x256xbf16>
    %c0_217 = arith.constant 0 : index
    %c0_218 = arith.constant 0 : index
    %c0_219 = arith.constant 0 : index
    %481 = vector.load %arg22[%c0_217, %c0_218, %c0_219] : memref<2x256x128xbf16, #tpu.memory_space<vmem>>, vector<1x256x128xbf16>
    %482 = vector.shape_cast %481 : vector<1x256x128xbf16> to vector<256x128xbf16>
    %c0_220 = arith.constant 0 : index
    %c0_221 = arith.constant 0 : index
    %c0_222 = arith.constant 0 : index
    %483 = vector.load %arg23[%c0_220, %c0_221, %c0_222] : memref<2x1x128xf32, #tpu.memory_space<vmem>>, vector<1x1x128xf32>
    %484 = vector.shape_cast %483 : vector<1x1x128xf32> to vector<1x128xf32>
    %485 = arith.mulf %476, %476 : vector<8x128xf32>
    %cst_223 = arith.constant dense<0.000000e+00> : vector<8xf32>
    %486 = vector.multi_reduction <add>, %485, %cst_223 [1] : vector<8x128xf32> to vector<8xf32>
    %487 = vector.shape_cast %486 : vector<8xf32> to vector<8x1xf32>
    %cst_224 = arith.constant 1.280000e+02 : f32
    %488 = vector.broadcast %cst_224 : f32 to vector<8x1xf32>
    %489 = arith.divf %487, %488 : vector<8x1xf32>
    %cst_225 = arith.constant 9.99999997E-7 : f32
    %490 = vector.broadcast %cst_225 : f32 to vector<8x1xf32>
    %491 = arith.addf %489, %490 : vector<8x1xf32>
    %492 = math.rsqrt %491 : vector<8x1xf32>
    %493 = vector.broadcast %492 : vector<8x1xf32> to vector<8x128xf32>
    %494 = arith.mulf %476, %493 : vector<8x128xf32>
    %495 = arith.truncf %494 : vector<8x128xf32> to vector<8x128xbf16>
    %cst_226 = arith.constant dense<0.000000e+00> : vector<8x256xf32>
    %496 = tpu.matmul %495, %478, %cst_226 {dimension_numbers = #tpu.dot_dimension_numbers<[1], [0], [0], [1], [0, 0, 1, 1], [], []>} : vector<8x128xbf16>, vector<128x256xbf16>, vector<8x256xf32> -> vector<8x256xf32>
    %cst_227 = arith.constant dense<0.000000e+00> : vector<8x256xf32>
    %497 = tpu.matmul %12, %480, %cst_227 {dimension_numbers = #tpu.dot_dimension_numbers<[1], [0], [0], [1], [0, 0, 1, 1], [], []>} : vector<8x128xbf16>, vector<128x256xbf16>, vector<8x256xf32> -> vector<8x256xf32>
    %cst_228 = arith.constant 1.000000e+00 : f32
    %498 = vector.broadcast %cst_228 : f32 to vector<8x256xf32>
    %499 = arith.addf %498, %497 : vector<8x256xf32>
    %500 = arith.mulf %496, %499 : vector<8x256xf32>
    %501 = arith.negf %500 : vector<8x256xf32>
    %502 = math.exp %501 : vector<8x256xf32>
    %cst_229 = arith.constant 1.000000e+00 : f32
    %503 = vector.broadcast %cst_229 : f32 to vector<8x256xf32>
    %504 = arith.addf %503, %502 : vector<8x256xf32>
    %505 = arith.divf %503, %504 : vector<8x256xf32>
    %506 = arith.mulf %500, %505 : vector<8x256xf32>
    %507 = arith.truncf %506 : vector<8x256xf32> to vector<8x256xbf16>
    %cst_230 = arith.constant dense<0.000000e+00> : vector<8x128xf32>
    %508 = tpu.matmul %507, %482, %cst_230 {dimension_numbers = #tpu.dot_dimension_numbers<[1], [0], [0], [1], [0, 0, 1, 1], [], []>} : vector<8x256xbf16>, vector<256x128xbf16>, vector<8x128xf32> -> vector<8x128xf32>
    %509 = vector.broadcast %484 : vector<1x128xf32> to vector<8x128xf32>
    %510 = arith.mulf %508, %509 : vector<8x128xf32>
    %511 = arith.addf %476, %510 : vector<8x128xf32>
    %c1_231 = arith.constant 1 : index
    %c0_232 = arith.constant 0 : index
    %c0_233 = arith.constant 0 : index
    %512 = vector.load %arg20[%c1_231, %c0_232, %c0_233] : memref<2x128x256xbf16, #tpu.memory_space<vmem>>, vector<1x128x256xbf16>
    %513 = vector.shape_cast %512 : vector<1x128x256xbf16> to vector<128x256xbf16>
    %c1_234 = arith.constant 1 : index
    %c0_235 = arith.constant 0 : index
    %c0_236 = arith.constant 0 : index
    %514 = vector.load %arg21[%c1_234, %c0_235, %c0_236] : memref<2x128x256xbf16, #tpu.memory_space<vmem>>, vector<1x128x256xbf16>
    %515 = vector.shape_cast %514 : vector<1x128x256xbf16> to vector<128x256xbf16>
    %c1_237 = arith.constant 1 : index
    %c0_238 = arith.constant 0 : index
    %c0_239 = arith.constant 0 : index
    %516 = vector.load %arg22[%c1_237, %c0_238, %c0_239] : memref<2x256x128xbf16, #tpu.memory_space<vmem>>, vector<1x256x128xbf16>
    %517 = vector.shape_cast %516 : vector<1x256x128xbf16> to vector<256x128xbf16>
    %c1_240 = arith.constant 1 : index
    %c0_241 = arith.constant 0 : index
    %c0_242 = arith.constant 0 : index
    %518 = vector.load %arg23[%c1_240, %c0_241, %c0_242] : memref<2x1x128xf32, #tpu.memory_space<vmem>>, vector<1x1x128xf32>
    %519 = vector.shape_cast %518 : vector<1x1x128xf32> to vector<1x128xf32>
    %520 = arith.mulf %511, %511 : vector<8x128xf32>
    %cst_243 = arith.constant dense<0.000000e+00> : vector<8xf32>
    %521 = vector.multi_reduction <add>, %520, %cst_243 [1] : vector<8x128xf32> to vector<8xf32>
    %522 = vector.shape_cast %521 : vector<8xf32> to vector<8x1xf32>
    %cst_244 = arith.constant 1.280000e+02 : f32
    %523 = vector.broadcast %cst_244 : f32 to vector<8x1xf32>
    %524 = arith.divf %522, %523 : vector<8x1xf32>
    %cst_245 = arith.constant 9.99999997E-7 : f32
    %525 = vector.broadcast %cst_245 : f32 to vector<8x1xf32>
    %526 = arith.addf %524, %525 : vector<8x1xf32>
    %527 = math.rsqrt %526 : vector<8x1xf32>
    %528 = vector.broadcast %527 : vector<8x1xf32> to vector<8x128xf32>
    %529 = arith.mulf %511, %528 : vector<8x128xf32>
    %530 = arith.truncf %529 : vector<8x128xf32> to vector<8x128xbf16>
    %cst_246 = arith.constant dense<0.000000e+00> : vector<8x256xf32>
    %531 = tpu.matmul %530, %513, %cst_246 {dimension_numbers = #tpu.dot_dimension_numbers<[1], [0], [0], [1], [0, 0, 1, 1], [], []>} : vector<8x128xbf16>, vector<128x256xbf16>, vector<8x256xf32> -> vector<8x256xf32>
    %cst_247 = arith.constant dense<0.000000e+00> : vector<8x256xf32>
    %532 = tpu.matmul %12, %515, %cst_247 {dimension_numbers = #tpu.dot_dimension_numbers<[1], [0], [0], [1], [0, 0, 1, 1], [], []>} : vector<8x128xbf16>, vector<128x256xbf16>, vector<8x256xf32> -> vector<8x256xf32>
    %cst_248 = arith.constant 1.000000e+00 : f32
    %533 = vector.broadcast %cst_248 : f32 to vector<8x256xf32>
    %534 = arith.addf %533, %532 : vector<8x256xf32>
    %535 = arith.mulf %531, %534 : vector<8x256xf32>
    %536 = arith.negf %535 : vector<8x256xf32>
    %537 = math.exp %536 : vector<8x256xf32>
    %cst_249 = arith.constant 1.000000e+00 : f32
    %538 = vector.broadcast %cst_249 : f32 to vector<8x256xf32>
    %539 = arith.addf %538, %537 : vector<8x256xf32>
    %540 = arith.divf %538, %539 : vector<8x256xf32>
    %541 = arith.mulf %535, %540 : vector<8x256xf32>
    %542 = arith.truncf %541 : vector<8x256xf32> to vector<8x256xbf16>
    %cst_250 = arith.constant dense<0.000000e+00> : vector<8x128xf32>
    %543 = tpu.matmul %542, %517, %cst_250 {dimension_numbers = #tpu.dot_dimension_numbers<[1], [0], [0], [1], [0, 0, 1, 1], [], []>} : vector<8x256xbf16>, vector<256x128xbf16>, vector<8x128xf32> -> vector<8x128xf32>
    %544 = vector.broadcast %519 : vector<1x128xf32> to vector<8x128xf32>
    %545 = arith.mulf %543, %544 : vector<8x128xf32>
    %546 = arith.addf %511, %545 : vector<8x128xf32>
    %547 = arith.mulf %546, %546 : vector<8x128xf32>
    %cst_251 = arith.constant dense<0.000000e+00> : vector<8xf32>
    %548 = vector.multi_reduction <add>, %547, %cst_251 [1] : vector<8x128xf32> to vector<8xf32>
    %549 = vector.shape_cast %548 : vector<8xf32> to vector<8x1xf32>
    %cst_252 = arith.constant 1.280000e+02 : f32
    %550 = vector.broadcast %cst_252 : f32 to vector<8x1xf32>
    %551 = arith.divf %549, %550 : vector<8x1xf32>
    %cst_253 = arith.constant 9.99999997E-7 : f32
    %552 = vector.broadcast %cst_253 : f32 to vector<8x1xf32>
    %553 = arith.addf %551, %552 : vector<8x1xf32>
    %554 = math.rsqrt %553 : vector<8x1xf32>
    %555 = vector.broadcast %554 : vector<8x1xf32> to vector<8x128xf32>
    %556 = arith.mulf %546, %555 : vector<8x128xf32>
    %557 = arith.truncf %556 : vector<8x128xf32> to vector<8x128xbf16>
    %c0_254 = arith.constant 0 : index
    %c0_255 = arith.constant 0 : index
    %558 = vector.load %arg24[%c0_254, %c0_255] : memref<128x784xbf16, #tpu.memory_space<vmem>>, vector<128x784xbf16>
    %cst_256 = arith.constant dense<0.000000e+00> : vector<8x784xf32>
    %559 = tpu.matmul %557, %558, %cst_256 {dimension_numbers = #tpu.dot_dimension_numbers<[1], [0], [0], [1], [0, 0, 1, 1], [], []>} : vector<8x128xbf16>, vector<128x784xbf16>, vector<8x784xf32> -> vector<8x784xf32>
    %560 = arith.subf %0, %559 : vector<8x784xf32>
    %561 = arith.mulf %560, %560 : vector<8x784xf32>
    %cst_257 = arith.constant dense<0.000000e+00> : vector<8xf32>
    %562 = vector.multi_reduction <add>, %561, %cst_257 [1] : vector<8x784xf32> to vector<8xf32>
    %563 = vector.shape_cast %562 : vector<8xf32> to vector<8x1xf32>
    %c0_258 = arith.constant 0 : index
    %c0_259 = arith.constant 0 : index
    %564 = vector.load %arg26[%c0_258, %c0_259] : memref<8x1xf32, #tpu.memory_space<vmem>>, vector<8x1xf32>
    tpu.vector_store %arg26[%c0_258, %c0_259], %563 {strides = array<i32>} : memref<8x1xf32, #tpu.memory_space<vmem>>, vector<8x1xf32>,
    return
  }
  func.func @transform_0(%arg0: i32) -> (i32, i32) {
    %c0_i32 = arith.constant 0 : i32
    %c0_i32_0 = arith.constant 0 : i32
    %c0_i32_1 = arith.constant 0 : i32
    return %c0_i32, %c0_i32_0 : i32, i32
  }
  func.func @transform_1(%arg0: i32) -> (i32, i32) {
    %c0_i32 = arith.constant 0 : i32
    %c0_i32_0 = arith.constant 0 : i32
    %c0_i32_1 = arith.constant 0 : i32
    return %c0_i32, %c0_i32_0 : i32, i32
  }
  func.func @transform_2(%arg0: i32) -> (i32, i32) {
    %c0_i32 = arith.constant 0 : i32
    %c0_i32_0 = arith.constant 0 : i32
    %c0_i32_1 = arith.constant 0 : i32
    return %c0_i32, %c0_i32_0 : i32, i32
  }
  func.func @transform_3(%arg0: i32) -> (i32, i32) {
    %c0_i32 = arith.constant 0 : i32
    %c0_i32_0 = arith.constant 0 : i32
    %c0_i32_1 = arith.constant 0 : i32
    return %c0_i32, %c0_i32_0 : i32, i32
  }
  func.func @transform_4(%arg0: i32) -> (i32, i32, i32) {
    %c0_i32 = arith.constant 0 : i32
    %c0_i32_0 = arith.constant 0 : i32
    %c0_i32_1 = arith.constant 0 : i32
    %c0_i32_2 = arith.constant 0 : i32
    return %c0_i32, %c0_i32_0, %c0_i32_1 : i32, i32, i32
  }
  func.func @transform_5(%arg0: i32) -> (i32, i32, i32) {
    %c0_i32 = arith.constant 0 : i32
    %c0_i32_0 = arith.constant 0 : i32
    %c0_i32_1 = arith.constant 0 : i32
    %c0_i32_2 = arith.constant 0 : i32
    return %c0_i32, %c0_i32_0, %c0_i32_1 : i32, i32, i32
  }
  func.func @transform_6(%arg0: i32) -> (i32, i32, i32) {
    %c0_i32 = arith.constant 0 : i32
    %c0_i32_0 = arith.constant 0 : i32
    %c0_i32_1 = arith.constant 0 : i32
    %c0_i32_2 = arith.constant 0 : i32
    return %c0_i32, %c0_i32_0, %c0_i32_1 : i32, i32, i32
  }
  func.func @transform_7(%arg0: i32) -> (i32, i32, i32) {
    %c0_i32 = arith.constant 0 : i32
    %c0_i32_0 = arith.constant 0 : i32
    %c0_i32_1 = arith.constant 0 : i32
    %c0_i32_2 = arith.constant 0 : i32
    return %c0_i32, %c0_i32_0, %c0_i32_1 : i32, i32, i32
  }
  func.func @transform_8(%arg0: i32) -> (i32, i32) {
    %c0_i32 = arith.constant 0 : i32
    %c0_i32_0 = arith.constant 0 : i32
    %c0_i32_1 = arith.constant 0 : i32
    return %c0_i32, %c0_i32_0 : i32, i32
  }
  func.func @transform_9(%arg0: i32) -> (i32, i32, i32) {
    %c0_i32 = arith.constant 0 : i32
    %c0_i32_0 = arith.constant 0 : i32
    %c0_i32_1 = arith.constant 0 : i32
    %c0_i32_2 = arith.constant 0 : i32
    return %c0_i32, %c0_i32_0, %c0_i32_1 : i32, i32, i32
  }
  func.func @transform_10(%arg0: i32) -> (i32, i32, i32) {
    %c0_i32 = arith.constant 0 : i32
    %c0_i32_0 = arith.constant 0 : i32
    %c0_i32_1 = arith.constant 0 : i32
    %c0_i32_2 = arith.constant 0 : i32
    return %c0_i32, %c0_i32_0, %c0_i32_1 : i32, i32, i32
  }
  func.func @transform_11(%arg0: i32) -> (i32, i32, i32) {
    %c0_i32 = arith.constant 0 : i32
    %c0_i32_0 = arith.constant 0 : i32
    %c0_i32_1 = arith.constant 0 : i32
    %c0_i32_2 = arith.constant 0 : i32
    return %c0_i32, %c0_i32_0, %c0_i32_1 : i32, i32, i32
  }
  func.func @transform_12(%arg0: i32) -> (i32, i32, i32) {
    %c0_i32 = arith.constant 0 : i32
    %c0_i32_0 = arith.constant 0 : i32
    %c0_i32_1 = arith.constant 0 : i32
    %c0_i32_2 = arith.constant 0 : i32
    return %c0_i32, %c0_i32_0, %c0_i32_1 : i32, i32, i32
  }
  func.func @transform_13(%arg0: i32) -> (i32, i32, i32) {
    %c0_i32 = arith.constant 0 : i32
    %c0_i32_0 = arith.constant 0 : i32
    %c0_i32_1 = arith.constant 0 : i32
    %c0_i32_2 = arith.constant 0 : i32
    return %c0_i32, %c0_i32_0, %c0_i32_1 : i32, i32, i32
  }
  func.func @transform_14(%arg0: i32) -> (i32, i32, i32) {
    %c0_i32 = arith.constant 0 : i32
    %c0_i32_0 = arith.constant 0 : i32
    %c0_i32_1 = arith.constant 0 : i32
    %c0_i32_2 = arith.constant 0 : i32
    return %c0_i32, %c0_i32_0, %c0_i32_1 : i32, i32, i32
  }
  func.func @transform_15(%arg0: i32) -> (i32, i32, i32) {
    %c0_i32 = arith.constant 0 : i32
    %c0_i32_0 = arith.constant 0 : i32
    %c0_i32_1 = arith.constant 0 : i32
    %c0_i32_2 = arith.constant 0 : i32
    return %c0_i32, %c0_i32_0, %c0_i32_1 : i32, i32, i32
  }
  func.func @transform_16(%arg0: i32) -> (i32, i32, i32) {
    %c0_i32 = arith.constant 0 : i32
    %c0_i32_0 = arith.constant 0 : i32
    %c0_i32_1 = arith.constant 0 : i32
    %c0_i32_2 = arith.constant 0 : i32
    return %c0_i32, %c0_i32_0, %c0_i32_1 : i32, i32, i32
  }
  func.func @transform_17(%arg0: i32) -> (i32, i32) {
    %c0_i32 = arith.constant 0 : i32
    %c0_i32_0 = arith.constant 0 : i32
    %c0_i32_1 = arith.constant 0 : i32
    return %c0_i32, %c0_i32_0 : i32, i32
  }
  func.func @transform_18(%arg0: i32) -> (i32, i32) {
    %c0_i32 = arith.constant 0 : i32
    %c0_i32_0 = arith.constant 0 : i32
    %c0_i32_1 = arith.constant 0 : i32
    return %c0_i32, %c0_i32_0 : i32, i32
  }
  func.func @transform_19(%arg0: i32) -> (i32, i32, i32) {
    %c0_i32 = arith.constant 0 : i32
    %c0_i32_0 = arith.constant 0 : i32
    %c0_i32_1 = arith.constant 0 : i32
    %c0_i32_2 = arith.constant 0 : i32
    return %c0_i32, %c0_i32_0, %c0_i32_1 : i32, i32, i32
  }
  func.func @transform_20(%arg0: i32) -> (i32, i32, i32) {
    %c0_i32 = arith.constant 0 : i32
    %c0_i32_0 = arith.constant 0 : i32
    %c0_i32_1 = arith.constant 0 : i32
    %c0_i32_2 = arith.constant 0 : i32
    return %c0_i32, %c0_i32_0, %c0_i32_1 : i32, i32, i32
  }
  func.func @transform_21(%arg0: i32) -> (i32, i32, i32) {
    %c0_i32 = arith.constant 0 : i32
    %c0_i32_0 = arith.constant 0 : i32
    %c0_i32_1 = arith.constant 0 : i32
    %c0_i32_2 = arith.constant 0 : i32
    return %c0_i32, %c0_i32_0, %c0_i32_1 : i32, i32, i32
  }
  func.func @transform_22(%arg0: i32) -> (i32, i32, i32) {
    %c0_i32 = arith.constant 0 : i32
    %c0_i32_0 = arith.constant 0 : i32
    %c0_i32_1 = arith.constant 0 : i32
    %c0_i32_2 = arith.constant 0 : i32
    return %c0_i32, %c0_i32_0, %c0_i32_1 : i32, i32, i32
  }
  func.func @transform_23(%arg0: i32) -> (i32, i32) {
    %c0_i32 = arith.constant 0 : i32
    %c0_i32_0 = arith.constant 0 : i32
    %c0_i32_1 = arith.constant 0 : i32
    return %c0_i32, %c0_i32_0 : i32, i32
  }
  func.func @transform_24(%arg0: i32) -> (i32, i32) {
    %c0_i32 = arith.constant 0 : i32
    %c0_i32_0 = arith.constant 0 : i32
    %c0_i32_1 = arith.constant 0 : i32
    return %c0_i32, %c0_i32_0 : i32, i32
  }
  func.func @transform_25(%arg0: i32) -> (i32, i32) {
    %c0_i32 = arith.constant 0 : i32
    %c0_i32_0 = arith.constant 0 : i32
    %c0_i32_1 = arith.constant 0 : i32
    return %c0_i32, %c0_i32_0 : i32, i32
  }
}

</mosaic_0001>

<bundles_post_ra>
// kernel: mnist_vector_fsq_forward.1
= control target key start
LH: loop header
LB: loop body
LE: loop exit
PB: predicated region body
PF: predicated region fallthrough
CT: control target
= control target key end

     0   :  { %s9868_s0 = inlined_call_operand.vmem [shape: f32[8,784], index: 0, kind: input, shape index: {}]   ;;  %s9869_s1 = inlined_call_operand.vmem [shape: f32[8,128], index: 1, kind: input, shape index: {}]   ;;  %s9870_s2 = inlined_call_operand.vmem [shape: bf16[784,128], index: 2, kind: input, shape index: {}]   ;;  %s9871_s3 = inlined_call_operand.vmem [shape: f32[1,128], index: 3, kind: input, shape index: {}]   ;;  %s9872_s4 = inlined_call_operand.hbm [shape: bf16[2,128,256], index: 4, kind: input, shape index: {}]   ;;  %s9873_s5 = inlined_call_operand.hbm [shape: bf16[2,128,256], index: 5, kind: input, shape index: {}]   ;;  %s9874_s6 = inlined_call_operand.hbm [shape: bf16[2,256,128], index: 6, kind: input, shape index: {}]   ;;  %s9875_s7 = inlined_call_operand.vmem [shape: f32[2,1,128], index: 7, kind: input, shape index: {}]   ;;  %s9876_s8 = inlined_call_operand.vmem [shape: bf16[128,8], index: 8, kind: input, shape index: {}]   ;;  %s9877_s9 = inlined_call_operand.hbm [shape: bf16[2,128,256], index: 9, kind: input, shape index: {}]   ;;  %s9878_s10 = inlined_call_operand.hbm [shape: bf16[2,256,128], index: 10, kind: input, shape index: {}]   ;;  %s9879_s11 = inlined_call_operand.vmem [shape: f32[2,1,128], index: 11, kind: input, shape index: {}]   ;;  %s9880_s12 = inlined_call_operand.hbm [shape: bf16[4,128,128], index: 12, kind: input, shape index: {}]   ;;  %s9881_s13 = inlined_call_operand.vmem [shape: bf16[3,128,256], index: 13, kind: input, shape index: {}]   ;;  %s9882_s14 = inlined_call_operand.vmem [shape: bf16[3,128,256], index: 14, kind: input, shape index: {}]   ;;  %s9883_s15 = inlined_call_operand.vmem [shape: bf16[3,256,128], index: 15, kind: input, shape index: {}]   ;;  %s9884_s16 = inlined_call_operand.vmem [shape: f32[3,1,128], index: 16, kind: input, shape index: {}]   ;;  %s9885_s17 = inlined_call_operand.vmem [shape: bf16[8,128], index: 17, kind: input, shape index: {}]   ;;  %s9886_s18 = inlined_call_operand.vmem [shape: f32[1,128], index: 18, kind: input, shape index: {}]   ;;  %s9887_s19 = inlined_call_operand.hbm [shape: bf16[2,128,256], index: 19, kind: input, shape index: {}]   ;;  %s9888_s20 = inlined_call_operand.hbm [shape: bf16[2,128,256], index: 20, kind: input, shape index: {}]   ;;  %s9889_s21 = inlined_call_operand.vmem [shape: bf16[2,256,128], index: 21, kind: input, shape index: {}]   ;;  %s9890_s22 = inlined_call_operand.vmem [shape: f32[2,1,128], index: 22, kind: input, shape index: {}]   ;;  %s9891_s23 = inlined_call_operand.vmem [shape: bf16[128,784], index: 23, kind: input, shape index: {}]   ;;  %s9892_s24 = inlined_call_operand.vmem [shape: f32[8,1], index: 24, kind: output, shape index: {0}]   ;;  %s9893_s25 = inlined_call_operand.vmem [shape: f32[8,1], index: 25, kind: output, shape index: {1}]  }
   0x1   :  { %9907 = sst [smem:[#allocation20_spill]] %s9868_s0 }
   0x2   :  { %9908 = sst [smem:[#allocation21_spill]] %s9869_s1 }
   0x3   :  { %9909 = sst [smem:[#allocation22_spill]] %s9870_s2 }
   0x4   :  { %9910 = sst [smem:[#allocation23_spill]] %s9871_s3 }
   0x5   :  { %9911 = sst [smem:[#allocation24_spill]] %s9872_s4 }
   0x6   :  { %9912 = sst [smem:[#allocation25_spill]] %s9873_s5 }
   0x7   :  { %9913 = sst [smem:[#allocation26_spill]] %s9874_s6 }
   0x8   :  { %9914 = sst [smem:[#allocation27_spill]] %s9875_s7 }
   0x9   :  { %9915 = sst [smem:[#allocation28_spill]] %s9876_s8 }
   0xa   :  { %9916 = sst [smem:[#allocation29_spill]] %s9877_s9 }
   0xb   :  { %9917 = sst [smem:[#allocation30_spill]] %s9892_s24 }
   0xc   :  { %9918 = sst [smem:[#allocation31_spill]] %s9893_s25 }
   0xd   :  { %31 = vsyncpa [#allocation3], 0 }
   0xe   :  { %32 = vsyncpa [#allocation5], 0 }
   0xf   :  { %33 = vsyncpa [#allocation8], 0 }
  0x10   :  { %34 = vsyncpa [#allocation11], 0 }
  0x11   :  { %35 = vsyncpa [#allocation14], 0  ;;  %s8325_s29 = smov [#allocation4]   ;;  %s8326_s6 = smov [#allocation7]  }
  0x12   :  { %s61_s2 = sshll.u32 %s8325_s29, 4  ;;  %s89_s30 = sshll.u32 %s8326_s6, 4  ;;  %s62_s2 = int_to_ptr.vmem [resolvable:$true] %s61_s2  ;;  %s8471_s30 = int_to_ptr.vmem [resolvable:$true] %s89_s30 }
  0x13   :  { %s9919_s26 = sld [smem:[#allocation25_spill]] }
  0x19   :  { %s8139_s1 = scalar_lea.hbm %s9919_s26, 4096 }
  0x1a   :  { %p8140_p0 = scmp.ne.s32.totalorder %s9919_s26, %s8139_s1  ;;  %p8143_p1 = scmp.lt.u32.totalorder %s8139_s1, %s9919_s26 }
  0x1c   :  { %p8145_p2 = pnand %p8143_p1, %p8140_p0 }
  0x1e   :  { %8148 = shalt.err (!%p8145_p2)
}
  0x1f   :  { %s8149_s9 = scalar_lea.vmem %s62_s2, 4096  ;;  %p8154_p4 = scmp.lt.s32.totalorder %s62_s2, %s62_s2 }
  0x20   :  { %p8150_p3 = scmp.ne.s32.totalorder %s62_s2, %s8149_s9  ;;  %p8155_p5 = scmp.lt.s32.totalorder %s8149_s9, %s8149_s9 }
  0x22   :  { %p8156_p6 = por %p8155_p5, %p8154_p4 }
  0x24   :  { %p8157_p7 = pnand %p8156_p6, %p8150_p3 }
  0x26   :  { %8160 = shalt.err (!%p8157_p7)
}
  0x27   :  { %s8327_s5 = smov 128   ;;  %s8328_s0 = smov 8  }
  0x28   :  { %67 = dma.hbm_to_vmem [thread:$0]  %s9919_s26, 4096, %s62_s2, [#allocation5], %s8327_s5, %s8327_s5, %s8328_s0  }
  0x29   :  { %s9920_s1 = sld [smem:[#allocation29_spill]] }
  0x2f   :  { %s8161_s8 = scalar_lea.hbm %s9920_s1, 4096 }
  0x30   :  { %p8162_p8 = scmp.ne.s32.totalorder %s9920_s1, %s8161_s8  ;;  %p8165_p9 = scmp.lt.u32.totalorder %s8161_s8, %s9920_s1 }
  0x32   :  { %p8167_p10 = pnand %p8165_p9, %p8162_p8 }
  0x34   :  { %8170 = shalt.err (!%p8167_p10)
}
  0x35   :  { %s8171_s25 = scalar_lea.vmem %s8471_s30, 4096  ;;  %p8176_p12 = scmp.lt.s32.totalorder %s8471_s30, %s8471_s30 }
  0x36   :  { %p8172_p11 = scmp.ne.s32.totalorder %s8471_s30, %s8171_s25  ;;  %p8177_p13 = scmp.lt.s32.totalorder %s8171_s25, %s8171_s25 }
  0x38   :  { %p8178_p0 = por %p8177_p13, %p8176_p12 }
  0x3a   :  { %p8179_p1 = pnand %p8178_p0, %p8172_p11 }
  0x3c   :  { %8182 = shalt.err (!%p8179_p1)
}
  0x3d   :  { %95 = dma.hbm_to_vmem [thread:$0]  %s9920_s1, 4096, %s8471_s30, [#allocation8], %s8327_s5, %s8327_s5, %s8328_s0  }
  0x3e   :  { %s8329_s29 = smov [#allocation10]   ;;  %s8330_s7 = smov [#allocation2]  }
  0x3f   :  { %s115_s6 = sshll.u32 %s8329_s29, 4  ;;  %s49_s3 = sshll.u32 %s8330_s7, 4  ;;  %s116_s6 = int_to_ptr.vmem [resolvable:$true] %s115_s6  ;;  %s8508_s3 = int_to_ptr.vmem [resolvable:$true] %s49_s3 }
  0x40   :  { %s8183_s27 = scalar_lea.hbm %s9880_s12, 4096 }
  0x41   :  { %p8184_p2 = scmp.ne.s32.totalorder %s9880_s12, %s8183_s27  ;;  %p8187_p3 = scmp.lt.u32.totalorder %s8183_s27, %s9880_s12 }
  0x43   :  { %p8189_p4 = pnand %p8187_p3, %p8184_p2 }
  0x45   :  { %8192 = shalt.err (!%p8189_p4)
}
  0x46   :  { %s8193_s30 = scalar_lea.vmem %s116_s6, 4096  ;;  %p8198_p6 = scmp.lt.s32.totalorder %s116_s6, %s116_s6 }
  0x47   :  { %p8194_p5 = scmp.ne.s32.totalorder %s116_s6, %s8193_s30  ;;  %p8199_p7 = scmp.lt.s32.totalorder %s8193_s30, %s8193_s30 }
  0x49   :  { %p8200_p8 = por %p8199_p7, %p8198_p6 }
  0x4b   :  { %p8201_p9 = pnand %p8200_p8, %p8194_p5 }
  0x4d   :  { %8204 = shalt.err (!%p8201_p9)
}
  0x4e   :  { %s9903_s1 = smov 64   ;;  %s9905_s2 = smov 4  }
  0x4f   :  { %121 = dma.hbm_to_vmem [thread:$0]  %s9880_s12, 4096, %s116_s6, [#allocation11], %s9903_s1, %s9903_s1, %s9905_s2  }
  0x50   :  { %s9921_s8 = sld [smem:[#allocation24_spill]] }
  0x56   :  { %s8205_s25 = scalar_lea.hbm %s9921_s8, 4096 }
  0x57   :  { %p8206_p10 = scmp.ne.s32.totalorder %s9921_s8, %s8205_s25  ;;  %p8209_p11 = scmp.lt.u32.totalorder %s8205_s25, %s9921_s8 }
  0x59   :  { %p8211_p12 = pnand %p8209_p11, %p8206_p10 }
  0x5b   :  { %8214 = shalt.err (!%p8211_p12)
}
  0x5c   :  { %s8215_s30 = scalar_lea.vmem %s8508_s3, 4096  ;;  %p8220_p0 = scmp.lt.s32.totalorder %s8508_s3, %s8508_s3 }
  0x5d   :  { %p8216_p13 = scmp.ne.s32.totalorder %s8508_s3, %s8215_s30  ;;  %p8221_p1 = scmp.lt.s32.totalorder %s8215_s30, %s8215_s30 }
  0x5f   :  { %p8222_p2 = por %p8221_p1, %p8220_p0 }
  0x61   :  { %p8223_p3 = pnand %p8222_p2, %p8216_p13 }
  0x63   :  { %8226 = shalt.err (!%p8223_p3)
}
  0x64   :  { %55 = dma.hbm_to_vmem [thread:$0]  %s9921_s8, 4096, %s8508_s3, [#allocation3], %s8327_s5, %s8327_s5, %s8328_s0  }
  0x65   :  { %s8333_s26 = smov [#allocation6]   ;;  %s8334_s24 = smov [#allocation9]  }
  0x66   :  { %s73_s29 = sshll.u32 %s8333_s26, 4  ;;  %s101_s7 = sshll.u32 %s8334_s24, 4  ;;  %s74_s29 = int_to_ptr.vmem [resolvable:$true] %s73_s29  ;;  %s8545_s7 = int_to_ptr.vmem [resolvable:$true] %s101_s7 }
  0x67   :  { %s9922_s4 = sld [smem:[#allocation26_spill]] }
  0x6d   :  { %s8227_s28 = scalar_lea.hbm %s9922_s4, 4096 }
  0x6e   :  { %p8228_p4 = scmp.ne.s32.totalorder %s9922_s4, %s8227_s28  ;;  %p8231_p5 = scmp.lt.u32.totalorder %s8227_s28, %s9922_s4 }
  0x70   :  { %p8233_p6 = pnand %p8231_p5, %p8228_p4 }
  0x72   :  { %8236 = shalt.err (!%p8233_p6)
}
  0x73   :  { %s8237_s3 = scalar_lea.vmem %s74_s29, 4096  ;;  %p8242_p8 = scmp.lt.s32.totalorder %s74_s29, %s74_s29 }
  0x74   :  { %p8238_p7 = scmp.ne.s32.totalorder %s74_s29, %s8237_s3  ;;  %p8243_p9 = scmp.lt.s32.totalorder %s8237_s3, %s8237_s3 }
  0x76   :  { %p8244_p10 = por %p8243_p9, %p8242_p8 }
  0x78   :  { %p8245_p11 = pnand %p8244_p10, %p8238_p7 }
  0x7a   :  { %8248 = shalt.err (!%p8245_p11)
}
  0x7b   :  { %s9923_s8 = smov 4   ;;  %s9924_s12 = smov 64  }
  0x7c   :  { %79 = dma.hbm_to_vmem [thread:$0]  %s9922_s4, 4096, %s74_s29, [#allocation5], %s9924_s12, %s9924_s12, %s9923_s8  }
  0x7d   :  { %s8249_s1 = scalar_lea.hbm %s9878_s10, 4096 }
  0x7e   :  { %p8250_p12 = scmp.ne.s32.totalorder %s9878_s10, %s8249_s1  ;;  %p8253_p13 = scmp.lt.u32.totalorder %s8249_s1, %s9878_s10 }
  0x80   :  { %p8255_p0 = pnand %p8253_p13, %p8250_p12 }
  0x82   :  { %8258 = shalt.err (!%p8255_p0)
}
  0x83   :  { %s8259_s30 = scalar_lea.vmem %s8545_s7, 4096  ;;  %p8264_p2 = scmp.lt.s32.totalorder %s8545_s7, %s8545_s7 }
  0x84   :  { %p8260_p1 = scmp.ne.s32.totalorder %s8545_s7, %s8259_s30  ;;  %p8265_p3 = scmp.lt.s32.totalorder %s8259_s30, %s8259_s30 }
  0x86   :  { %p8266_p4 = por %p8265_p3, %p8264_p2 }
  0x88   :  { %p8267_p5 = pnand %p8266_p4, %p8260_p1 }
  0x8a   :  { %8270 = shalt.err (!%p8267_p5)
}
  0x8b   :  { %107 = dma.hbm_to_vmem [thread:$0]  %s9878_s10, 4096, %s8545_s7, [#allocation8], %s9924_s12, %s9924_s12, %s9923_s8  }
  0x8c   :  { %s8335_s3 = smov [#allocation12]   ;;  %s8336_s26 = smov [#allocation13]  }
  0x8d   :  { %s139_s6 = sshll.u32 %s8335_s3, 4  ;;  %s151_s24 = sshll.u32 %s8336_s26, 4  ;;  %s140_s6 = int_to_ptr.vmem [resolvable:$true] %s139_s6  ;;  %s8582_s24 = int_to_ptr.vmem [resolvable:$true] %s151_s24 }
  0x8e   :  { %s8271_s2 = scalar_lea.hbm %s9887_s19, 4096 }
  0x8f   :  { %p8272_p6 = scmp.ne.s32.totalorder %s9887_s19, %s8271_s2  ;;  %p8275_p7 = scmp.lt.u32.totalorder %s8271_s2, %s9887_s19 }
  0x91   :  { %p8277_p8 = pnand %p8275_p7, %p8272_p6 }
  0x93   :  { %8280 = shalt.err (!%p8277_p8)
}
  0x94   :  { %s8281_s10 = scalar_lea.vmem %s140_s6, 4096  ;;  %p8286_p10 = scmp.lt.s32.totalorder %s140_s6, %s140_s6 }
  0x95   :  { %p8282_p9 = scmp.ne.s32.totalorder %s140_s6, %s8281_s10  ;;  %p8287_p11 = scmp.lt.s32.totalorder %s8281_s10, %s8281_s10 }
  0x97   :  { %p8288_p12 = por %p8287_p11, %p8286_p10 }
  0x99   :  { %p8289_p13 = pnand %p8288_p12, %p8282_p9 }
  0x9b   :  { %8292 = shalt.err (!%p8289_p13)
}
  0x9c   :  { %145 = dma.hbm_to_vmem [thread:$0]  %s9887_s19, 4096, %s140_s6, [#allocation11], %s8327_s5, %s8327_s5, %s8328_s0  }
  0x9d   :  { %s8293_s4 = scalar_lea.hbm %s9888_s20, 4096 }
  0x9e   :  { %p8294_p0 = scmp.ne.s32.totalorder %s9888_s20, %s8293_s4  ;;  %p8297_p1 = scmp.lt.u32.totalorder %s8293_s4, %s9888_s20 }
  0xa0   :  { %p8299_p2 = pnand %p8297_p1, %p8294_p0 }
  0xa2   :  { %8302 = shalt.err (!%p8299_p2)
}
  0xa3   :  { %s8303_s2 = scalar_lea.vmem %s8582_s24, 4096  ;;  %p8308_p4 = scmp.lt.s32.totalorder %s8582_s24, %s8582_s24 }
  0xa4   :  { %p8304_p3 = scmp.ne.s32.totalorder %s8582_s24, %s8303_s2  ;;  %p8309_p5 = scmp.lt.s32.totalorder %s8303_s2, %s8303_s2 }
  0xa6   :  { %p8310_p6 = por %p8309_p5, %p8308_p4 }
  0xa8   :  { %p8311_p7 = pnand %p8310_p6, %p8304_p3 }
  0xaa   :  { %8314 = shalt.err (!%p8311_p7)
}
  0xab   :  { %157 = dma.hbm_to_vmem [thread:$0]  %s9888_s20, 4096, %s8582_s24, [#allocation14], %s8327_s5, %s8327_s5, %s8328_s0  }
  0xac   :  { %8315 = dma.done.wait [#allocation3], 4096  }
  0xad   :  { %8316 = vsyncadd [#allocation3], 4294963200 }
  0xae   :  { %8317 = dma.done.wait [#allocation5], 8192  }
  0xaf   :  { %8318 = vsyncadd [#allocation5], 4294959104 }
  0xb0   :  { %8319 = dma.done.wait [#allocation8], 8192  }
  0xb1   :  { %8320 = vsyncadd [#allocation8], 4294959104 }
  0xb2   :  { %8321 = dma.done.wait [#allocation11], 8192  }
  0xb3   :  { %8322 = vsyncadd [#allocation11], 4294959104 }
  0xb4   :  { %8323 = dma.done.wait [#allocation14], 4096  }
  0xb5   :  { %8324 = vsyncadd [#allocation14], 4294963200  ;;  %s9925_s9 = sld [smem:[#allocation22_spill]]  ;;  %s9926_s20 = sld [smem:[#allocation20_spill]]  ;;  %v8337_v44 = vmov 0.0   ;;  %vm8338_vm0 = vmmov 0  }
  0xb6   :  { %vm612_vm1 = vcmask 130048   ;;  %s9927_s2 = sld [smem:[#allocation21_spill]]  ;;  %s9928_s6 = sld [smem:[#allocation23_spill]]  ;;  %vm1858_vm3 = vcmask 64512   ;;  %vm4539_vm15 = vcmask 1043456  }
  0xb7   :  { %s9929_s30 = sld [smem:[#allocation27_spill]]  ;;  %s9930_s0 = sld [smem:[#allocation28_spill]] }
  0xbb   :  { %v7336_v0 = vld [vmem:[%s9925_s9 + $0x40] sm:$0xff]   ;;  %v7340_v4 = vld [vmem:[%s9925_s9 + $0x48] sm:$0xff]   ;;  %v7344_v8 = vld [vmem:[%s9925_s9 + $0x50] sm:$0xff]  }
  0xbc   :  { %v7337_v1 = vld [vmem:[%s9925_s9] sm:$0xff]   ;;  %6857 = vmatprep.subr.bf16.mxu0 %v7336_v0  ;;  %v7341_v5 = vld [vmem:[%s9925_s9 + $0x8] sm:$0xff]   ;;  %v7345_v9 = vld [vmem:[%s9925_s9 + $0x10] sm:$0xff]  }
  0xbd   :  { %v7338_v2 = vld [vmem:[%s9925_s9 + $0xc0] sm:$0xff]   ;;  %6858 = vmatpush3.bf16.msra.mxu0 %v7337_v1  ;;  %v7342_v6 = vld [vmem:[%s9925_s9 + $0xc8] sm:$0xff]   ;;  %v7346_v10 = vld [vmem:[%s9925_s9 + $0xd0] sm:$0xff]  }
  0xbe   :  { %v7339_v3 = vld [vmem:[%s9925_s9 + $0x80] sm:$0xff]   ;;  %6879 = vmatprep.subr.bf16.mxu1 %v7338_v2  ;;  %6859 = vmatprep.subr.bf16.mxu0 %v7340_v4  ;;  %v7343_v7 = vld [vmem:[%s9925_s9 + $0x88] sm:$0xff]   ;;  %v7347_v11 = vld [vmem:[%s9925_s9 + $0x90] sm:$0xff]  }
  0xbf   :  { %6880 = vmatpush3.bf16.msra.mxu1 %v7339_v3  ;;  %v7348_v12 = vld [vmem:[%s9925_s9 + $0x58] sm:$0xff]   ;;  %v7352_v16 = vld [vmem:[%s9925_s9 + $0x60] sm:$0xff]   ;;  %v7356_v20 = vld [vmem:[%s9925_s9 + $0x68] sm:$0xff]  }
  0xc0   :  { %6881 = vmatprep.subr.bf16.mxu1 %v7342_v6  ;;  %v7349_v13 = vld [vmem:[%s9925_s9 + $0x18] sm:$0xff]   ;;  %v7353_v17 = vld [vmem:[%s9925_s9 + $0x20] sm:$0xff]   ;;  %v7357_v21 = vld [vmem:[%s9925_s9 + $0x28] sm:$0xff]  }
  0xc1   :  { %6860 = vmatpush3.bf16.msra.mxu0 %v7341_v5  ;;  %v7350_v14 = vld [vmem:[%s9925_s9 + $0xd8] sm:$0xff]   ;;  %v7354_v18 = vld [vmem:[%s9925_s9 + $0xe0] sm:$0xff]   ;;  %v7358_v22 = vld [vmem:[%s9925_s9 + $0xe8] sm:$0xff]  }
  0xc2   :  { %6861 = vmatprep.subr.bf16.mxu0 %v7344_v8  ;;  %v7351_v15 = vld [vmem:[%s9925_s9 + $0x98] sm:$0xff]   ;;  %v7355_v19 = vld [vmem:[%s9925_s9 + $0xa0] sm:$0xff]   ;;  %v7359_v23 = vld [vmem:[%s9925_s9 + $0xa8] sm:$0xff]  }
  0xc3   :  { %6882 = vmatpush3.bf16.msra.mxu1 %v7343_v7  ;;  %v7360_v24 = vld [vmem:[%s9925_s9 + $0x70] sm:$0xff]   ;;  %v7364_v28 = vld [vmem:[%s9925_s9 + $0x78] sm:$0xff]   ;;  %v190_v31 = vld [vmem:[%s9926_s20 + $0x8] sm:$0xff] }
  0xc4   :  { %6883 = vmatprep.subr.bf16.mxu1 %v7346_v10  ;;  %v7361_v25 = vld [vmem:[%s9925_s9 + $0x30] sm:$0xff]   ;;  %v7365_v29 = vld [vmem:[%s9925_s9 + $0x38] sm:$0xff]   ;;  %v207_v32 = vpack.c.bf16 %v190_v31, %v190_v31  ;;  %v189_v34 = vld [vmem:[%s9926_s20] sm:$0xff] }
  0xc5   :  { %6862 = vmatpush3.bf16.msra.mxu0 %v7345_v9  ;;  %v7362_v26 = vld [vmem:[%s9925_s9 + $0xf0] sm:$0xff]   ;;  %v7366_v30 = vld [vmem:[%s9925_s9 + $0xf8] sm:$0xff]   ;;  %v206_v35 = vpack.c.bf16 %v189_v34, %v189_v34  ;;  %v7368_v36 = vld [vmem:[%s9925_s9 + $0x140] sm:$0xff]  }
  0xc6   :  { %6863 = vmatprep.subr.bf16.mxu0 %v7348_v12  ;;  %v7363_v27 = vld [vmem:[%s9925_s9 + $0xb0] sm:$0xff]   ;;  %v7367_v33 = vld [vmem:[%s9925_s9 + $0xb8] sm:$0xff]   ;;  %648 = vmatprep.mubr.bf16.mxu0 %v207_v32  ;;  %v7369_v39 = vld [vmem:[%s9925_s9 + $0x100] sm:$0xff]  }
  0xc7   :  { %6884 = vmatpush3.bf16.msra.mxu1 %v7347_v11  ;;  %v192_v37 = vld [vmem:[%s9926_s20 + $0x18] sm:$0xff]  ;;  %v191_v40 = vld [vmem:[%s9926_s20 + $0x10] sm:$0xff]  ;;  %v7370_v42 = vld [vmem:[%s9925_s9 + $0x148] sm:$0xff]  }
  0xc8   :  { %6885 = vmatprep.subr.bf16.mxu1 %v7350_v14  ;;  %v209_v38 = vpack.c.bf16 %v192_v37, %v192_v37  ;;  %v208_v41 = vpack.c.bf16 %v191_v40, %v191_v40  ;;  %v7371_v43 = vld [vmem:[%s9925_s9 + $0x108] sm:$0xff]   ;;  %v7372_v45 = vld [vmem:[%s9925_s9 + $0x150] sm:$0xff]   ;;  %v7374_v47 = vld [vmem:[%s9925_s9 + $0x158] sm:$0xff]  }
  0xc9   :  { %6864 = vmatpush3.bf16.msra.mxu0 %v7349_v13  ;;  %v7373_v46 = vld [vmem:[%s9925_s9 + $0x110] sm:$0xff]   ;;  %v7375_v48 = vld [vmem:[%s9925_s9 + $0x118] sm:$0xff]   ;;  %v7376_v49 = vld [vmem:[%s9925_s9 + $0x160] sm:$0xff]  }
  0xca   :  { %6865 = vmatprep.subr.bf16.mxu0 %v7352_v16  ;;  %688 = vmatprep.mubr.bf16.mxu1 %v209_v38  ;;  %v7377_v50 = vld [vmem:[%s9925_s9 + $0x120] sm:$0xff]   ;;  %v7378_v51 = vld [vmem:[%s9925_s9 + $0x168] sm:$0xff]   ;;  %v7380_v55 = vld [vmem:[%s9925_s9 + $0x170] sm:$0xff]  }
  0xcb   :  { %6886 = vmatpush3.bf16.msra.mxu1 %v7351_v15  ;;  %v7379_v52 = vld [vmem:[%s9925_s9 + $0x128] sm:$0xff]   ;;  %v7384_v53 = vld [vmem:[%s9925_s9 + $0x180] sm:$0xff]   ;;  %v195_v57 = vld [vmem:[%s9926_s20 + $0x30] sm:$0xff] }
  0xcc   :  { %6887 = vmatprep.subr.bf16.mxu1 %v7354_v18  ;;  %v194_v54 = vld [vmem:[%s9926_s20 + $0x28] sm:$0xff]  ;;  %v212_v58 = vpack.c.bf16 %v195_v57, %v195_v57  ;;  %v7381_v59 = vld [vmem:[%s9925_s9 + $0x130] sm:$0xff]   ;;  %v7382_v60 = vld [vmem:[%s9925_s9 + $0x178] sm:$0xff]  }
  0xcd   :  { %6866 = vmatpush3.bf16.msra.mxu0 %v7353_v17  ;;  %v211_v56 = vpack.c.bf16 %v194_v54, %v194_v54  ;;  %v7383_v61 = vld [vmem:[%s9925_s9 + $0x138] sm:$0xff]   ;;  %v193_v62 = vld [vmem:[%s9926_s20 + $0x20] sm:$0xff] }
  0xce   :  { %6867 = vmatprep.subr.bf16.mxu0 %v7356_v20  ;;  %v210_v63 = vpack.c.bf16 %v193_v62, %v193_v62  ;;  %v8794_v0 = vld [vmem:[%s9927_s2] sm:$0xff]  ;;  %v7390_v4 = vld [vmem:[#allocation4 + $0x14] ss:$8 sps:$4 sm:$0xff]   ;;  %v7388_v7 = vld [vmem:[#allocation4 + $0x10] ss:$8 sps:$4 sm:$0xff]  }
  0xcf   :  { %6888 = vmatpush3.bf16.msra.mxu1 %v7355_v19  ;;  %v197_v1 = vmul.f32 %v8794_v0, %v8794_v0  ;;  %v7385_v2 = vld [vmem:[#allocation4] ss:$8 sps:$4 sm:$0xff]   ;;  %v7387_v3 = vld [vmem:[#allocation4 + $0x4] ss:$8 sps:$4 sm:$0xff]   ;;  %v7397_v9 = vld [vmem:[#allocation2 + $0x10] ss:$8 sps:$4 sm:$0xff]  }
  0xd0   :  { %6889 = vmatprep.subr.bf16.mxu1 %v7358_v22  ;;  %v7391_v5 = vld [vmem:[#allocation2] ss:$8 sps:$4 sm:$0xff]   ;;  %v7393_v6 = vld [vmem:[#allocation2 + $0x4] ss:$8 sps:$4 sm:$0xff]   ;;  %v7399_v10 = vld [vmem:[#allocation2 + $0x14] ss:$8 sps:$4 sm:$0xff]  }
  0xd1   :  { %6868 = vmatpush3.bf16.msra.mxu0 %v7357_v21  ;;  %198 = vadd.xlane.f32.xlu0 %v197_v1  ;;  %v7396_v8 = vld [vmem:[#allocation4 + $0x24] ss:$8 sps:$4 sm:$0xff]   ;;  %v7394_v11 = vld [vmem:[#allocation4 + $0x20] ss:$8 sps:$4 sm:$0xff]   ;;  %v7400_v12 = vld [vmem:[#allocation4 + $0x30] ss:$8 sps:$4 sm:$0xff]  }
  0xd2   :  { %6869 = vmatprep.subr.bf16.mxu0 %v7360_v24  ;;  %v7402_v13 = vld [vmem:[#allocation4 + $0x34] ss:$8 sps:$4 sm:$0xff]   ;;  %v7403_v14 = vld [vmem:[#allocation2 + $0x20] ss:$8 sps:$4 sm:$0xff]   ;;  %v7405_v15 = vld [vmem:[#allocation2 + $0x24] ss:$8 sps:$4 sm:$0xff]  }
  0xd3   :  { %6890 = vmatpush3.bf16.msra.mxu1 %v7359_v23  ;;  %v7406_v16 = vld [vmem:[#allocation4 + $0x40] ss:$8 sps:$4 sm:$0xff]   ;;  %v7408_v17 = vld [vmem:[#allocation4 + $0x44] ss:$8 sps:$4 sm:$0xff]   ;;  %v7409_v18 = vld [vmem:[#allocation2 + $0x30] ss:$8 sps:$4 sm:$0xff]  }
  0xd4   :  { %6891 = vmatprep.subr.bf16.mxu1 %v7362_v26  ;;  %v7411_v19 = vld [vmem:[#allocation2 + $0x34] ss:$8 sps:$4 sm:$0xff]   ;;  %v6101_v20 = vld [vmem:[%s9928_s6] ss:$0 sm:$0xff] }
  0xd5   :  { %6870 = vmatpush3.bf16.msra.mxu0 %v7361_v25  ;;  %v7418_v54 = vld [vmem:[#allocation4 + $0x60] ss:$8 sps:$4 sm:$0xff]   ;;  %v7426_v57 = vld [vmem:[#allocation4 + $0x74] ss:$8 sps:$4 sm:$0xff]  }
  0xd6   :  { %6871 = vmatprep.subr.bf16.mxu0 %v7364_v28  ;;  %v7427_v62 = vld [vmem:[#allocation2 + $0x60] ss:$8 sps:$4 sm:$0xff]   ;;  %v7432_v1 = vld [vmem:[#allocation2 + $0x74] ss:$8 sps:$4 sm:$0xff]  }
  0xd7   :  { %6892 = vmatpush3.bf16.msra.mxu1 %v7363_v27 }
  0xd8   :  { %6893 = vmatprep.subr.bf16.mxu1 %v7366_v30 }
  0xd9   :  { %6872 = vmatpush3.bf16.msra.mxu0 %v7365_v29 }
  0xda   :  { %6901 = vmatprep.subr.bf16.mxu0 %v7368_v36 }
  0xdb   :  { %6894 = vmatpush3.bf16.msra.mxu1 %v7367_v33 }
  0xdc   :  { %649 = vmatmul.mubr.bf16.vlgmr.msra.gmra.mrb[0].mxu0 %v206_v35  ;;  %7179 = vmatprep.subr.bf16.mxu1 %v8337_v44 }
  0xdd   :  { %6902 = vmatpush3.bf16.msra.mxu0 %v7369_v39  ;;  %728 = vmatprep.mubr.bf16.mxu0 %v211_v56  ;;  %v7421_v56 = vld [vmem:[#allocation2 + $0x50] ss:$8 sps:$4 sm:$0xff]  }
  0xde   :  { %689 = vmatmul.mubr.bf16.vlgmr.msra.gmra.mrb[0].mxu1 %v208_v41  ;;  %6903 = vmatprep.subr.bf16.mxu0 %v7370_v42 }
  0xdf   :  { %7181 = vmatprep.mubr.msk.bf16.mxu1 %vm8338_vm0, %v8337_v44  ;;  %7180 = vmatpush3.bf16.msra.mxu1 %v7384_v53  ;;  %v7420_v53 = vld [vmem:[#allocation4 + $0x64] ss:$8 sps:$4 sm:$0xff]  }
  0xe0   :  { %929 = vmatprep.subr.bf16.mxu1 %v7393_v6 }
  0xe1   :  { %6904 = vmatpush3.bf16.msra.mxu0 %v7371_v43 }
  0xe2   :  { %6905 = vmatprep.subr.bf16.mxu0 %v7372_v45 }
  0xe5   :  { %6906 = vmatpush3.bf16.msra.mxu0 %v7373_v46 }
  0xe6   :  { %6907 = vmatprep.subr.bf16.mxu0 %v7374_v47  ;;  %7182 = vmatmul.mubr.msk.bf16.vlgmr.msra.gmra.mrb[4].mxu1 %vm612_vm1, %v212_v58  ;;  %v7424_v58 = vld [vmem:[#allocation4 + $0x70] ss:$8 sps:$4 sm:$0xff]  }
  0xe7   :  { %930 = vmatpush1.bf16.msra.mxu1 %v7391_v5 }
  0xe8   :  { %931 = vmatprep.subr.bf16.mxu1 %v7399_v10 }
  0xe9   :  { %6908 = vmatpush3.bf16.msra.mxu0 %v7375_v48 }
  0xea   :  { %6909 = vmatprep.subr.bf16.mxu0 %v7376_v49  ;;  %v7414_v49 = vld [vmem:[#allocation4 + $0x54] ss:$8 sps:$4 sm:$0xff]  }
  0xeb   :  { %932 = vmatpush1.bf16.msra.mxu1 %v7397_v9 }
  0xec   :  { %933 = vmatprep.subr.bf16.mxu1 %v7405_v15  ;;  %v7435_v15 = vld [vmem:[#allocation6 + $0x48] sm:$0xff]  }
  0xed   :  { %6910 = vmatpush3.bf16.msra.mxu0 %v7377_v50  ;;  %v7412_v50 = vld [vmem:[#allocation4 + $0x50] ss:$8 sps:$4 sm:$0xff]  }
  0xee   :  { %6911 = vmatprep.subr.bf16.mxu0 %v7378_v51  ;;  %v7417_v51 = vld [vmem:[#allocation2 + $0x44] ss:$8 sps:$4 sm:$0xff]  }
  0xef   :  { %934 = vmatpush1.bf16.msra.mxu1 %v7403_v14  ;;  %v7434_v14 = vld [vmem:[#allocation6] sm:$0xff]  }
  0xf0   :  { %935 = vmatprep.subr.bf16.mxu1 %v7411_v19  ;;  %v7439_v19 = vld [vmem:[#allocation6 + $0x58] sm:$0xff]  }
  0xf1   :  { %6912 = vmatpush3.bf16.msra.mxu0 %v7379_v52  ;;  %v7415_v52 = vld [vmem:[#allocation2 + $0x40] ss:$8 sps:$4 sm:$0xff]  }
  0xf2   :  { %6913 = vmatprep.subr.bf16.mxu0 %v7380_v55  ;;  %v7423_v55 = vld [vmem:[#allocation2 + $0x54] ss:$8 sps:$4 sm:$0xff]  }
  0xf3   :  { %936 = vmatpush1.bf16.msra.mxu1 %v7409_v18  ;;  %v7438_v18 = vld [vmem:[#allocation6 + $0x10] sm:$0xff]  }
  0xf4   :  { %937 = vmatprep.subr.bf16.mxu1 %v7417_v51  ;;  %v7449_v51 = vld [vmem:[#allocation4 + $0x80] ss:$8 sps:$4 sm:$0xff]  }
  0xf5   :  { %6914 = vmatpush3.bf16.msra.mxu0 %v7381_v59  ;;  %v7429_v59 = vld [vmem:[#allocation2 + $0x64] ss:$8 sps:$4 sm:$0xff]  }
  0xf6   :  { %6915 = vmatprep.subr.bf16.mxu0 %v7382_v60  ;;  %v8339_v60 = vmov 0  }
  0xf7   :  { %938 = vmatpush1.bf16.msra.mxu1 %v7415_v52  ;;  %961 = vmatprep.mubr.bf16.mxu1 %v8339_v60 }
  0xf8   :  { %939 = vmatprep.subr.bf16.mxu1 %v7423_v55  ;;  %v7457_v55 = vld [vmem:[#allocation4 + $0xa4] ss:$8 sps:$4 sm:$0xff]  }
  0xf9   :  { %6916 = vmatpush3.bf16.msra.mxu0 %v7383_v61 }
  0xfa   :  { %1050 = vmatprep.subr.bf16.mxu0 %v7387_v3  ;;  %v7430_v3 = vld [vmem:[#allocation2 + $0x70] ss:$8 sps:$4 sm:$0xff]  }
  0xfb   :  { %940 = vmatpush1.bf16.msra.mxu1 %v7421_v56  ;;  %v7455_v56 = vld [vmem:[#allocation4 + $0xa0] ss:$8 sps:$4 sm:$0xff]  }
  0xfc   :  { %729 = vmatmul.mubr.bf16.vlgmr.msra.gmra.mrb[4].mxu0 %v210_v63  ;;  %941 = vmatprep.subr.bf16.mxu1 %v7429_v59  ;;  %v7463_v59 = vld [vmem:[#allocation4 + $0xc4] ss:$8 sps:$4 sm:$0xff]  }
  0xfd   :  { %1051 = vmatpush1.bf16.msra.mxu0 %v7385_v2  ;;  %1082 = vmatprep.mubr.bf16.mxu0 %v8339_v60 }
  0xfe   :  { %1052 = vmatprep.subr.bf16.mxu0 %v7390_v4 }
  0xff   :  { %942 = vmatpush1.bf16.msra.mxu1 %v7427_v62  ;;  %v7466_v62 = vld [vmem:[#allocation4 + $0xd4] ss:$8 sps:$4 sm:$0xff]  }
 0x100   :  { %943 = vmatprep.subr.bf16.mxu1 %v7432_v1  ;;  %v7469_v1 = vld [vmem:[#allocation4 + $0xe4] ss:$8 sps:$4 sm:$0xff]  }
 0x101   :  { %1053 = vmatpush1.bf16.msra.mxu0 %v7388_v7 }
 0x102   :  { %1054 = vmatprep.subr.bf16.mxu0 %v7396_v8 }
 0x103   :  { %944 = vmatpush1.bf16.msra.mxu1 %v7430_v3  ;;  %v7467_v3 = vld [vmem:[#allocation4 + $0xe0] ss:$8 sps:$4 sm:$0xff]  }
 0x105   :  { %1055 = vmatpush1.bf16.msra.mxu0 %v7394_v11 }
 0x106   :  { %1056 = vmatprep.subr.bf16.mxu0 %v7402_v13  ;;  %v7433_v13 = vld [vmem:[#allocation6 + $0x40] sm:$0xff]  }
 0x107   :  { %6925 = vmatprep.subr.bf16.mxu1 %v7433_v13 }
 0x109   :  { %1057 = vmatpush1.bf16.msra.mxu0 %v7400_v12 }
 0x10a   :  { %1058 = vmatprep.subr.bf16.mxu0 %v7408_v17  ;;  %v7437_v17 = vld [vmem:[#allocation6 + $0x50] sm:$0xff]  }
 0x10d   :  { %1059 = vmatpush1.bf16.msra.mxu0 %v7406_v16  ;;  %v7436_v16 = vld [vmem:[#allocation6 + $0x8] sm:$0xff]  }
 0x10e   :  { %1060 = vmatprep.subr.bf16.mxu0 %v7414_v49 }
 0x111   :  { %1061 = vmatpush1.bf16.msra.mxu0 %v7412_v50 }
 0x112   :  { %1062 = vmatprep.subr.bf16.mxu0 %v7420_v53  ;;  %v7454_v53 = vld [vmem:[#allocation4 + $0x94] ss:$8 sps:$4 sm:$0xff]  }
 0x115   :  { %1063 = vmatpush1.bf16.msra.mxu0 %v7418_v54  ;;  %v7452_v54 = vld [vmem:[#allocation4 + $0x90] ss:$8 sps:$4 sm:$0xff]  }
 0x116   :  { %1064 = vmatprep.subr.bf16.mxu0 %v7426_v57  ;;  %v7460_v57 = vld [vmem:[#allocation4 + $0xb4] ss:$8 sps:$4 sm:$0xff]  }
 0x119   :  { %1065 = vmatpush1.bf16.msra.mxu0 %v7424_v58  ;;  %v7458_v58 = vld [vmem:[#allocation4 + $0xb0] ss:$8 sps:$4 sm:$0xff]  }
 0x15e   :  { %v199_v46 = vpop.xlane.xlu0 %198 }
 0x15f   :  { %v201_v47 = vmul.f32 0.0078125, %v199_v46 }
 0x161   :  { %v202_v48 = vadd.f32 1e-06, %v201_v47 }
 0x163   :  { %8033 = vrsqrt.f32 %v202_v48 }
 0x16d   :  { %v8034_v61 = vpop.eup %8033 }
 0x16e   :  { %v204_v63 = vmul.f32 %v8034_v61, %v8794_v0  ;;  %v7461_v61 = vld [vmem:[#allocation4 + $0xc0] ss:$8 sps:$4 sm:$0xff]  }
 0x170   :  { %v8808_v2 = vpack.c.bf16 %v204_v63, %v204_v63  ;;  %v7464_v63 = vld [vmem:[#allocation4 + $0xd0] ss:$8 sps:$4 sm:$0xff]  }
 0x172   :  { %1083 = vmatmul.mubr.bf16.vlgmr.msra.gmra.mrb[8].mxu0 %v8808_v2 }
 0x173   :  { %1442 = vmatprep.mubr.bf16.mxu0 %v8339_v60 }
 0x1af   :  { %v6873_v21 = vpop.f32.mrb[0].mxu0 }
 0x1b0   :  { %v6874_v22 = vpop.f32.mrb[1].mxu0 }
 0x1b1   :  { %v6875_v23 = vadd.f32 %v6874_v22, %v6873_v21  ;;  %v6876_v24 = vpop.f32.mrb[2].mxu0  ;;  %v6895_v25 = vpop.f32.mrb[0].mxu1  ;;  %v7441_v21 = vld [vmem:[#allocation6 + $0x60] sm:$0xff]  }
 0x1b2   :  { %v6877_v26 = vpop.f32.mrb[3].mxu0  ;;  %v6896_v28 = vpop.f32.mrb[1].mxu1  ;;  %v7442_v22 = vld [vmem:[#allocation6 + $0x20] sm:$0xff]   ;;  %v7444_v24 = vld [vmem:[#allocation6 + $0x28] sm:$0xff]  }
 0x1b3   :  { %v651_v27 = vadd.f32 %v6875_v23, %v6101_v20  ;;  %v6897_v29 = vadd.f32 %v6896_v28, %v6895_v25  ;;  %v6898_v30 = vpop.f32.mrb[2].mxu1  ;;  %v7440_v20 = vld [vmem:[#allocation6 + $0x18] sm:$0xff]   ;;  %v7443_v23 = vld [vmem:[#allocation6 + $0x68] sm:$0xff]   ;;  %v7445_v25 = vld [vmem:[#allocation6 + $0x70] sm:$0xff]  }
 0x1b4   :  { %v6899_v31 = vpop.f32.mrb[3].mxu1  ;;  %v7446_v26 = vld [vmem:[#allocation6 + $0x30] sm:$0xff]   ;;  %v7448_v28 = vld [vmem:[#allocation6 + $0x38] sm:$0xff]  }
 0x1b5   :  { %v691_v32 = vadd.f32 %v6897_v29, %v651_v27  ;;  %v7447_v27 = vld [vmem:[#allocation6 + $0x78] sm:$0xff]   ;;  %v7451_v29 = vld [vmem:[#allocation4 + $0x84] ss:$8 sps:$4 sm:$0xff]  }
 0x1b9   :  { %v770_v33 = vpop.f32.mrb[4].mxu1 }
 0x1ba   :  { %v7183_v34 = vpop.f32.mrb[5].mxu1 }
 0x1bb   :  { %v773_v35 = vpop.f32.mrb[6].mxu1 }
 0x1bc   :  { %v7184_v36 = vpop.f32.mrb[7].mxu1 }
 0x1cf   :  { %v6917_v37 = vpop.f32.mrb[4].mxu0 }
 0x1d0   :  { %v6918_v38 = vpop.f32.mrb[5].mxu0 }
 0x1d1   :  { %v6919_v39 = vadd.f32 %v6918_v38, %v6917_v37  ;;  %v6920_v40 = vpop.f32.mrb[6].mxu0 }
 0x1d2   :  { %v6921_v41 = vpop.f32.mrb[7].mxu0 }
 0x1d3   :  { %v731_v42 = vadd.f32 %v6919_v39, %v691_v32 }
 0x1d5   :  { %v8801_v43 = vadd.f32 %v770_v33, %v731_v42 }
 0x1d7   :  { %v841_v45 = vmul.f32 %v8801_v43, %v8801_v43 }
 0x1d9   :  { %842 = vadd.xlane.f32.xlu0 %v841_v45 }
 0x245   :  { %v1084_v9 = vpop.f32.mrb[8].mxu0 }
 0x246   :  { %v1086_v10 = vpop.f32.mrb[9].mxu0  ;;  %v1085_v30 = vadd.f32 1.0, %v1084_v9  ;;  %v7481_v9 = vld [vmem:[#allocation2 + $0xa4] ss:$8 sps:$4 sm:$0xff]  }
 0x247   :  { %v1088_v11 = vpop.f32.mrb[10].mxu0  ;;  %v1087_v31 = vadd.f32 1.0, %v1086_v10  ;;  %v7479_v10 = vld [vmem:[#allocation2 + $0xa0] ss:$8 sps:$4 sm:$0xff]  }
 0x248   :  { %v1089_v12 = vpop.f32.mrb[11].mxu0  ;;  %v7484_v11 = vld [vmem:[#allocation2 + $0xb4] ss:$8 sps:$4 sm:$0xff]  }
 0x249   :  { %v7482_v12 = vld [vmem:[#allocation2 + $0xb0] ss:$8 sps:$4 sm:$0xff]  }
 0x266   :  { %v843_v4 = vpop.xlane.xlu0 %842 }
 0x267   :  { %v844_v5 = vmul.f32 0.0078125, %v843_v4  ;;  %v7472_v4 = vld [vmem:[#allocation4 + $0xf4] ss:$8 sps:$4 sm:$0xff]  }
 0x269   :  { %v845_v6 = vadd.f32 1e-06, %v844_v5  ;;  %v7470_v5 = vld [vmem:[#allocation4 + $0xf0] ss:$8 sps:$4 sm:$0xff]  }
 0x26b   :  { %8035 = vrsqrt.f32 %v845_v6  ;;  %v7473_v6 = vld [vmem:[#allocation2 + $0x80] ss:$8 sps:$4 sm:$0xff]  }
 0x275   :  { %v8036_v7 = vpop.eup %8035 }
 0x276   :  { %v847_v0 = vmul.f32 %v8036_v7, %v8801_v43  ;;  %v7475_v7 = vld [vmem:[#allocation2 + $0x84] ss:$8 sps:$4 sm:$0xff]  }
 0x277   :  { %1410 = vmatprep.subr.bf16.mxu0 %v7475_v7 }
 0x278   :  { %v848_v8 = vpack.c.bf16 %v847_v0, %v847_v0  ;;  %v7478_v0 = vld [vmem:[#allocation2 + $0x94] ss:$8 sps:$4 sm:$0xff]   ;;  %1411 = vmatpush1.bf16.msra.mxu0 %v7473_v6 }
 0x279   :  { %1412 = vmatprep.subr.bf16.mxu0 %v7478_v0 }
 0x27a   :  { %962 = vmatmul.mubr.bf16.vlgmr.msra.gmra.mrb[8].mxu1 %v848_v8  ;;  %v7476_v8 = vld [vmem:[#allocation2 + $0x90] ss:$8 sps:$4 sm:$0xff]  }
 0x27b   :  { %6926 = vmatpush3.bf16.msra.mxu1 %v7434_v14  ;;  %v6202_v14 = vld [vmem:[%s9929_s30] ss:$0 sm:$0xff] }
 0x27c   :  { %6927 = vmatprep.subr.bf16.mxu1 %v7435_v15  ;;  %1413 = vmatpush1.bf16.msra.mxu0 %v7476_v8 }
 0x27d   :  { %1414 = vmatprep.subr.bf16.mxu0 %v7481_v9 }
 0x27f   :  { %6928 = vmatpush3.bf16.msra.mxu1 %v7436_v16 }
 0x280   :  { %6929 = vmatprep.subr.bf16.mxu1 %v7437_v17  ;;  %1415 = vmatpush1.bf16.msra.mxu0 %v7479_v10 }
 0x281   :  { %1416 = vmatprep.subr.bf16.mxu0 %v7484_v11 }
 0x283   :  { %6930 = vmatpush3.bf16.msra.mxu1 %v7438_v18 }
 0x284   :  { %6931 = vmatprep.subr.bf16.mxu1 %v7439_v19  ;;  %1417 = vmatpush1.bf16.msra.mxu0 %v7482_v12 }
 0x287   :  { %6932 = vmatpush3.bf16.msra.mxu1 %v7440_v20 }
 0x288   :  { %6933 = vmatprep.subr.bf16.mxu1 %v7441_v21 }
 0x28b   :  { %6934 = vmatpush3.bf16.msra.mxu1 %v7442_v22  ;;  %v7487_v22 = vld [vmem:[#allocation2 + $0xc4] ss:$8 sps:$4 sm:$0xff]  }
 0x28c   :  { %6935 = vmatprep.subr.bf16.mxu1 %v7443_v23  ;;  %v7485_v23 = vld [vmem:[#allocation2 + $0xc0] ss:$8 sps:$4 sm:$0xff]   ;;  %1418 = vmatprep.subr.bf16.mxu0 %v7487_v22  ;;  %v7524_v22 = vld [vmem:[#allocation7 + $0x34] ss:$8 sps:$4 sm:$0xff]  }
 0x28d   :  { %1419 = vmatpush1.bf16.msra.mxu0 %v7485_v23  ;;  %v7522_v23 = vld [vmem:[#allocation7 + $0x30] ss:$8 sps:$4 sm:$0xff]  }
 0x28f   :  { %6936 = vmatpush3.bf16.msra.mxu1 %v7444_v24  ;;  %v7490_v24 = vld [vmem:[#allocation2 + $0xd4] ss:$8 sps:$4 sm:$0xff]  }
 0x290   :  { %6937 = vmatprep.subr.bf16.mxu1 %v7445_v25  ;;  %v7488_v25 = vld [vmem:[#allocation2 + $0xd0] ss:$8 sps:$4 sm:$0xff]   ;;  %1420 = vmatprep.subr.bf16.mxu0 %v7490_v24  ;;  %v7527_v24 = vld [vmem:[#allocation7 + $0x44] ss:$8 sps:$4 sm:$0xff]  }
 0x291   :  { %1421 = vmatpush1.bf16.msra.mxu0 %v7488_v25  ;;  %v7525_v25 = vld [vmem:[#allocation7 + $0x40] ss:$8 sps:$4 sm:$0xff]  }
 0x293   :  { %6938 = vmatpush3.bf16.msra.mxu1 %v7446_v26  ;;  %v7493_v26 = vld [vmem:[#allocation2 + $0xe4] ss:$8 sps:$4 sm:$0xff]  }
 0x294   :  { %6939 = vmatprep.subr.bf16.mxu1 %v7447_v27  ;;  %1422 = vmatprep.subr.bf16.mxu0 %v7493_v26  ;;  %v7530_v26 = vld [vmem:[#allocation7 + $0x54] ss:$8 sps:$4 sm:$0xff]  }
 0x297   :  { %6940 = vmatpush3.bf16.msra.mxu1 %v7448_v28 }
 0x298   :  { %1531 = vmatprep.subr.bf16.mxu1 %v7451_v29  ;;  %v7491_v29 = vld [vmem:[#allocation2 + $0xe0] ss:$8 sps:$4 sm:$0xff]  }
 0x299   :  { %1423 = vmatpush1.bf16.msra.mxu0 %v7491_v29  ;;  %v7531_v29 = vld [vmem:[#allocation7 + $0x60] ss:$8 sps:$4 sm:$0xff]  }
 0x34d   :  { %v963_v32 = vpop.f32.mrb[8].mxu1 }
 0x34e   :  { %v1091_v33 = vmul.f32 %v1085_v30, %v963_v32  ;;  %v965_v34 = vpop.f32.mrb[9].mxu1  ;;  %v7494_v32 = vld [vmem:[#allocation2 + $0xf0] ss:$8 sps:$4 sm:$0xff]  }
 0x34f   :  { %v1092_v35 = vmul.f32 %v1087_v31, %v965_v34  ;;  %v967_v36 = vpop.f32.mrb[10].mxu1 }
 0x350   :  { %v6184_v37 = vmul.f32 -1.442695, %v1091_v33  ;;  %v968_v38 = vpop.f32.mrb[11].mxu1 }
 0x351   :  { %v6185_v39 = vmul.f32 -1.442695, %v1092_v35 }
 0x352   :  { %8037 = vpow2.f32 %v6184_v37 }
 0x353   :  { %8039 = vpow2.f32 %v6185_v39  ;;  %v7497_v39 = vld [vmem:[#allocation6 + $0xc0] sm:$0xff]  }
 0x35c   :  { %v8038_v40 = vpop.eup %8037 }
 0x35d   :  { %v8040_v41 = vpop.eup %8039  ;;  %v1099_v42 = vadd.f32 1.0, %v8038_v40  ;;  %v7498_v40 = vld [vmem:[#allocation6 + $0x80] sm:$0xff]  }
 0x35e   :  { %v1100_v45 = vadd.f32 1.0, %v8040_v41  ;;  %v7499_v41 = vld [vmem:[#allocation6 + $0xc8] sm:$0xff]  }
 0x35f   :  { %8041 = vrcp.f32 %v1099_v42  ;;  %v7500_v42 = vld [vmem:[#allocation6 + $0x88] sm:$0xff]  }
 0x360   :  { %8043 = vrcp.f32 %v1100_v45  ;;  %v7501_v45 = vld [vmem:[#allocation6 + $0xd0] sm:$0xff]  }
 0x369   :  { %v8042_v46 = vpop.eup %8041 }
 0x36a   :  { %v8044_v47 = vpop.eup %8043  ;;  %v1105_v48 = vmul.f32 %v8042_v46, %v1091_v33  ;;  %v7502_v46 = vld [vmem:[#allocation6 + $0x90] sm:$0xff]  }
 0x36b   :  { %v1106_v49 = vmul.f32 %v8044_v47, %v1092_v35  ;;  %v7503_v47 = vld [vmem:[#allocation6 + $0xd8] sm:$0xff]  }
 0x36c   :  { %v1107_v52 = vpack.c.bf16 %v1105_v48, %v1105_v48  ;;  %v7504_v48 = vld [vmem:[#allocation6 + $0x98] sm:$0xff]  }
 0x36d   :  { %v1108_v50 = vpack.c.bf16 %v1106_v49, %v1106_v49  ;;  %v7505_v49 = vld [vmem:[#allocation6 + $0xe0] sm:$0xff]  }
 0x36f   :  { %1237 = vmatprep.mubr.bf16.mxu1 %v1108_v50  ;;  %v7506_v50 = vld [vmem:[#allocation6 + $0xa0] sm:$0xff]  }
 0x370   :  { %1238 = vmatmul.mubr.bf16.vlgmr.msra.gmra.mrb[12].mxu1 %v1107_v52  ;;  %v7508_v52 = vld [vmem:[#allocation6 + $0xa8] sm:$0xff]  }
 0x371   :  { %1532 = vmatpush1.bf16.msra.mxu1 %v7449_v51  ;;  %1563 = vmatprep.mubr.bf16.mxu1 %v8339_v60  ;;  %v7507_v51 = vld [vmem:[#allocation6 + $0xe8] sm:$0xff]  }
 0x372   :  { %1533 = vmatprep.subr.bf16.mxu1 %v7454_v53  ;;  %v7509_v53 = vld [vmem:[#allocation6 + $0xf0] sm:$0xff]  }
 0x375   :  { %1534 = vmatpush1.bf16.msra.mxu1 %v7452_v54  ;;  %v7510_v54 = vld [vmem:[#allocation6 + $0xb0] sm:$0xff]  }
 0x376   :  { %1535 = vmatprep.subr.bf16.mxu1 %v7457_v55  ;;  %v7511_v55 = vld [vmem:[#allocation6 + $0xf8] sm:$0xff]  }
 0x379   :  { %1536 = vmatpush1.bf16.msra.mxu1 %v7455_v56  ;;  %v7512_v56 = vld [vmem:[#allocation6 + $0xb8] sm:$0xff]  }
 0x37a   :  { %1537 = vmatprep.subr.bf16.mxu1 %v7460_v57  ;;  %v7515_v57 = vld [vmem:[#allocation7 + $0x4] ss:$8 sps:$4 sm:$0xff]  }
 0x37d   :  { %1538 = vmatpush1.bf16.msra.mxu1 %v7458_v58 }
 0x37e   :  { %1539 = vmatprep.subr.bf16.mxu1 %v7463_v59 }
 0x381   :  { %1540 = vmatpush1.bf16.msra.mxu1 %v7461_v61 }
 0x382   :  { %1541 = vmatprep.subr.bf16.mxu1 %v7466_v62 }
 0x385   :  { %1542 = vmatpush1.bf16.msra.mxu1 %v7464_v63 }
 0x386   :  { %1543 = vmatprep.subr.bf16.mxu1 %v7469_v1 }
 0x389   :  { %1544 = vmatpush1.bf16.msra.mxu1 %v7467_v3 }
 0x38a   :  { %1545 = vmatprep.subr.bf16.mxu1 %v7472_v4 }
 0x38d   :  { %1546 = vmatpush1.bf16.msra.mxu1 %v7470_v5 }
 0x38e   :  { %7185 = vmatprep.subr.bf16.mxu1 %v8337_v44 }
 0x390   :  { %1564 = vmatmul.mubr.bf16.vlgmr.msra.gmra.mrb[16].mxu1 %v8808_v2 }
 0x391   :  { %7201 = vmatprep.mubr.msk.bf16.mxu1 %vm8338_vm0, %v8337_v44 }
 0x443   :  { %v6941_v13 = vpop.f32.mrb[12].mxu1 }
 0x444   :  { %v6942_v15 = vpop.f32.mrb[13].mxu1 }
 0x445   :  { %v6943_v16 = vadd.f32 %v6942_v15, %v6941_v13  ;;  %v6944_v17 = vpop.f32.mrb[14].mxu1  ;;  %v7513_v15 = vld [vmem:[#allocation7] ss:$8 sps:$4 sm:$0xff]  }
 0x446   :  { %v6945_v18 = vpop.f32.mrb[15].mxu1  ;;  %v7518_v17 = vld [vmem:[#allocation7 + $0x14] ss:$8 sps:$4 sm:$0xff]  }
 0x447   :  { %v1251_v19 = vmul.f32 %v6943_v16, %v6202_v14  ;;  %v7516_v18 = vld [vmem:[#allocation7 + $0x10] ss:$8 sps:$4 sm:$0xff]  }
 0x449   :  { %v8822_v20 = vadd.f32 %v1251_v19, %v8801_v43  ;;  %v7496_v43 = vld [vmem:[#allocation2 + $0xf4] ss:$8 sps:$4 sm:$0xff]   ;;  %v7521_v19 = vld [vmem:[#allocation7 + $0x24] ss:$8 sps:$4 sm:$0xff]  }
 0x44a   :  { %1424 = vmatprep.subr.bf16.mxu0 %v7496_v43  ;;  %v7534_v43 = vld [vmem:[#allocation7 + $0x70] ss:$8 sps:$4 sm:$0xff]  }
 0x44b   :  { %v1322_v21 = vmul.f32 %v8822_v20, %v8822_v20  ;;  %1425 = vmatpush1.bf16.msra.mxu0 %v7494_v32  ;;  %v7538_v32 = vld [vmem:[%s9930_s0 + $0x8] sm:$0xff]  }
 0x44c   :  { %6947 = vmatprep.subr.bf16.mxu0 %v7497_v39 }
 0x44d   :  { %1323 = vadd.xlane.f32.xlu1 %v1322_v21  ;;  %v7519_v21 = vld [vmem:[#allocation7 + $0x20] ss:$8 sps:$4 sm:$0xff]  }
 0x463   :  { %v1565_v27 = vpop.f32.mrb[16].mxu1 }
 0x464   :  { %v1567_v28 = vpop.f32.mrb[17].mxu1  ;;  %v1566_v58 = vadd.f32 1.0, %v1565_v27  ;;  %v7528_v27 = vld [vmem:[#allocation7 + $0x50] ss:$8 sps:$4 sm:$0xff]  }
 0x465   :  { %v1569_v30 = vpop.f32.mrb[18].mxu1  ;;  %v1568_v59 = vadd.f32 1.0, %v1567_v28  ;;  %v7533_v28 = vld [vmem:[#allocation7 + $0x64] ss:$8 sps:$4 sm:$0xff]  }
 0x466   :  { %v1570_v31 = vpop.f32.mrb[19].mxu1  ;;  %v7536_v30 = vld [vmem:[#allocation7 + $0x74] ss:$8 sps:$4 sm:$0xff]  }
 0x467   :  { %v7537_v31 = vld [vmem:[%s9930_s0] sm:$0xff]  }
 0x468   :  { %7186 = vmatpush3.bf16.msra.mxu1 %v7537_v31 }
 0x469   :  { %7187 = vmatprep.subr.bf16.mxu1 %v8337_v44 }
 0x46c   :  { %7188 = vmatpush3.bf16.msra.mxu1 %v7538_v32  ;;  %v1852_v32 = vlaneseq }
 0x46d   :  { %7189 = vmatprep.subr.bf16.mxu1 %v8337_v44 }
 0x4da   :  { %v1324_v33 = vpop.xlane.xlu1 %1323 }
 0x4db   :  { %v1325_v34 = vmul.f32 0.0078125, %v1324_v33  ;;  %v7539_v33 = vld [vmem:[%s9930_s0 + $0x10] sm:$0xff]  }
 0x4dc   :  { %7190 = vmatpush3.bf16.msra.mxu1 %v7539_v33 }
 0x4dd   :  { %v1326_v35 = vadd.f32 1e-06, %v1325_v34  ;;  %v7540_v34 = vld [vmem:[%s9930_s0 + $0x18] sm:$0xff]   ;;  %7191 = vmatprep.subr.bf16.mxu1 %v8337_v44 }
 0x4df   :  { %8045 = vrsqrt.f32 %v1326_v35 }
 0x4e0   :  { %7192 = vmatpush3.bf16.msra.mxu1 %v7540_v34  ;;  %v8865_v34 = vand.u32 127, %v1852_v32  ;;  %v7608_v32 = vld [vmem:[%s9881_s13 + $0x14] ss:$8 sps:$4 sm:$0xff]  }
 0x4e1   :  { %7193 = vmatprep.subr.bf16.mxu1 %v8337_v44 }
 0x4e2   :  { %vm1863_vm2 = vcmp.eq.s32.totalorder %v8865_v34, 1  ;;  %vm1854_vm4 = vcmp.eq.s32.totalorder %v8865_v34, 0  ;;  %vm1880_vm5 = vcmp.eq.s32.totalorder %v8865_v34, 3  ;;  %vm1872_vm8 = vcmp.eq.s32.totalorder %v8865_v34, 2 }
 0x4e3   :  { %vm1897_vm9 = vcmp.eq.s32.totalorder %v8865_v34, 5  ;;  %vm1889_vm12 = vcmp.eq.s32.totalorder %v8865_v34, 4 }
 0x4e9   :  { %v8046_v36 = vpop.eup %8045 }
 0x4ea   :  { %v1328_v37 = vmul.f32 %v8046_v36, %v8822_v20  ;;  %v6254_v36 = vld [vmem:[%s9929_s30 + $0x1] ss:$0 sm:$0xff] }
 0x4ec   :  { %v1329_v38 = vpack.c.bf16 %v1328_v37, %v1328_v37 }
 0x4ee   :  { %1443 = vmatmul.mubr.bf16.vlgmr.msra.gmra.mrb[12].mxu0 %v1329_v38 }
 0x4ef   :  { %6948 = vmatpush3.bf16.msra.mxu0 %v7498_v40 }
 0x4f0   :  { %6949 = vmatprep.subr.bf16.mxu0 %v7499_v41 }
 0x4f3   :  { %6950 = vmatpush3.bf16.msra.mxu0 %v7500_v42 }
 0x4f4   :  { %6951 = vmatprep.subr.bf16.mxu0 %v7501_v45 }
 0x4f7   :  { %6952 = vmatpush3.bf16.msra.mxu0 %v7502_v46  ;;  %v7541_v46 = vld [vmem:[%s9930_s0 + $0x20] sm:$0xff]  }
 0x4f8   :  { %6953 = vmatprep.subr.bf16.mxu0 %v7503_v47  ;;  %7194 = vmatpush3.bf16.msra.mxu1 %v7541_v46  ;;  %v7542_v47 = vld [vmem:[%s9930_s0 + $0x28] sm:$0xff]   ;;  %v8131_v46 = vld [vmem:[%s9927_s2] sm:$0xff] }
 0x4f9   :  { %7195 = vmatprep.subr.bf16.mxu1 %v8337_v44 }
 0x4fb   :  { %6954 = vmatpush3.bf16.msra.mxu0 %v7504_v48 }
 0x4fc   :  { %6955 = vmatprep.subr.bf16.mxu0 %v7505_v49  ;;  %7196 = vmatpush3.bf16.msra.mxu1 %v7542_v47  ;;  %v7543_v49 = vld [vmem:[%s9930_s0 + $0x30] sm:$0xff]  }
 0x4fd   :  { %7197 = vmatprep.subr.bf16.mxu1 %v8337_v44 }
 0x4ff   :  { %6956 = vmatpush3.bf16.msra.mxu0 %v7506_v50 }
 0x500   :  { %6957 = vmatprep.subr.bf16.mxu0 %v7507_v51  ;;  %7198 = vmatpush3.bf16.msra.mxu1 %v7543_v49 }
 0x501   :  { %7199 = vmatprep.subr.bf16.mxu1 %v8337_v44 }
 0x503   :  { %6958 = vmatpush3.bf16.msra.mxu0 %v7508_v52  ;;  %v7544_v52 = vld [vmem:[%s9930_s0 + $0x38] sm:$0xff]  }
 0x504   :  { %6959 = vmatprep.subr.bf16.mxu0 %v7509_v53  ;;  %v7545_v53 = vld [vmem:[#allocation9 + $0x40] sm:$0xff]   ;;  %7200 = vmatpush3.bf16.msra.mxu1 %v7544_v52 }
 0x505   :  { %6978 = vmatprep.subr.bf16.mxu1 %v7545_v53  ;;  %v7573_v52 = vld [vmem:[#allocation7 + $0xc0] ss:$8 sps:$4 sm:$0xff]   ;;  %v7576_v53 = vld [vmem:[#allocation7 + $0xd0] ss:$8 sps:$4 sm:$0xff]  }
 0x507   :  { %6960 = vmatpush3.bf16.msra.mxu0 %v7510_v54 }
 0x508   :  { %6961 = vmatprep.subr.bf16.mxu0 %v7511_v55 }
 0x50b   :  { %6962 = vmatpush3.bf16.msra.mxu0 %v7512_v56 }
 0x50c   :  { %2052 = vmatprep.subr.bf16.mxu0 %v7515_v57 }
 0x5c1   :  { %v1444_v61 = vpop.f32.mrb[12].mxu0 }
 0x5c2   :  { %v1572_v62 = vmul.f32 %v1566_v58, %v1444_v61  ;;  %v1446_v63 = vpop.f32.mrb[13].mxu0 }
 0x5c3   :  { %v1573_v1 = vmul.f32 %v1568_v59, %v1446_v63  ;;  %v1448_v3 = vpop.f32.mrb[14].mxu0 }
 0x5c4   :  { %v6236_v4 = vmul.f32 -1.442695, %v1572_v62  ;;  %v1449_v5 = vpop.f32.mrb[15].mxu0 }
 0x5c5   :  { %v6237_v6 = vmul.f32 -1.442695, %v1573_v1  ;;  %v7549_v5 = vld [vmem:[#allocation9 + $0x50] sm:$0xff]  }
 0x5c6   :  { %8047 = vpow2.f32 %v6236_v4  ;;  %v7548_v4 = vld [vmem:[#allocation9 + $0x8] sm:$0xff]  }
 0x5c7   :  { %8049 = vpow2.f32 %v6237_v6  ;;  %v7550_v6 = vld [vmem:[#allocation9 + $0x10] sm:$0xff]  }
 0x5d0   :  { %v8048_v7 = vpop.eup %8047 }
 0x5d1   :  { %v8050_v0 = vpop.eup %8049  ;;  %v1580_v8 = vadd.f32 1.0, %v8048_v7  ;;  %v7551_v7 = vld [vmem:[#allocation9 + $0x58] sm:$0xff]  }
 0x5d2   :  { %v1581_v9 = vadd.f32 1.0, %v8050_v0  ;;  %v7552_v0 = vld [vmem:[#allocation9 + $0x18] sm:$0xff]  }
 0x5d3   :  { %8051 = vrcp.f32 %v1580_v8  ;;  %v7553_v8 = vld [vmem:[#allocation9 + $0x60] sm:$0xff]  }
 0x5d4   :  { %8053 = vrcp.f32 %v1581_v9  ;;  %v7554_v9 = vld [vmem:[#allocation9 + $0x20] sm:$0xff]  }
 0x5dd   :  { %v8052_v10 = vpop.eup %8051 }
 0x5de   :  { %v8054_v11 = vpop.eup %8053  ;;  %v1586_v12 = vmul.f32 %v8052_v10, %v1572_v62  ;;  %v7546_v62 = vld [vmem:[#allocation9] sm:$0xff]   ;;  %v7555_v10 = vld [vmem:[#allocation9 + $0x68] sm:$0xff]  }
 0x5df   :  { %v1587_v13 = vmul.f32 %v8054_v11, %v1573_v1  ;;  %v7547_v1 = vld [vmem:[#allocation9 + $0x48] sm:$0xff]  }
 0x5e0   :  { %v1588_v16 = vpack.c.bf16 %v1586_v12, %v1586_v12  ;;  %v7556_v11 = vld [vmem:[#allocation9 + $0x28] sm:$0xff]   ;;  %v7557_v12 = vld [vmem:[#allocation9 + $0x70] sm:$0xff]  }
 0x5e1   :  { %v1589_v14 = vpack.c.bf16 %v1587_v13, %v1587_v13  ;;  %v7558_v13 = vld [vmem:[#allocation9 + $0x30] sm:$0xff]  }
 0x5e3   :  { %1718 = vmatprep.mubr.bf16.mxu0 %v1589_v14 }
 0x5e4   :  { %1719 = vmatmul.mubr.bf16.vlgmr.msra.gmra.mrb[16].mxu0 %v1588_v16  ;;  %v7560_v16 = vld [vmem:[#allocation9 + $0x38] sm:$0xff]  }
 0x5e5   :  { %2053 = vmatpush1.bf16.msra.mxu0 %v7513_v15  ;;  %2084 = vmatprep.mubr.bf16.mxu0 %v8339_v60  ;;  %v7559_v15 = vld [vmem:[#allocation9 + $0x78] sm:$0xff]  }
 0x5e6   :  { %2054 = vmatprep.subr.bf16.mxu0 %v7518_v17 }
 0x5e9   :  { %2055 = vmatpush1.bf16.msra.mxu0 %v7516_v18 }
 0x5ea   :  { %2056 = vmatprep.subr.bf16.mxu0 %v7521_v19  ;;  %v7561_v19 = vld [vmem:[#allocation7 + $0x80] ss:$8 sps:$4 sm:$0xff]  }
 0x5ed   :  { %2057 = vmatpush1.bf16.msra.mxu0 %v7519_v21  ;;  %v7563_v21 = vld [vmem:[#allocation7 + $0x84] ss:$8 sps:$4 sm:$0xff]  }
 0x5ee   :  { %2058 = vmatprep.subr.bf16.mxu0 %v7524_v22  ;;  %v7566_v22 = vld [vmem:[#allocation7 + $0x94] ss:$8 sps:$4 sm:$0xff]  }
 0x5f1   :  { %2059 = vmatpush1.bf16.msra.mxu0 %v7522_v23  ;;  %v7564_v23 = vld [vmem:[#allocation7 + $0x90] ss:$8 sps:$4 sm:$0xff]  }
 0x5f2   :  { %2060 = vmatprep.subr.bf16.mxu0 %v7527_v24  ;;  %v7569_v24 = vld [vmem:[#allocation7 + $0xa4] ss:$8 sps:$4 sm:$0xff]  }
 0x5f5   :  { %2061 = vmatpush1.bf16.msra.mxu0 %v7525_v25  ;;  %v7567_v25 = vld [vmem:[#allocation7 + $0xa0] ss:$8 sps:$4 sm:$0xff]  }
 0x5f6   :  { %2062 = vmatprep.subr.bf16.mxu0 %v7530_v26  ;;  %v7572_v26 = vld [vmem:[#allocation7 + $0xb4] ss:$8 sps:$4 sm:$0xff]  }
 0x5f9   :  { %2063 = vmatpush1.bf16.msra.mxu0 %v7528_v27  ;;  %v7570_v27 = vld [vmem:[#allocation7 + $0xb0] ss:$8 sps:$4 sm:$0xff]  }
 0x5fa   :  { %2064 = vmatprep.subr.bf16.mxu0 %v7533_v28 }
 0x5fd   :  { %2065 = vmatpush1.bf16.msra.mxu0 %v7531_v29 }
 0x5fe   :  { %2066 = vmatprep.subr.bf16.mxu0 %v7536_v30 }
 0x601   :  { %2067 = vmatpush1.bf16.msra.mxu0 %v7534_v43 }
 0x602   :  { %2383 = vmatprep.subr.bf16.mxu0 %v7563_v21 }
 0x604   :  { %2085 = vmatmul.mubr.bf16.vlgmr.msra.gmra.mrb[20].mxu0 %v8808_v2 }
 0x605   :  { %2415 = vmatprep.mubr.bf16.mxu0 %v8339_v60  ;;  %2384 = vmatpush1.bf16.msra.mxu0 %v7561_v19 }
 0x606   :  { %2385 = vmatprep.subr.bf16.mxu0 %v7566_v22 }
 0x609   :  { %2386 = vmatpush1.bf16.msra.mxu0 %v7564_v23 }
 0x60a   :  { %2387 = vmatprep.subr.bf16.mxu0 %v7569_v24 }
 0x60d   :  { %2388 = vmatpush1.bf16.msra.mxu0 %v7567_v25 }
 0x60e   :  { %2389 = vmatprep.subr.bf16.mxu0 %v7572_v26 }
 0x611   :  { %2390 = vmatpush1.bf16.msra.mxu0 %v7570_v27 }
 0x6b7   :  { %v6963_v35 = vpop.f32.mrb[16].mxu0 }
 0x6b8   :  { %v6964_v37 = vpop.f32.mrb[17].mxu0 }
 0x6b9   :  { %v6965_v38 = vadd.f32 %v6964_v37, %v6963_v35  ;;  %v6966_v39 = vpop.f32.mrb[18].mxu0  ;;  %v6304_v37 = vld [vmem:[%s9879_s11] ss:$0 sm:$0xff] }
 0x6ba   :  { %v6967_v40 = vpop.f32.mrb[19].mxu0 }
 0x6bb   :  { %v1732_v41 = vmul.f32 %v6965_v38, %v6254_v36 }
 0x6bd   :  { %v1733_v42 = vadd.f32 %v1732_v41, %v8822_v20 }
 0x6bf   :  { %v1734_v45 = vmul.f32 %v1733_v42, %v1733_v42 }
 0x6c1   :  { %1735 = vadd.xlane.f32.xlu1 %v1734_v45 }
 0x6d7   :  { %v2086_v48 = vpop.f32.mrb[20].mxu0 }
 0x6d8   :  { %v2088_v20 = vpop.f32.mrb[21].mxu0  ;;  %v2093_v14 = vmax.f32 %v2086_v48, 0.0  ;;  %v6265_v48 = vsel %vm1863_vm2, 1.0, %v8337_v44  ;;  %vm2574_vm2 = vcmp.lt.s32.totalorder %v8865_v34, 16 }
 0x6d9   :  { %v2090_v50 = vpop.f32.mrb[22].mxu0  ;;  %v2094_v57 = vmax.f32 %v2088_v20, 0.0 }
 0x6da   :  { %v2091_v51 = vpop.f32.mrb[23].mxu0  ;;  %v2095_v17 = vmul.f32 %v2093_v14, %v2093_v14 }
 0x6db   :  { %v2096_v59 = vmul.f32 %v2094_v57, %v2094_v57  ;;  %v7575_v51 = vld [vmem:[#allocation7 + $0xc4] ss:$8 sps:$4 sm:$0xff]   ;;  %v7584_v57 = vld [vmem:[#allocation7 + $0xf4] ss:$8 sps:$4 sm:$0xff]  }
 0x6dc   :  { %v2097_v18 = vpack.c.bf16 %v2095_v17, %v2095_v17  ;;  %2391 = vmatprep.subr.bf16.mxu0 %v7575_v51  ;;  %v7599_v17 = vld [vmem:[#allocation9 + $0xf8] sm:$0xff]  }
 0x6dd   :  { %v2098_v3 = vpack.c.bf16 %v2096_v59, %v2096_v59  ;;  %2392 = vmatpush1.bf16.msra.mxu0 %v7573_v52  ;;  %v7585_v59 = vld [vmem:[#allocation9 + $0xc0] sm:$0xff]  }
 0x74e   :  { %v1736_v54 = vpop.xlane.xlu1 %1735 }
 0x74f   :  { %v1737_v55 = vmul.f32 0.0078125, %v1736_v54  ;;  %v7578_v54 = vld [vmem:[#allocation7 + $0xd4] ss:$8 sps:$4 sm:$0xff]  }
 0x750   :  { %2393 = vmatprep.subr.bf16.mxu0 %v7578_v54 }
 0x751   :  { %v1738_v56 = vadd.f32 1e-06, %v1737_v55  ;;  %v7581_v55 = vld [vmem:[#allocation7 + $0xe4] ss:$8 sps:$4 sm:$0xff]   ;;  %2394 = vmatpush1.bf16.msra.mxu0 %v7576_v53  ;;  %v6264_v53 = vsel %vm1854_vm4, 1.0, %v8337_v44  ;;  %vm1914_vm4 = vcmp.eq.s32.totalorder %v8865_v34, 7 }
 0x752   :  { %2395 = vmatprep.subr.bf16.mxu0 %v7581_v55 }
 0x753   :  { %8055 = vrsqrt.f32 %v1738_v56  ;;  %v7579_v56 = vld [vmem:[#allocation7 + $0xe0] ss:$8 sps:$4 sm:$0xff]  }
 0x755   :  { %2396 = vmatpush1.bf16.msra.mxu0 %v7579_v56  ;;  %v6267_v56 = vsel %vm1880_vm5, 1.0, %v8337_v44  ;;  %vm1906_vm5 = vcmp.eq.s32.totalorder %v8865_v34, 6 }
 0x756   :  { %2397 = vmatprep.subr.bf16.mxu0 %v7584_v57 }
 0x75d   :  { %v8056_v58 = vpop.eup %8055 }
 0x75e   :  { %v1740_v61 = vmul.f32 %v8056_v58, %v1733_v42  ;;  %v7582_v58 = vld [vmem:[#allocation7 + $0xf0] ss:$8 sps:$4 sm:$0xff]  }
 0x75f   :  { %2398 = vmatpush1.bf16.msra.mxu0 %v7582_v58 }
 0x760   :  { %v1741_v63 = vpack.c.bf16 %v1740_v61, %v1740_v61  ;;  %7205 = vmatprep.subr.bf16.mxu0 %v8337_v44  ;;  %v7586_v61 = vld [vmem:[#allocation9 + $0x80] sm:$0xff]  }
 0x762   :  { %7202 = vmatmul.mubr.bf16.vlgmr.msra.gmra.mrb[20].mxu1 %v1741_v63  ;;  %v7588_v63 = vld [vmem:[#allocation9 + $0x88] sm:$0xff]  }
 0x763   :  { %6979 = vmatpush3.bf16.msra.mxu1 %v7546_v62  ;;  %2227 = vmatprep.mubr.bf16.mxu1 %v2098_v3  ;;  %v7587_v62 = vld [vmem:[#allocation9 + $0xc8] sm:$0xff]   ;;  %v7590_v3 = vld [vmem:[#allocation9 + $0x90] sm:$0xff]  }
 0x764   :  { %6980 = vmatprep.subr.bf16.mxu1 %v7547_v1  ;;  %v7589_v1 = vld [vmem:[#allocation9 + $0xd0] sm:$0xff]  }
 0x767   :  { %6981 = vmatpush3.bf16.msra.mxu1 %v7548_v4  ;;  %v7591_v4 = vld [vmem:[#allocation9 + $0xd8] sm:$0xff]  }
 0x768   :  { %6982 = vmatprep.subr.bf16.mxu1 %v7549_v5  ;;  %v7592_v5 = vld [vmem:[#allocation9 + $0x98] sm:$0xff]  }
 0x76b   :  { %6983 = vmatpush3.bf16.msra.mxu1 %v7550_v6  ;;  %v7593_v6 = vld [vmem:[#allocation9 + $0xe0] sm:$0xff]  }
 0x76c   :  { %6984 = vmatprep.subr.bf16.mxu1 %v7551_v7  ;;  %v7594_v7 = vld [vmem:[#allocation9 + $0xa0] sm:$0xff]  }
 0x76f   :  { %6985 = vmatpush3.bf16.msra.mxu1 %v7552_v0  ;;  %v7595_v0 = vld [vmem:[#allocation9 + $0xe8] sm:$0xff]  }
 0x770   :  { %6986 = vmatprep.subr.bf16.mxu1 %v7553_v8  ;;  %v7596_v8 = vld [vmem:[#allocation9 + $0xa8] sm:$0xff]  }
 0x773   :  { %6987 = vmatpush3.bf16.msra.mxu1 %v7554_v9 }
 0x774   :  { %6988 = vmatprep.subr.bf16.mxu1 %v7555_v10 }
 0x777   :  { %6989 = vmatpush3.bf16.msra.mxu1 %v7556_v11 }
 0x778   :  { %6990 = vmatprep.subr.bf16.mxu1 %v7557_v12 }
 0x77b   :  { %6991 = vmatpush3.bf16.msra.mxu1 %v7558_v13 }
 0x77c   :  { %6992 = vmatprep.subr.bf16.mxu1 %v7559_v15  ;;  %v7597_v15 = vld [vmem:[#allocation9 + $0xf0] sm:$0xff]  }
 0x77f   :  { %6993 = vmatpush3.bf16.msra.mxu1 %v7560_v16  ;;  %v7598_v16 = vld [vmem:[#allocation9 + $0xb0] sm:$0xff]  }
 0x780   :  { %7000 = vmatprep.subr.bf16.mxu1 %v7585_v59  ;;  %v7617_v59 = vld [vmem:[#allocation10 + $0x20] sm:$0xff]  }
 0x782   :  { %2228 = vmatmul.mubr.bf16.vlgmr.msra.gmra.mrb[24].mxu1 %v2097_v18  ;;  %v7600_v18 = vld [vmem:[#allocation9 + $0xb8] sm:$0xff]  }
 0x783   :  { %7001 = vmatpush3.bf16.msra.mxu1 %v7586_v61  ;;  %v7620_v61 = vld [vmem:[%s9881_s13 + $0x44] ss:$8 sps:$4 sm:$0xff]  }
 0x784   :  { %7002 = vmatprep.subr.bf16.mxu1 %v7587_v62  ;;  %v7618_v62 = vld [vmem:[%s9881_s13 + $0x40] ss:$8 sps:$4 sm:$0xff]  }
 0x787   :  { %7003 = vmatpush3.bf16.msra.mxu1 %v7588_v63  ;;  %v7621_v63 = vld [vmem:[#allocation10 + $0x28] sm:$0xff]  }
 0x788   :  { %7004 = vmatprep.subr.bf16.mxu1 %v7589_v1  ;;  %v7624_v1 = vld [vmem:[%s9881_s13 + $0x54] ss:$8 sps:$4 sm:$0xff]  }
 0x78b   :  { %7005 = vmatpush3.bf16.msra.mxu1 %v7590_v3  ;;  %v7622_v3 = vld [vmem:[%s9881_s13 + $0x50] ss:$8 sps:$4 sm:$0xff]  }
 0x78c   :  { %7006 = vmatprep.subr.bf16.mxu1 %v7591_v4  ;;  %v7625_v4 = vld [vmem:[#allocation10 + $0x30] sm:$0xff]  }
 0x78f   :  { %7007 = vmatpush3.bf16.msra.mxu1 %v7592_v5  ;;  %v7628_v5 = vld [vmem:[%s9881_s13 + $0x64] ss:$8 sps:$4 sm:$0xff]  }
 0x790   :  { %7008 = vmatprep.subr.bf16.mxu1 %v7593_v6  ;;  %v7626_v6 = vld [vmem:[%s9881_s13 + $0x60] ss:$8 sps:$4 sm:$0xff]  }
 0x793   :  { %7009 = vmatpush3.bf16.msra.mxu1 %v7594_v7  ;;  %v7629_v7 = vld [vmem:[#allocation10 + $0x38] sm:$0xff]  }
 0x794   :  { %7010 = vmatprep.subr.bf16.mxu1 %v7595_v0  ;;  %v7632_v0 = vld [vmem:[%s9881_s13 + $0x74] ss:$8 sps:$4 sm:$0xff]  }
 0x797   :  { %7011 = vmatpush3.bf16.msra.mxu1 %v7596_v8  ;;  %v7630_v8 = vld [vmem:[%s9881_s13 + $0x70] ss:$8 sps:$4 sm:$0xff]  }
 0x798   :  { %7012 = vmatprep.subr.bf16.mxu1 %v7597_v15  ;;  %v7633_v15 = vld [vmem:[%s9882_s14] ss:$8 sps:$4 sm:$0xff]  }
 0x79b   :  { %7013 = vmatpush3.bf16.msra.mxu1 %v7598_v16 }
 0x79c   :  { %7014 = vmatprep.subr.bf16.mxu1 %v7599_v17  ;;  %v7638_v17 = vld [vmem:[%s9882_s14 + $0x14] ss:$8 sps:$4 sm:$0xff]  }
 0x79f   :  { %7015 = vmatpush3.bf16.msra.mxu1 %v7600_v18  ;;  %v7636_v18 = vld [vmem:[%s9882_s14 + $0x10] ss:$8 sps:$4 sm:$0xff]  }
 0x835   :  { %v1840_v28 = vpop.f32.mrb[20].mxu1 }
 0x836   :  { %v7203_v29 = vpop.f32.mrb[21].mxu1  ;;  %8057 = vtanh.f32 %v1840_v28 }
 0x837   :  { %v1843_v30 = vpop.f32.mrb[22].mxu1 }
 0x838   :  { %v7204_v43 = vpop.f32.mrb[23].mxu1  ;;  %v7601_v30 = vld [vmem:[#allocation10] sm:$0xff]  }
 0x839   :  { %v7602_v43 = vld [vmem:[%s9881_s13] ss:$8 sps:$4 sm:$0xff]  }
 0x840   :  { %v8058_v31 = vpop.eup %8057 }
 0x841   :  { %v1847_v33 = vadd.f32 1.0, %v8058_v31  ;;  %v7604_v31 = vld [vmem:[%s9881_s13 + $0x4] ss:$8 sps:$4 sm:$0xff]  }
 0x842   :  { %2820 = vmatprep.subr.bf16.mxu1 %v7604_v31  ;;  %v7653_v31 = vld [vmem:[%s9882_s14 + $0x64] ss:$8 sps:$4 sm:$0xff]  }
 0x843   :  { %v1848_v36 = vmul.f32 1.5, %v1847_v33  ;;  %v7605_v33 = vld [vmem:[#allocation10 + $0x8] sm:$0xff]  }
 0x845   :  { %v8871_v45 = vround.rtne.f32 %v1848_v36  ;;  %v7612_v36 = vld [vmem:[%s9881_s13 + $0x24] ss:$8 sps:$4 sm:$0xff]  }
 0x847   :  { %v1866_v20 = vmul.f32 %v8871_v45, %v6265_v48  ;;  %v1857_v55 = vmul.f32 %v8871_v45, %v6264_v53  ;;  %v1883_v58 = vmul.f32 %v8871_v45, %v6267_v56  ;;  %v7667_v53 = vld [vmem:[%s9883_s15 + $0x68] sm:$0xff]   ;;  %v7670_v56 = vld [vmem:[%s9883_s15 + $0x30] sm:$0xff]  }
 0x849   :  { %v1867_v50 = vsel %vm1858_vm3, %v1866_v20, 0.0  ;;  %v1859_v57 = vsel %vm1858_vm3, %v1857_v55, 0.0  ;;  %v7669_v55 = vld [vmem:[%s9883_s15 + $0x70] sm:$0xff]  }
 0x855   :  { %v6994_v35 = vpop.f32.mrb[24].mxu1 }
 0x856   :  { %v6995_v38 = vpop.f32.mrb[25].mxu1 }
 0x857   :  { %v6996_v39 = vadd.f32 %v6995_v38, %v6994_v35  ;;  %v6997_v40 = vpop.f32.mrb[26].mxu1  ;;  %v7606_v35 = vld [vmem:[%s9881_s13 + $0x10] ss:$8 sps:$4 sm:$0xff]   ;;  %v7610_v38 = vld [vmem:[%s9881_s13 + $0x20] ss:$8 sps:$4 sm:$0xff]  }
 0x858   :  { %v6998_v41 = vpop.f32.mrb[27].mxu1  ;;  %v7613_v40 = vld [vmem:[#allocation10 + $0x18] sm:$0xff]  }
 0x859   :  { %v2241_v42 = vmul.f32 %v6996_v39, %v6304_v37  ;;  %v7609_v37 = vld [vmem:[#allocation10 + $0x10] sm:$0xff]  }
 0x85a   :  { %v7616_v39 = vld [vmem:[%s9881_s13 + $0x34] ss:$8 sps:$4 sm:$0xff]   ;;  %v7614_v41 = vld [vmem:[%s9881_s13 + $0x30] ss:$8 sps:$4 sm:$0xff]  }
 0x85b   :  { %v8876_v47 = vadd.f32 %v8131_v46, %v2241_v42  ;;  %v6338_v46 = vld [vmem:[%s9879_s11 + $0x1] ss:$0 sm:$0xff] }
 0x85d   :  { %v2295_v49 = vmul.f32 %v8876_v47, %v8876_v47 }
 0x85f   :  { %2296 = vadd.xlane.f32.xlu0 %v2295_v49 }
 0x863   :  { %1868 = vadd.xlane.f32.xlu0 %v1867_v50 }
 0x8ec   :  { %v2297_v9 = vpop.xlane.xlu0 %2296 }
 0x8ed   :  { %v2298_v10 = vmul.f32 0.0078125, %v2297_v9  ;;  %v7635_v9 = vld [vmem:[%s9882_s14 + $0x4] ss:$8 sps:$4 sm:$0xff]  }
 0x8ef   :  { %v2299_v11 = vadd.f32 1e-06, %v2298_v10 }
 0x8f1   :  { %8059 = vrsqrt.f32 %v2299_v11 }
 0x8fb   :  { %v8060_v12 = vpop.eup %8059 }
 0x8fc   :  { %v2301_v13 = vmul.f32 %v8060_v12, %v8876_v47 }
 0x8fe   :  { %v2302_v14 = vpack.c.bf16 %v2301_v13, %v2301_v13 }
 0x900   :  { %2416 = vmatmul.mubr.bf16.vlgmr.msra.gmra.mrb[24].mxu0 %v2302_v14 }
 0x901   :  { %7221 = vmatprep.mubr.msk.bf16.mxu0 %vm8338_vm0, %v8337_v44  ;;  %7206 = vmatpush3.bf16.msra.mxu0 %v7601_v30 }
 0x902   :  { %7207 = vmatprep.subr.bf16.mxu0 %v8337_v44 }
 0x905   :  { %7208 = vmatpush3.bf16.msra.mxu0 %v7605_v33  ;;  %v7651_v33 = vld [vmem:[%s9882_s14 + $0x60] ss:$8 sps:$4 sm:$0xff]  }
 0x906   :  { %7209 = vmatprep.subr.bf16.mxu0 %v8337_v44 }
 0x909   :  { %7210 = vmatpush3.bf16.msra.mxu0 %v7609_v37  ;;  %v7654_v37 = vld [vmem:[%s9882_s14 + $0x70] ss:$8 sps:$4 sm:$0xff]  }
 0x90a   :  { %7211 = vmatprep.subr.bf16.mxu0 %v8337_v44 }
 0x90d   :  { %7212 = vmatpush3.bf16.msra.mxu0 %v7613_v40  ;;  %v7658_v40 = vld [vmem:[%s9883_s15] sm:$0xff]  }
 0x90e   :  { %7213 = vmatprep.subr.bf16.mxu0 %v8337_v44 }
 0x911   :  { %7214 = vmatpush3.bf16.msra.mxu0 %v7617_v59 }
 0x912   :  { %7215 = vmatprep.subr.bf16.mxu0 %v8337_v44 }
 0x915   :  { %7216 = vmatpush3.bf16.msra.mxu0 %v7621_v63 }
 0x916   :  { %7217 = vmatprep.subr.bf16.mxu0 %v8337_v44 }
 0x919   :  { %7218 = vmatpush3.bf16.msra.mxu0 %v7625_v4 }
 0x91a   :  { %7219 = vmatprep.subr.bf16.mxu0 %v8337_v44 }
 0x91d   :  { %7220 = vmatpush3.bf16.msra.mxu0 %v7629_v7 }
 0x91e   :  { %2941 = vmatprep.subr.bf16.mxu0 %v7635_v9 }
 0x9d3   :  { %v2417_v19 = vpop.f32.mrb[24].mxu0 }
 0x9d4   :  { %v2424_v21 = vmax.f32 %v2417_v19, 0.0  ;;  %v2419_v22 = vpop.f32.mrb[25].mxu0  ;;  %v7641_v19 = vld [vmem:[%s9882_s14 + $0x24] ss:$8 sps:$4 sm:$0xff]  }
 0x9d5   :  { %v2425_v23 = vmax.f32 %v2419_v22, 0.0  ;;  %v2421_v24 = vpop.f32.mrb[26].mxu0  ;;  %v7644_v22 = vld [vmem:[%s9882_s14 + $0x34] ss:$8 sps:$4 sm:$0xff]  }
 0x9d6   :  { %v2426_v25 = vmul.f32 %v2424_v21, %v2424_v21  ;;  %v2422_v26 = vpop.f32.mrb[27].mxu0  ;;  %v7639_v21 = vld [vmem:[%s9882_s14 + $0x20] ss:$8 sps:$4 sm:$0xff]   ;;  %v7647_v24 = vld [vmem:[%s9882_s14 + $0x44] ss:$8 sps:$4 sm:$0xff]  }
 0x9d7   :  { %v2427_v27 = vmul.f32 %v2425_v23, %v2425_v23  ;;  %v7642_v23 = vld [vmem:[%s9882_s14 + $0x30] ss:$8 sps:$4 sm:$0xff]  }
 0x9d8   :  { %v2428_v29 = vpack.c.bf16 %v2426_v25, %v2426_v25  ;;  %v1869_v25 = vpop.xlane.xlu0 %1868 }
 0x9d9   :  { %v2429_v28 = vpack.c.bf16 %v2427_v27, %v2427_v27  ;;  %v7645_v27 = vld [vmem:[%s9882_s14 + $0x40] ss:$8 sps:$4 sm:$0xff]  }
 0x9db   :  { %2558 = vmatprep.mubr.bf16.mxu1 %v2429_v28  ;;  %v1870_v28 = vmul.f32 4.0, %v1869_v25  ;;  %v7673_v25 = vld [vmem:[#allocation10 + $0x40] sm:$0xff]  }
 0x9dc   :  { %2559 = vmatmul.mubr.bf16.vlgmr.msra.gmra.mrb[28].mxu1 %v2428_v29  ;;  %v7650_v29 = vld [vmem:[%s9882_s14 + $0x54] ss:$8 sps:$4 sm:$0xff]  }
 0x9dd   :  { %2852 = vmatprep.mubr.bf16.mxu1 %v8339_v60  ;;  %2821 = vmatpush1.bf16.msra.mxu1 %v7602_v43  ;;  %v7648_v43 = vld [vmem:[%s9882_s14 + $0x50] ss:$8 sps:$4 sm:$0xff]  }
 0x9de   :  { %2822 = vmatprep.subr.bf16.mxu1 %v7608_v32 }
 0x9e1   :  { %2823 = vmatpush1.bf16.msra.mxu1 %v7606_v35  ;;  %v7656_v35 = vld [vmem:[%s9882_s14 + $0x74] ss:$8 sps:$4 sm:$0xff]  }
 0x9e2   :  { %2824 = vmatprep.subr.bf16.mxu1 %v7612_v36 }
 0x9e5   :  { %2825 = vmatpush1.bf16.msra.mxu1 %v7610_v38  ;;  %v8340_v38 = vmov 1.0|1.0  }
 0x9e6   :  { %2826 = vmatprep.subr.bf16.mxu1 %v7616_v39  ;;  %v7657_v39 = vld [vmem:[%s9883_s15 + $0x40] sm:$0xff]  }
 0x9e9   :  { %2827 = vmatpush1.bf16.msra.mxu1 %v7614_v41  ;;  %v7659_v41 = vld [vmem:[%s9883_s15 + $0x48] sm:$0xff]  }
 0x9ea   :  { %2828 = vmatprep.subr.bf16.mxu1 %v7620_v61 }
 0x9ed   :  { %2829 = vmatpush1.bf16.msra.mxu1 %v7618_v62 }
 0x9ee   :  { %2830 = vmatprep.subr.bf16.mxu1 %v7624_v1 }
 0x9f1   :  { %2831 = vmatpush1.bf16.msra.mxu1 %v7622_v3 }
 0x9f2   :  { %2832 = vmatprep.subr.bf16.mxu1 %v7628_v5 }
 0x9f5   :  { %2833 = vmatpush1.bf16.msra.mxu1 %v7626_v6 }
 0x9f6   :  { %2834 = vmatprep.subr.bf16.mxu1 %v7632_v0 }
 0x9f9   :  { %2835 = vmatpush1.bf16.msra.mxu1 %v7630_v8 }
 0x9fa   :  { %7031 = vmatprep.subr.bf16.mxu1 %v7657_v39 }
 0xaaf   :  { %v7016_v42 = vpop.f32.mrb[28].mxu1 }
 0xab0   :  { %v7017_v48 = vpop.f32.mrb[29].mxu1 }
 0xab1   :  { %v7018_v49 = vadd.f32 %v7017_v48, %v7016_v42  ;;  %v7019_v20 = vpop.f32.mrb[30].mxu1  ;;  %v7660_v42 = vld [vmem:[%s9883_s15 + $0x8] sm:$0xff]   ;;  %v7662_v48 = vld [vmem:[%s9883_s15 + $0x10] sm:$0xff]  }
 0xab2   :  { %v7020_v50 = vpop.f32.mrb[31].mxu1  ;;  %v7664_v20 = vld [vmem:[%s9883_s15 + $0x18] sm:$0xff]  }
 0xab3   :  { %v2572_v51 = vmul.f32 %v7018_v49, %v6338_v46  ;;  %v7661_v46 = vld [vmem:[%s9883_s15 + $0x50] sm:$0xff]   ;;  %v7663_v49 = vld [vmem:[%s9883_s15 + $0x58] sm:$0xff]   ;;  %v7665_v50 = vld [vmem:[%s9883_s15 + $0x60] sm:$0xff]  }
 0xab5   :  { %v8921_v52 = vadd.f32 %v2572_v51, %v8876_v47  ;;  %v1884_v47 = vsel %vm1858_vm3, %v1883_v58, 0.0  ;;  %v7666_v51 = vld [vmem:[%s9883_s15 + $0x20] sm:$0xff]   ;;  %v7672_v58 = vld [vmem:[%s9883_s15 + $0x38] sm:$0xff]  }
 0xab7   :  { %v2575_v54 = vmul.f32 %v8921_v52, %v8921_v52 }
 0xab9   :  { %2576 = vadd.xlane.f32.xlu1 %v2575_v54  ;;  %v7668_v54 = vld [vmem:[%s9883_s15 + $0x28] sm:$0xff]  }
 0xabd   :  { %1860 = vadd.xlane.f32.xlu1 %v1859_v57  ;;  %v7671_v57 = vld [vmem:[%s9883_s15 + $0x78] sm:$0xff]  }
 0xac1   :  { %1885 = vadd.xlane.f32.xlu1 %v1884_v47 }
 0xb46   :  { %v2577_v10 = vpop.xlane.xlu1 %2576 }
 0xb47   :  { %v2578_v11 = vmul.f32 0.0078125, %v2577_v10 }
 0xb49   :  { %v2579_v12 = vadd.f32 1e-06, %v2578_v11 }
 0xb4a   :  { %v1861_v26 = vpop.xlane.xlu1 %1860 }
 0xb4b   :  { %8061 = vrsqrt.f32 %v2579_v12  ;;  %v1871_v30 = vadd.f32 %v1870_v28, %v1861_v26  ;;  %v7674_v26 = vld [vmem:[%s9881_s13 + $0x80] ss:$8 sps:$4 sm:$0xff]   ;;  %v7680_v28 = vld [vmem:[%s9881_s13 + $0x94] ss:$8 sps:$4 sm:$0xff]  }
 0xb4d   :  { %v7312_v32 = vtrunc.f32 %v1871_v30  ;;  %v7678_v30 = vld [vmem:[%s9881_s13 + $0x90] ss:$8 sps:$4 sm:$0xff]  }
 0xb4f   :  { %v9006_v36 = vcvt.f32.s32 %v7312_v32  ;;  %v7682_v32 = vld [vmem:[%s9881_s13 + $0xa0] ss:$8 sps:$4 sm:$0xff]  }
 0xb51   :  { %vm2689_vm6 = vcmp.eq.s32.totalorder %v8865_v34, %v9006_v36  ;;  %v7939_v36 = vld [vmem:[%s9889_s21 + $0xc8] sm:$0xff]  }
 0xb52   :  { %vm6380_vm7 = vmpackc.low %vm2689_vm6, %vm2689_vm6 }
 0xb55   :  { %v8062_v13 = vpop.eup %8061 }
 0xb56   :  { %v2581_v14 = vmul.f32 %v8062_v13, %v8921_v52 }
 0xb58   :  { %v2582_v16 = vpack.c.bf16 %v2581_v14, %v2581_v14 }
 0xb5a   :  { %7222 = vmatmul.mubr.bf16.vlgmr.msra.gmra.mrb[28].mxu0 %v2582_v16  ;;  %2853 = vmatmul.mubr.bf16.vlgmr.msra.gmra.mrb[32].mxu1 %v2582_v16 }
 0xb5b   :  { %2942 = vmatpush1.bf16.msra.mxu0 %v7633_v15  ;;  %2973 = vmatprep.mubr.bf16.mxu0 %v8339_v60 }
 0xb5c   :  { %2943 = vmatprep.subr.bf16.mxu0 %v7638_v17  ;;  %7032 = vmatpush3.bf16.msra.mxu1 %v7658_v40 }
 0xb5d   :  { %7033 = vmatprep.subr.bf16.mxu1 %v7659_v41  ;;  %v6400_v41 = vld [vmem:[%s9884_s16] ss:$0 sm:$0xff] }
 0xb5f   :  { %2944 = vmatpush1.bf16.msra.mxu0 %v7636_v18 }
 0xb60   :  { %2945 = vmatprep.subr.bf16.mxu0 %v7641_v19  ;;  %7034 = vmatpush3.bf16.msra.mxu1 %v7660_v42 }
 0xb61   :  { %7035 = vmatprep.subr.bf16.mxu1 %v7661_v46 }
 0xb63   :  { %2946 = vmatpush1.bf16.msra.mxu0 %v7639_v21 }
 0xb64   :  { %2947 = vmatprep.subr.bf16.mxu0 %v7644_v22  ;;  %7036 = vmatpush3.bf16.msra.mxu1 %v7662_v48 }
 0xb65   :  { %7037 = vmatprep.subr.bf16.mxu1 %v7663_v49 }
 0xb67   :  { %2948 = vmatpush1.bf16.msra.mxu0 %v7642_v23 }
 0xb68   :  { %2949 = vmatprep.subr.bf16.mxu0 %v7647_v24  ;;  %7038 = vmatpush3.bf16.msra.mxu1 %v7664_v20 }
 0xb69   :  { %7039 = vmatprep.subr.bf16.mxu1 %v7665_v50  ;;  %v6266_v50 = vsel %vm1872_vm8, 1.0, %v8337_v44 }
 0xb6b   :  { %2950 = vmatpush1.bf16.msra.mxu0 %v7645_v27  ;;  %v7676_v27 = vld [vmem:[%s9881_s13 + $0x84] ss:$8 sps:$4 sm:$0xff]  }
 0xb6c   :  { %2951 = vmatprep.subr.bf16.mxu0 %v7650_v29  ;;  %7040 = vmatpush3.bf16.msra.mxu1 %v7666_v51  ;;  %v7677_v29 = vld [vmem:[#allocation10 + $0x48] sm:$0xff]  }
 0xb6d   :  { %7041 = vmatprep.subr.bf16.mxu1 %v7667_v53  ;;  %v1875_v53 = vmul.f32 %v8871_v45, %v6266_v50  ;;  %v7737_v50 = vld [vmem:[%s9883_s15 + $0xe0] sm:$0xff]  }
 0xb6f   :  { %2952 = vmatpush1.bf16.msra.mxu0 %v7648_v43  ;;  %v7684_v43 = vld [vmem:[%s9881_s13 + $0xa4] ss:$8 sps:$4 sm:$0xff]  }
 0xb70   :  { %2953 = vmatprep.subr.bf16.mxu0 %v7653_v31  ;;  %7042 = vmatpush3.bf16.msra.mxu1 %v7668_v54  ;;  %v7681_v31 = vld [vmem:[#allocation10 + $0x50] sm:$0xff]   ;;  %v6269_v54 = vsel %vm1897_vm9, 1.0, %v8337_v44 }
 0xb71   :  { %7043 = vmatprep.subr.bf16.mxu1 %v7669_v55  ;;  %v1876_v55 = vsel %vm1858_vm3, %v1875_v53, 0.0  ;;  %v7739_v53 = vld [vmem:[%s9883_s15 + $0xe8] sm:$0xff]  }
 0xb73   :  { %2954 = vmatpush1.bf16.msra.mxu0 %v7651_v33  ;;  %v7688_v33 = vld [vmem:[%s9881_s13 + $0xb4] ss:$8 sps:$4 sm:$0xff]  }
 0xb74   :  { %2955 = vmatprep.subr.bf16.mxu0 %v7656_v35  ;;  %7044 = vmatpush3.bf16.msra.mxu1 %v7670_v56  ;;  %v7685_v35 = vld [vmem:[#allocation10 + $0x58] sm:$0xff]   ;;  %v1900_v56 = vmul.f32 %v8871_v45, %v6269_v54  ;;  %v7740_v54 = vld [vmem:[%s9883_s15 + $0xa8] sm:$0xff]  }
 0xb75   :  { %7045 = vmatprep.subr.bf16.mxu1 %v7671_v57  ;;  %v7689_v57 = vld [vmem:[#allocation10 + $0x60] sm:$0xff]  }
 0xb77   :  { %2956 = vmatpush1.bf16.msra.mxu0 %v7654_v37  ;;  %v7686_v37 = vld [vmem:[%s9881_s13 + $0xb0] ss:$8 sps:$4 sm:$0xff]  }
 0xb78   :  { %7225 = vmatprep.subr.bf16.mxu0 %v8337_v44  ;;  %7046 = vmatpush3.bf16.msra.mxu1 %v7672_v58  ;;  %v7692_v58 = vld [vmem:[%s9881_s13 + $0xc4] ss:$8 sps:$4 sm:$0xff]  }
 0xb79   :  { %3425 = vmatprep.subr.bf16.mxu1 %v7676_v27  ;;  %v7722_v27 = vld [vmem:[%s9882_s14 + $0xd4] ss:$8 sps:$4 sm:$0xff]  }
 0xb7a   :  { %6381 = vmatmul.mubr.msk.bf16.vlgmr.msra.gmra.mrb[32].mxu0 %vm6380_vm7, %v8340_v38 }
 0xb7b   :  { %7241 = vmatprep.mubr.msk.bf16.mxu0 %vm8338_vm0, %v8337_v44  ;;  %7226 = vmatpush3.bf16.msra.mxu0 %v7673_v25  ;;  %v7717_v25 = vld [vmem:[%s9882_s14 + $0xc0] ss:$8 sps:$4 sm:$0xff]  }
 0xb7c   :  { %7227 = vmatprep.subr.bf16.mxu0 %v8337_v44 }
 0xb7f   :  { %7228 = vmatpush3.bf16.msra.mxu0 %v7677_v29  ;;  %v7720_v29 = vld [vmem:[%s9882_s14 + $0xd0] ss:$8 sps:$4 sm:$0xff]  }
 0xb80   :  { %7229 = vmatprep.subr.bf16.mxu0 %v8337_v44 }
 0xb83   :  { %7230 = vmatpush3.bf16.msra.mxu0 %v7681_v31  ;;  %v7723_v31 = vld [vmem:[%s9882_s14 + $0xe0] ss:$8 sps:$4 sm:$0xff]  }
 0xb84   :  { %7231 = vmatprep.subr.bf16.mxu0 %v8337_v44 }
 0xb87   :  { %7232 = vmatpush3.bf16.msra.mxu0 %v7685_v35  ;;  %v7726_v35 = vld [vmem:[%s9882_s14 + $0xf0] ss:$8 sps:$4 sm:$0xff]  }
 0xb88   :  { %7233 = vmatprep.subr.bf16.mxu0 %v8337_v44 }
 0xb8b   :  { %7234 = vmatpush3.bf16.msra.mxu0 %v7689_v57  ;;  %v7744_v57 = vld [vmem:[%s9883_s15 + $0xb8] sm:$0xff]  }
 0xb8c   :  { %7235 = vmatprep.subr.bf16.mxu0 %v8337_v44 }
 0xc2d   :  { %v9069_v47 = vpop.f32.mrb[28].mxu0  ;;  %v2854_v59 = vpop.f32.mrb[32].mxu1 }
 0xc2e   :  { %v7223_v61 = vpop.f32.mrb[29].mxu0  ;;  %v2856_v62 = vpop.f32.mrb[33].mxu1 }
 0xc2f   :  { %v2684_v63 = vpop.f32.mrb[30].mxu0  ;;  %v2858_v1 = vpop.f32.mrb[34].mxu1  ;;  %v7693_v61 = vld [vmem:[#allocation10 + $0x68] sm:$0xff]  }
 0xc30   :  { %v7224_v3 = vpop.f32.mrb[31].mxu0  ;;  %v2859_v4 = vpop.f32.mrb[35].mxu1  ;;  %v7694_v63 = vld [vmem:[%s9881_s13 + $0xd0] ss:$8 sps:$4 sm:$0xff]   ;;  %7236 = vmatpush3.bf16.msra.mxu0 %v7693_v61 }
 0xc31   :  { %7237 = vmatprep.subr.bf16.mxu0 %v8337_v44  ;;  %v7697_v1 = vld [vmem:[#allocation10 + $0x70] sm:$0xff]   ;;  %v7700_v3 = vld [vmem:[%s9881_s13 + $0xe4] ss:$8 sps:$4 sm:$0xff]   ;;  %v7698_v4 = vld [vmem:[%s9881_s13 + $0xe0] ss:$8 sps:$4 sm:$0xff]  }
 0xc34   :  { %7238 = vmatpush3.bf16.msra.mxu0 %v7697_v1 }
 0xc35   :  { %7239 = vmatprep.subr.bf16.mxu0 %v8337_v44 }
 0xc4d   :  { %v2975_v5 = vpop.f32.mrb[32].mxu0 }
 0xc4e   :  { %v2976_v6 = vadd.f32 1.0, %v2975_v5  ;;  %v2977_v7 = vpop.f32.mrb[33].mxu0  ;;  %v7701_v5 = vld [vmem:[#allocation10 + $0x78] sm:$0xff]  }
 0xc4f   :  { %v2978_v0 = vadd.f32 1.0, %v2977_v7  ;;  %v2979_v8 = vpop.f32.mrb[34].mxu0  ;;  %v7702_v7 = vld [vmem:[%s9881_s13 + $0xf0] ss:$8 sps:$4 sm:$0xff]   ;;  %7240 = vmatpush3.bf16.msra.mxu0 %v7701_v5 }
 0xc50   :  { %v2982_v9 = vmul.f32 %v2976_v6, %v2854_v59  ;;  %v2980_v10 = vpop.f32.mrb[35].mxu0  ;;  %v7690_v59 = vld [vmem:[%s9881_s13 + $0xc0] ss:$8 sps:$4 sm:$0xff]   ;;  %v7704_v6 = vld [vmem:[%s9881_s13 + $0xf4] ss:$8 sps:$4 sm:$0xff]  }
 0xc51   :  { %v2983_v11 = vmul.f32 %v2978_v0, %v2856_v62  ;;  %v7696_v62 = vld [vmem:[%s9881_s13 + $0xd4] ss:$8 sps:$4 sm:$0xff]   ;;  %v7707_v0 = vld [vmem:[%s9882_s14 + $0x84] ss:$8 sps:$4 sm:$0xff]  }
 0xc52   :  { %v6382_v12 = vmul.f32 -1.442695, %v2982_v9  ;;  %3546 = vmatprep.subr.bf16.mxu0 %v7707_v0 }
 0xc53   :  { %v6383_v13 = vmul.f32 -1.442695, %v2983_v11 }
 0xc54   :  { %8063 = vpow2.f32 %v6382_v12 }
 0xc55   :  { %8065 = vpow2.f32 %v6383_v13  ;;  %v7705_v13 = vld [vmem:[%s9882_s14 + $0x80] ss:$8 sps:$4 sm:$0xff]  }
 0xc5e   :  { %v8064_v14 = vpop.eup %8063 }
 0xc5f   :  { %v8066_v15 = vpop.eup %8065  ;;  %v2990_v16 = vadd.f32 1.0, %v8064_v14 }
 0xc60   :  { %v2991_v17 = vadd.f32 1.0, %v8066_v15  ;;  %v7710_v15 = vld [vmem:[%s9882_s14 + $0x94] ss:$8 sps:$4 sm:$0xff]  }
 0xc61   :  { %8067 = vrcp.f32 %v2990_v16  ;;  %v7708_v16 = vld [vmem:[%s9882_s14 + $0x90] ss:$8 sps:$4 sm:$0xff]  }
 0xc62   :  { %8069 = vrcp.f32 %v2991_v17  ;;  %v7713_v17 = vld [vmem:[%s9882_s14 + $0xa4] ss:$8 sps:$4 sm:$0xff]  }
 0xc6b   :  { %v8068_v18 = vpop.eup %8067 }
 0xc6c   :  { %v8070_v19 = vpop.eup %8069  ;;  %v2996_v21 = vmul.f32 %v8068_v18, %v2982_v9  ;;  %v7711_v18 = vld [vmem:[%s9882_s14 + $0xa0] ss:$8 sps:$4 sm:$0xff]  }
 0xc6d   :  { %v2997_v22 = vmul.f32 %v8070_v19, %v2983_v11  ;;  %v7716_v19 = vld [vmem:[%s9882_s14 + $0xb4] ss:$8 sps:$4 sm:$0xff]  }
 0xc6e   :  { %v2998_v24 = vpack.c.bf16 %v2996_v21, %v2996_v21  ;;  %v7714_v21 = vld [vmem:[%s9882_s14 + $0xb0] ss:$8 sps:$4 sm:$0xff]  }
 0xc6f   :  { %v2999_v23 = vpack.c.bf16 %v2997_v22, %v2997_v22  ;;  %v7719_v22 = vld [vmem:[%s9882_s14 + $0xc4] ss:$8 sps:$4 sm:$0xff]  }
 0xc71   :  { %3160 = vmatprep.mubr.bf16.mxu1 %v2999_v23  ;;  %v1886_v23 = vpop.xlane.xlu1 %1885 }
 0xc72   :  { %3161 = vmatmul.mubr.bf16.vlgmr.msra.gmra.mrb[36].mxu1 %v2998_v24 }
 0xc73   :  { %3457 = vmatprep.mubr.bf16.mxu1 %v8339_v60  ;;  %3426 = vmatpush1.bf16.msra.mxu1 %v7674_v26  ;;  %v1887_v26 = vmul.f32 4.0, %v1886_v23 }
 0xc74   :  { %3427 = vmatprep.subr.bf16.mxu1 %v7680_v28 }
 0xc77   :  { %3428 = vmatpush1.bf16.msra.mxu1 %v7678_v30  ;;  %v7725_v30 = vld [vmem:[%s9882_s14 + $0xe4] ss:$8 sps:$4 sm:$0xff]  }
 0xc78   :  { %3429 = vmatprep.subr.bf16.mxu1 %v7684_v43 }
 0xc7b   :  { %3430 = vmatpush1.bf16.msra.mxu1 %v7682_v32  ;;  %v7728_v32 = vld [vmem:[%s9882_s14 + $0xf4] ss:$8 sps:$4 sm:$0xff]  }
 0xc7c   :  { %3431 = vmatprep.subr.bf16.mxu1 %v7688_v33 }
 0xc7f   :  { %3432 = vmatpush1.bf16.msra.mxu1 %v7686_v37  ;;  %v7729_v37 = vld [vmem:[%s9883_s15 + $0xc0] sm:$0xff]  }
 0xc80   :  { %3433 = vmatprep.subr.bf16.mxu1 %v7692_v58 }
 0xc83   :  { %3434 = vmatpush1.bf16.msra.mxu1 %v7690_v59 }
 0xc84   :  { %3435 = vmatprep.subr.bf16.mxu1 %v7696_v62 }
 0xc87   :  { %3436 = vmatpush1.bf16.msra.mxu1 %v7694_v63 }
 0xc88   :  { %3437 = vmatprep.subr.bf16.mxu1 %v7700_v3 }
 0xc8b   :  { %3438 = vmatpush1.bf16.msra.mxu1 %v7698_v4 }
 0xc8c   :  { %3439 = vmatprep.subr.bf16.mxu1 %v7704_v6 }
 0xc8f   :  { %3440 = vmatpush1.bf16.msra.mxu1 %v7702_v7 }
 0xc90   :  { %7062 = vmatprep.subr.bf16.mxu1 %v7729_v37  ;;  %v7757_v37 = vld [vmem:[#allocation10 + $0x98] sm:$0xff]  }
 0xd45   :  { %v7047_v39 = vpop.f32.mrb[36].mxu1 }
 0xd46   :  { %v7048_v40 = vpop.f32.mrb[37].mxu1 }
 0xd47   :  { %v7049_v42 = vadd.f32 %v7048_v40, %v7047_v39  ;;  %v7050_v46 = vpop.f32.mrb[38].mxu1  ;;  %v7730_v39 = vld [vmem:[%s9883_s15 + $0x80] sm:$0xff]   ;;  %v7731_v40 = vld [vmem:[%s9883_s15 + $0xc8] sm:$0xff]  }
 0xd48   :  { %v7051_v48 = vpop.f32.mrb[39].mxu1  ;;  %v7734_v46 = vld [vmem:[%s9883_s15 + $0x90] sm:$0xff]  }
 0xd49   :  { %v3175_v49 = vmul.f32 %v7049_v42, %v6400_v41  ;;  %v7732_v41 = vld [vmem:[%s9883_s15 + $0x88] sm:$0xff]   ;;  %v7733_v42 = vld [vmem:[%s9883_s15 + $0xd0] sm:$0xff]   ;;  %v7735_v48 = vld [vmem:[%s9883_s15 + $0xd8] sm:$0xff]  }
 0xd4b   :  { %v9105_v20 = vadd.f32 %v3175_v49, %v8921_v52  ;;  %v1901_v52 = vsel %vm1858_vm3, %v1900_v56, 0.0  ;;  %v7736_v49 = vld [vmem:[%s9883_s15 + $0x98] sm:$0xff]   ;;  %v7742_v56 = vld [vmem:[%s9883_s15 + $0xb0] sm:$0xff]  }
 0xd4d   :  { %v3177_v51 = vmul.f32 %v9105_v20, %v9105_v20 }
 0xd4f   :  { %3178 = vadd.xlane.f32.xlu0 %v3177_v51  ;;  %v7738_v51 = vld [vmem:[%s9883_s15 + $0xa0] sm:$0xff]  }
 0xd53   :  { %1877 = vadd.xlane.f32.xlu0 %v1876_v55  ;;  %v7741_v55 = vld [vmem:[%s9883_s15 + $0xf0] sm:$0xff]  }
 0xd57   :  { %1902 = vadd.xlane.f32.xlu0 %v1901_v52  ;;  %v7743_v52 = vld [vmem:[%s9883_s15 + $0xf8] sm:$0xff]  }
 0xddc   :  { %v3179_v8 = vpop.xlane.xlu0 %3178 }
 0xddd   :  { %v3180_v9 = vmul.f32 0.0078125, %v3179_v8 }
 0xddf   :  { %v3181_v10 = vadd.f32 1e-06, %v3180_v9 }
 0xde0   :  { %v1878_v24 = vpop.xlane.xlu0 %1877 }
 0xde1   :  { %8071 = vrsqrt.f32 %v3181_v10  ;;  %v1888_v28 = vadd.f32 %v1887_v26, %v1878_v24  ;;  %v7746_v26 = vld [vmem:[%s9881_s13 + $0x100] ss:$8 sps:$4 sm:$0xff]  }
 0xde3   :  { %v7314_v43 = vtrunc.f32 %v1888_v28  ;;  %v7752_v28 = vld [vmem:[%s9881_s13 + $0x114] ss:$8 sps:$4 sm:$0xff]  }
 0xde5   :  { %v9190_v33 = vcvt.f32.s32 %v7314_v43  ;;  %v7756_v43 = vld [vmem:[%s9881_s13 + $0x124] ss:$8 sps:$4 sm:$0xff]  }
 0xde7   :  { %vm3292_vm10 = vcmp.eq.s32.totalorder %v8865_v34, %v9190_v33 }
 0xde8   :  { %vm6474_vm11 = vmpackc.low %vm3292_vm10, %vm3292_vm10 }
 0xdeb   :  { %v8072_v11 = vpop.eup %8071 }
 0xdec   :  { %v3183_v12 = vmul.f32 %v8072_v11, %v9105_v20 }
 0xdee   :  { %v3184_v14 = vpack.c.bf16 %v3183_v12, %v3183_v12 }
 0xdf0   :  { %7242 = vmatmul.mubr.bf16.vlgmr.msra.gmra.mrb[36].mxu0 %v3184_v14  ;;  %3458 = vmatmul.mubr.bf16.vlgmr.msra.gmra.mrb[40].mxu1 %v3184_v14 }
 0xdf1   :  { %3547 = vmatpush1.bf16.msra.mxu0 %v7705_v13  ;;  %3578 = vmatprep.mubr.bf16.mxu0 %v8339_v60 }
 0xdf2   :  { %3548 = vmatprep.subr.bf16.mxu0 %v7710_v15  ;;  %7063 = vmatpush3.bf16.msra.mxu1 %v7730_v39  ;;  %v7758_v39 = vld [vmem:[%s9881_s13 + $0x130] ss:$8 sps:$4 sm:$0xff]  }
 0xdf3   :  { %7064 = vmatprep.subr.bf16.mxu1 %v7731_v40 }
 0xdf5   :  { %3549 = vmatpush1.bf16.msra.mxu0 %v7708_v16 }
 0xdf6   :  { %3550 = vmatprep.subr.bf16.mxu0 %v7713_v17  ;;  %7065 = vmatpush3.bf16.msra.mxu1 %v7732_v41 }
 0xdf7   :  { %7066 = vmatprep.subr.bf16.mxu1 %v7733_v42  ;;  %v6527_v42 = vld [vmem:[%s9884_s16 + $0x1] ss:$0 sm:$0xff] }
 0xdf9   :  { %3551 = vmatpush1.bf16.msra.mxu0 %v7711_v18 }
 0xdfa   :  { %3552 = vmatprep.subr.bf16.mxu0 %v7716_v19  ;;  %7067 = vmatpush3.bf16.msra.mxu1 %v7734_v46 }
 0xdfb   :  { %7068 = vmatprep.subr.bf16.mxu1 %v7735_v48 }
 0xdfd   :  { %3553 = vmatpush1.bf16.msra.mxu0 %v7714_v21 }
 0xdfe   :  { %3554 = vmatprep.subr.bf16.mxu0 %v7719_v22  ;;  %7069 = vmatpush3.bf16.msra.mxu1 %v7736_v49 }
 0xdff   :  { %7070 = vmatprep.subr.bf16.mxu1 %v7737_v50 }
 0xe01   :  { %3555 = vmatpush1.bf16.msra.mxu0 %v7717_v25  ;;  %v7745_v25 = vld [vmem:[#allocation10 + $0x80] sm:$0xff]  }
 0xe02   :  { %3556 = vmatprep.subr.bf16.mxu0 %v7722_v27  ;;  %7071 = vmatpush3.bf16.msra.mxu1 %v7738_v51  ;;  %v7748_v27 = vld [vmem:[%s9881_s13 + $0x104] ss:$8 sps:$4 sm:$0xff]  }
 0xe03   :  { %7072 = vmatprep.subr.bf16.mxu1 %v7739_v53  ;;  %v6268_v53 = vsel %vm1889_vm12, 1.0, %v8337_v44 }
 0xe05   :  { %3557 = vmatpush1.bf16.msra.mxu0 %v7720_v29  ;;  %v7749_v29 = vld [vmem:[#allocation10 + $0x88] sm:$0xff]  }
 0xe06   :  { %3558 = vmatprep.subr.bf16.mxu0 %v7725_v30  ;;  %7073 = vmatpush3.bf16.msra.mxu1 %v7740_v54  ;;  %v7750_v30 = vld [vmem:[%s9881_s13 + $0x110] ss:$8 sps:$4 sm:$0xff]  }
 0xe07   :  { %7074 = vmatprep.subr.bf16.mxu1 %v7741_v55  ;;  %v1892_v55 = vmul.f32 %v8871_v45, %v6268_v53  ;;  %v7811_v53 = vld [vmem:[%s9883_s15 + $0x168] sm:$0xff]  }
 0xe09   :  { %3559 = vmatpush1.bf16.msra.mxu0 %v7723_v31  ;;  %v7753_v31 = vld [vmem:[#allocation10 + $0x90] sm:$0xff]  }
 0xe0a   :  { %3560 = vmatprep.subr.bf16.mxu0 %v7728_v32  ;;  %7075 = vmatpush3.bf16.msra.mxu1 %v7742_v56  ;;  %v7754_v32 = vld [vmem:[%s9881_s13 + $0x120] ss:$8 sps:$4 sm:$0xff]   ;;  %v1893_v56 = vsel %vm1858_vm3, %v1892_v55, 0.0  ;;  %v7813_v55 = vld [vmem:[%s9883_s15 + $0x170] sm:$0xff]  }
 0xe0b   :  { %7076 = vmatprep.subr.bf16.mxu1 %v7743_v52  ;;  %v7761_v52 = vld [vmem:[#allocation10 + $0xa0] sm:$0xff]  }
 0xe0d   :  { %3561 = vmatpush1.bf16.msra.mxu0 %v7726_v35  ;;  %v7760_v35 = vld [vmem:[%s9881_s13 + $0x134] ss:$8 sps:$4 sm:$0xff]  }
 0xe0e   :  { %7245 = vmatprep.subr.bf16.mxu0 %v8337_v44  ;;  %7077 = vmatpush3.bf16.msra.mxu1 %v7744_v57  ;;  %v7764_v57 = vld [vmem:[%s9881_s13 + $0x144] ss:$8 sps:$4 sm:$0xff]  }
 0xe0f   :  { %4032 = vmatprep.subr.bf16.mxu1 %v7748_v27 }
 0xe10   :  { %6475 = vmatmul.mubr.msk.bf16.vlgmr.msra.gmra.mrb[40].mxu0 %vm6474_vm11, %v8340_v38 }
 0xe11   :  { %7261 = vmatprep.mubr.msk.bf16.mxu0 %vm8338_vm0, %v8337_v44  ;;  %7246 = vmatpush3.bf16.msra.mxu0 %v7745_v25 }
 0xe12   :  { %7247 = vmatprep.subr.bf16.mxu0 %v8337_v44 }
 0xe15   :  { %7248 = vmatpush3.bf16.msra.mxu0 %v7749_v29  ;;  %v7797_v29 = vld [vmem:[%s9882_s14 + $0x164] ss:$8 sps:$4 sm:$0xff]  }
 0xe16   :  { %7249 = vmatprep.subr.bf16.mxu0 %v8337_v44 }
 0xe19   :  { %7250 = vmatpush3.bf16.msra.mxu0 %v7753_v31  ;;  %v7800_v31 = vld [vmem:[%s9882_s14 + $0x174] ss:$8 sps:$4 sm:$0xff]  }
 0xe1a   :  { %7251 = vmatprep.subr.bf16.mxu0 %v8337_v44 }
 0xe1d   :  { %7252 = vmatpush3.bf16.msra.mxu0 %v7757_v37  ;;  %v7801_v37 = vld [vmem:[%s9883_s15 + $0x140] sm:$0xff]  }
 0xe1e   :  { %7253 = vmatprep.subr.bf16.mxu0 %v8337_v44 }
 0xe21   :  { %7254 = vmatpush3.bf16.msra.mxu0 %v7761_v52  ;;  %v7815_v52 = vld [vmem:[%s9883_s15 + $0x178] sm:$0xff]  }
 0xe22   :  { %7255 = vmatprep.subr.bf16.mxu0 %v8337_v44 }
 0xec3   :  { %v9253_v58 = vpop.f32.mrb[36].mxu0  ;;  %v3459_v59 = vpop.f32.mrb[40].mxu1 }
 0xec4   :  { %v7243_v61 = vpop.f32.mrb[37].mxu0  ;;  %v3461_v62 = vpop.f32.mrb[41].mxu1 }
 0xec5   :  { %v3287_v63 = vpop.f32.mrb[38].mxu0  ;;  %v3463_v1 = vpop.f32.mrb[42].mxu1  ;;  %v7768_v61 = vld [vmem:[%s9881_s13 + $0x154] ss:$8 sps:$4 sm:$0xff]  }
 0xec6   :  { %v7244_v3 = vpop.f32.mrb[39].mxu0  ;;  %v3464_v4 = vpop.f32.mrb[43].mxu1  ;;  %v7769_v63 = vld [vmem:[#allocation10 + $0xb0] sm:$0xff]   ;;  %v7772_v1 = vld [vmem:[%s9881_s13 + $0x164] ss:$8 sps:$4 sm:$0xff]  }
 0xec7   :  { %v7770_v3 = vld [vmem:[%s9881_s13 + $0x160] ss:$8 sps:$4 sm:$0xff]   ;;  %v7773_v4 = vld [vmem:[#allocation10 + $0xb8] sm:$0xff]  }
 0xee3   :  { %v3580_v5 = vpop.f32.mrb[40].mxu0 }
 0xee4   :  { %v3581_v6 = vadd.f32 1.0, %v3580_v5  ;;  %v3582_v7 = vpop.f32.mrb[41].mxu0  ;;  %v7776_v5 = vld [vmem:[%s9881_s13 + $0x174] ss:$8 sps:$4 sm:$0xff]  }
 0xee5   :  { %v3583_v0 = vadd.f32 1.0, %v3582_v7  ;;  %v3584_v8 = vpop.f32.mrb[42].mxu0  ;;  %v7779_v7 = vld [vmem:[%s9882_s14 + $0x104] ss:$8 sps:$4 sm:$0xff]  }
 0xee6   :  { %v3587_v9 = vmul.f32 %v3581_v6, %v3459_v59  ;;  %v3585_v10 = vpop.f32.mrb[43].mxu0  ;;  %v7765_v59 = vld [vmem:[#allocation10 + $0xa8] sm:$0xff]   ;;  %v7774_v6 = vld [vmem:[%s9881_s13 + $0x170] ss:$8 sps:$4 sm:$0xff]  }
 0xee7   :  { %v3588_v11 = vmul.f32 %v3583_v0, %v3461_v62  ;;  %v7766_v62 = vld [vmem:[%s9881_s13 + $0x150] ss:$8 sps:$4 sm:$0xff]   ;;  %7256 = vmatpush3.bf16.msra.mxu0 %v7765_v59 }
 0xee8   :  { %v6476_v12 = vmul.f32 -1.442695, %v3587_v9  ;;  %7257 = vmatprep.subr.bf16.mxu0 %v8337_v44 }
 0xee9   :  { %v6477_v13 = vmul.f32 -1.442695, %v3588_v11 }
 0xeea   :  { %8073 = vpow2.f32 %v6476_v12  ;;  %v7777_v12 = vld [vmem:[%s9882_s14 + $0x100] ss:$8 sps:$4 sm:$0xff]  }
 0xeeb   :  { %8075 = vpow2.f32 %v6477_v13  ;;  %7258 = vmatpush3.bf16.msra.mxu0 %v7769_v63 }
 0xeec   :  { %7259 = vmatprep.subr.bf16.mxu0 %v8337_v44 }
 0xeef   :  { %7260 = vmatpush3.bf16.msra.mxu0 %v7773_v4 }
 0xef0   :  { %4153 = vmatprep.subr.bf16.mxu0 %v7779_v7 }
 0xef4   :  { %v8074_v14 = vpop.eup %8073 }
 0xef5   :  { %v8076_v15 = vpop.eup %8075  ;;  %v3595_v16 = vadd.f32 1.0, %v8074_v14  ;;  %v7782_v14 = vld [vmem:[%s9882_s14 + $0x114] ss:$8 sps:$4 sm:$0xff]  }
 0xef6   :  { %v3596_v17 = vadd.f32 1.0, %v8076_v15  ;;  %v7780_v15 = vld [vmem:[%s9882_s14 + $0x110] ss:$8 sps:$4 sm:$0xff]  }
 0xef7   :  { %8077 = vrcp.f32 %v3595_v16  ;;  %v7785_v16 = vld [vmem:[%s9882_s14 + $0x124] ss:$8 sps:$4 sm:$0xff]  }
 0xef8   :  { %8079 = vrcp.f32 %v3596_v17  ;;  %v7783_v17 = vld [vmem:[%s9882_s14 + $0x120] ss:$8 sps:$4 sm:$0xff]  }
 0xf01   :  { %v8078_v18 = vpop.eup %8077 }
 0xf02   :  { %v8080_v19 = vpop.eup %8079  ;;  %v3601_v21 = vmul.f32 %v8078_v18, %v3587_v9  ;;  %v7788_v18 = vld [vmem:[%s9882_s14 + $0x134] ss:$8 sps:$4 sm:$0xff]  }
 0xf03   :  { %v3602_v22 = vmul.f32 %v8080_v19, %v3588_v11  ;;  %v7786_v19 = vld [vmem:[%s9882_s14 + $0x130] ss:$8 sps:$4 sm:$0xff]  }
 0xf04   :  { %v3603_v24 = vpack.c.bf16 %v3601_v21, %v3601_v21  ;;  %v7791_v21 = vld [vmem:[%s9882_s14 + $0x144] ss:$8 sps:$4 sm:$0xff]  }
 0xf05   :  { %v3604_v23 = vpack.c.bf16 %v3602_v22, %v3602_v22  ;;  %v1903_v22 = vpop.xlane.xlu0 %1902 }
 0xf06   :  { %v1904_v25 = vmul.f32 4.0, %v1903_v22  ;;  %v1850_v22 = vmul.f32 0.6666667, %v8871_v45 }
 0xf07   :  { %3766 = vmatprep.mubr.bf16.mxu1 %v3604_v23 }
 0xf08   :  { %3767 = vmatmul.mubr.bf16.vlgmr.msra.gmra.mrb[44].mxu1 %v3603_v24  ;;  %v7789_v24 = vld [vmem:[%s9882_s14 + $0x140] ss:$8 sps:$4 sm:$0xff]  }
 0xf09   :  { %4064 = vmatprep.mubr.bf16.mxu1 %v8339_v60  ;;  %4033 = vmatpush1.bf16.msra.mxu1 %v7746_v26  ;;  %v7794_v26 = vld [vmem:[%s9882_s14 + $0x154] ss:$8 sps:$4 sm:$0xff]  }
 0xf0a   :  { %4034 = vmatprep.subr.bf16.mxu1 %v7752_v28  ;;  %v7792_v28 = vld [vmem:[%s9882_s14 + $0x150] ss:$8 sps:$4 sm:$0xff]  }
 0xf0d   :  { %4035 = vmatpush1.bf16.msra.mxu1 %v7750_v30 }
 0xf0e   :  { %4036 = vmatprep.subr.bf16.mxu1 %v7756_v43  ;;  %v7795_v43 = vld [vmem:[%s9882_s14 + $0x160] ss:$8 sps:$4 sm:$0xff]  }
 0xf11   :  { %4037 = vmatpush1.bf16.msra.mxu1 %v7754_v32 }
 0xf12   :  { %4038 = vmatprep.subr.bf16.mxu1 %v7760_v35  ;;  %v7798_v35 = vld [vmem:[%s9882_s14 + $0x170] ss:$8 sps:$4 sm:$0xff]  }
 0xf15   :  { %4039 = vmatpush1.bf16.msra.mxu1 %v7758_v39  ;;  %v7802_v39 = vld [vmem:[%s9883_s15 + $0x100] sm:$0xff]  }
 0xf16   :  { %4040 = vmatprep.subr.bf16.mxu1 %v7764_v57  ;;  %v7816_v57 = vld [vmem:[%s9883_s15 + $0x138] sm:$0xff]  }
 0xfdb   :  { %v7078_v40 = vpop.f32.mrb[44].mxu1 }
 0xfdc   :  { %v7079_v41 = vpop.f32.mrb[45].mxu1 }
 0xfdd   :  { %v7080_v46 = vadd.f32 %v7079_v41, %v7078_v40  ;;  %v7081_v48 = vpop.f32.mrb[46].mxu1  ;;  %v7803_v40 = vld [vmem:[%s9883_s15 + $0x148] sm:$0xff]   ;;  %v7805_v41 = vld [vmem:[%s9883_s15 + $0x150] sm:$0xff]  }
 0xfde   :  { %v7082_v49 = vpop.f32.mrb[47].mxu1  ;;  %v7808_v48 = vld [vmem:[%s9883_s15 + $0x118] sm:$0xff]  }
 0xfdf   :  { %v3782_v50 = vmul.f32 %v7080_v46, %v6527_v42  ;;  %v7806_v42 = vld [vmem:[%s9883_s15 + $0x110] sm:$0xff]   ;;  %v7807_v46 = vld [vmem:[%s9883_s15 + $0x158] sm:$0xff]   ;;  %v7809_v49 = vld [vmem:[%s9883_s15 + $0x160] sm:$0xff]  }
 0xfe1   :  { %v9289_v51 = vadd.f32 %v3782_v50, %v9105_v20  ;;  %v7762_v20 = vld [vmem:[%s9881_s13 + $0x140] ss:$8 sps:$4 sm:$0xff]  }
 0xfe2   :  { %4041 = vmatpush1.bf16.msra.mxu1 %v7762_v20  ;;  %v7810_v50 = vld [vmem:[%s9883_s15 + $0x120] sm:$0xff]  }
 0xfe3   :  { %v3784_v54 = vmul.f32 %v9289_v51, %v9289_v51  ;;  %4042 = vmatprep.subr.bf16.mxu1 %v7768_v61 }
 0xfe5   :  { %3785 = vadd.xlane.f32.xlu1 %v3784_v54  ;;  %v7812_v54 = vld [vmem:[%s9883_s15 + $0x128] sm:$0xff]  }
 0xfe6   :  { %4043 = vmatpush1.bf16.msra.mxu1 %v7766_v62 }
 0xfe7   :  { %4044 = vmatprep.subr.bf16.mxu1 %v7772_v1 }
 0xfe9   :  { %1894 = vadd.xlane.f32.xlu1 %v1893_v56  ;;  %v7814_v56 = vld [vmem:[%s9883_s15 + $0x130] sm:$0xff]  }
 0xfea   :  { %4045 = vmatpush1.bf16.msra.mxu1 %v7770_v3 }
 0xfeb   :  { %4046 = vmatprep.subr.bf16.mxu1 %v7776_v5 }
 0xfee   :  { %4047 = vmatpush1.bf16.msra.mxu1 %v7774_v6 }
 0xfef   :  { %7093 = vmatprep.subr.bf16.mxu1 %v7801_v37  ;;  %v7824_v37 = vld [vmem:[#allocation12 + $0x14] ss:$8 sps:$4 sm:$0xff]  }
0x1072   :  { %v3786_v0 = vpop.xlane.xlu1 %3785 }
0x1073   :  { %v3787_v8 = vmul.f32 0.0078125, %v3786_v0 }
0x1075   :  { %v3788_v9 = vadd.f32 1e-06, %v3787_v8 }
0x1076   :  { %v1895_v23 = vpop.xlane.xlu1 %1894 }
0x1077   :  { %8081 = vrsqrt.f32 %v3788_v9  ;;  %v1905_v27 = vadd.f32 %v1904_v25, %v1895_v23 }
0x1079   :  { %v7316_v30 = vtrunc.f32 %v1905_v27 }
0x107b   :  { %v9370_v32 = vcvt.f32.s32 %v7316_v30 }
0x107d   :  { %vm3899_vm13 = vcmp.eq.s32.totalorder %v8865_v34, %v9370_v32  ;;  %v7940_v32 = vld [vmem:[%s9889_s21 + $0x88] sm:$0xff]  }
0x107e   :  { %vm6601_vm14 = vmpackc.low %vm3899_vm13, %vm3899_vm13 }
0x1081   :  { %v8082_v10 = vpop.eup %8081 }
0x1082   :  { %v3790_v11 = vmul.f32 %v8082_v10, %v9289_v51 }
0x1084   :  { %v3791_v13 = vpack.c.bf16 %v3790_v11, %v3790_v11 }
0x1086   :  { %7262 = vmatmul.mubr.bf16.vlgmr.msra.gmra.mrb[44].mxu0 %v3791_v13  ;;  %4065 = vmatmul.mubr.bf16.vlgmr.msra.gmra.mrb[48].mxu1 %v3791_v13 }
0x1087   :  { %4154 = vmatpush1.bf16.msra.mxu0 %v7777_v12  ;;  %4185 = vmatprep.mubr.bf16.mxu0 %v8339_v60 }
0x1088   :  { %4155 = vmatprep.subr.bf16.mxu0 %v7782_v14  ;;  %7094 = vmatpush3.bf16.msra.mxu1 %v7802_v39  ;;  %v7821_v39 = vld [vmem:[#allocation10 + $0xc8] sm:$0xff]  }
0x1089   :  { %7095 = vmatprep.subr.bf16.mxu1 %v7803_v40  ;;  %v7822_v40 = vld [vmem:[#allocation12 + $0x10] ss:$8 sps:$4 sm:$0xff]  }
0x108b   :  { %4156 = vmatpush1.bf16.msra.mxu0 %v7780_v15 }
0x108c   :  { %4157 = vmatprep.subr.bf16.mxu0 %v7785_v16 }
0x108f   :  { %4158 = vmatpush1.bf16.msra.mxu0 %v7783_v17 }
0x1090   :  { %4159 = vmatprep.subr.bf16.mxu0 %v7788_v18 }
0x1093   :  { %4160 = vmatpush1.bf16.msra.mxu0 %v7786_v19 }
0x1094   :  { %4161 = vmatprep.subr.bf16.mxu0 %v7791_v21 }
0x1097   :  { %4162 = vmatpush1.bf16.msra.mxu0 %v7789_v24  ;;  %v4528_v24 = vld [vmem:[%s9885_s17] sm:$0xf] }
0x1098   :  { %4163 = vmatprep.subr.bf16.mxu0 %v7794_v26  ;;  %v4541_v27 = vsel %vm4539_vm15, %v4528_v24, 0 }
0x109b   :  { %4164 = vmatpush1.bf16.msra.mxu0 %v7792_v28  ;;  %v6263_v28 = vadd.f32 -1.0, %v1850_v22 }
0x109c   :  { %4165 = vmatprep.subr.bf16.mxu0 %v7797_v29 }
0x109d   :  { %v4526_v29 = vmul.f32 1.732, %v6263_v28 }
0x109f   :  { %4166 = vmatpush1.bf16.msra.mxu0 %v7795_v43  ;;  %v4527_v30 = vpack.c.bf16 %v4526_v29, %v4526_v29  ;;  %v7817_v43 = vld [vmem:[#allocation10 + $0xc0] sm:$0xff]  }
0x10a0   :  { %4167 = vmatprep.subr.bf16.mxu0 %v7800_v31  ;;  %v7818_v31 = vld [vmem:[#allocation12] ss:$8 sps:$4 sm:$0xff]  }
0x10a3   :  { %4168 = vmatpush1.bf16.msra.mxu0 %v7798_v35  ;;  %v7820_v35 = vld [vmem:[#allocation12 + $0x4] ss:$8 sps:$4 sm:$0xff]  }
0x10a4   :  { %7265 = vmatprep.subr.bf16.mxu0 %v8337_v44 }
0x10a6   :  { %6602 = vmatmul.mubr.msk.bf16.vlgmr.msra.gmra.mrb[48].mxu0 %vm6601_vm14, %v8340_v38  ;;  %v7804_v38 = vld [vmem:[%s9883_s15 + $0x108] sm:$0xff]  }
0x10a7   :  { %7281 = vmatprep.mubr.msk.bf16.mxu0 %vm8338_vm0, %v8337_v44  ;;  %7096 = vmatpush3.bf16.msra.mxu1 %v7804_v38  ;;  %v7828_v38 = vld [vmem:[#allocation12 + $0x24] ss:$8 sps:$4 sm:$0xff]  }
0x10a8   :  { %7097 = vmatprep.subr.bf16.mxu1 %v7805_v41  ;;  %7266 = vmatpush3.bf16.msra.mxu0 %v7817_v43  ;;  %v7825_v41 = vld [vmem:[#allocation10 + $0xd0] sm:$0xff]  }
0x10a9   :  { %7267 = vmatprep.subr.bf16.mxu0 %v8337_v44 }
0x10ab   :  { %7098 = vmatpush3.bf16.msra.mxu1 %v7806_v42  ;;  %v7826_v42 = vld [vmem:[#allocation12 + $0x20] ss:$8 sps:$4 sm:$0xff]  }
0x10ac   :  { %7099 = vmatprep.subr.bf16.mxu1 %v7807_v46  ;;  %7268 = vmatpush3.bf16.msra.mxu0 %v7821_v39  ;;  %v7829_v46 = vld [vmem:[#allocation10 + $0xd8] sm:$0xff]   ;;  %v7855_v39 = vld [vmem:[#allocation13 + $0x20] ss:$8 sps:$4 sm:$0xff]  }
0x10ad   :  { %7269 = vmatprep.subr.bf16.mxu0 %v8337_v44 }
0x10af   :  { %7100 = vmatpush3.bf16.msra.mxu1 %v7808_v48 }
0x10b0   :  { %7101 = vmatprep.subr.bf16.mxu1 %v7809_v49  ;;  %7270 = vmatpush3.bf16.msra.mxu0 %v7825_v41  ;;  %v7863_v41 = vld [vmem:[#allocation13 + $0x44] ss:$8 sps:$4 sm:$0xff]  }
0x10b1   :  { %7271 = vmatprep.subr.bf16.mxu0 %v8337_v44 }
0x10b3   :  { %7102 = vmatpush3.bf16.msra.mxu1 %v7810_v50  ;;  %v6654_v50 = vld [vmem:[%s9884_s16 + $0x2] ss:$0 sm:$0xff]  ;;  %s9932_s16 = sld [smem:[#allocation31_spill]] }
0x10b4   :  { %7103 = vmatprep.subr.bf16.mxu1 %v7811_v53  ;;  %7272 = vmatpush3.bf16.msra.mxu0 %v7829_v46  ;;  %v7866_v46 = vld [vmem:[#allocation13 + $0x54] ss:$8 sps:$4 sm:$0xff]  }
0x10b5   :  { %7273 = vmatprep.subr.bf16.mxu0 %v8337_v44 }
0x10b7   :  { %7104 = vmatpush3.bf16.msra.mxu1 %v7812_v54 }
0x10b8   :  { %7105 = vmatprep.subr.bf16.mxu1 %v7813_v55 }
0x10bb   :  { %7106 = vmatpush3.bf16.msra.mxu1 %v7814_v56 }
0x10bc   :  { %7107 = vmatprep.subr.bf16.mxu1 %v7815_v52  ;;  %v6664_v52 = vld [vmem:[%s9886_s18] ss:$0 sm:$0xff] }
0x10bf   :  { %7108 = vmatpush3.bf16.msra.mxu1 %v7816_v57 }
0x10c0   :  { %7285 = vmatprep.subr.bf16.mxu1 %v8337_v44 }
0x1159   :  { %v9434_v20 = vpop.f32.mrb[44].mxu0  ;;  %v4066_v59 = vpop.f32.mrb[48].mxu1 }
0x115a   :  { %v7263_v61 = vpop.f32.mrb[45].mxu0  ;;  %v4068_v62 = vpop.f32.mrb[49].mxu1 }
0x115b   :  { %v3894_v63 = vpop.f32.mrb[46].mxu0  ;;  %v4070_v1 = vpop.f32.mrb[50].mxu1 }
0x115c   :  { %v7264_v3 = vpop.f32.mrb[47].mxu0  ;;  %v4071_v4 = vpop.f32.mrb[51].mxu1 }
0x1179   :  { %v4187_v5 = vpop.f32.mrb[48].mxu0 }
0x117a   :  { %v4188_v6 = vadd.f32 1.0, %v4187_v5  ;;  %v4189_v7 = vpop.f32.mrb[49].mxu0  ;;  %v7832_v5 = vld [vmem:[#allocation12 + $0x34] ss:$8 sps:$4 sm:$0xff]  }
0x117b   :  { %v4190_v0 = vadd.f32 1.0, %v4189_v7  ;;  %v4191_v8 = vpop.f32.mrb[50].mxu0  ;;  %v7833_v7 = vld [vmem:[#allocation10 + $0xe0] sm:$0xff]  }
0x117c   :  { %v4194_v9 = vmul.f32 %v4188_v6, %v4066_v59  ;;  %v4192_v10 = vpop.f32.mrb[51].mxu0  ;;  %v7830_v6 = vld [vmem:[#allocation12 + $0x30] ss:$8 sps:$4 sm:$0xff]   ;;  %7274 = vmatpush3.bf16.msra.mxu0 %v7833_v7  ;;  %v7837_v8 = vld [vmem:[#allocation10 + $0xe8] sm:$0xff]  }
0x117d   :  { %v4195_v11 = vmul.f32 %v4190_v0, %v4068_v62  ;;  %7275 = vmatprep.subr.bf16.mxu0 %v8337_v44  ;;  %v7834_v0 = vld [vmem:[#allocation12 + $0x40] ss:$8 sps:$4 sm:$0xff]   ;;  %v7840_v10 = vld [vmem:[#allocation12 + $0x54] ss:$8 sps:$4 sm:$0xff]  }
0x117e   :  { %v6603_v12 = vmul.f32 -1.442695, %v4194_v9  ;;  %v7885_v7 = vld [vmem:[%s9889_s21 + $0x70] sm:$0xff]  }
0x117f   :  { %v6604_v13 = vmul.f32 -1.442695, %v4195_v11 }
0x1180   :  { %8083 = vpow2.f32 %v6603_v12  ;;  %7276 = vmatpush3.bf16.msra.mxu0 %v7837_v8  ;;  %v7844_v12 = vld [vmem:[#allocation12 + $0x64] ss:$8 sps:$4 sm:$0xff]   ;;  %v7888_v8 = vld [vmem:[%s9889_s21 + $0x38] sm:$0xff]  }
0x1181   :  { %8085 = vpow2.f32 %v6604_v13  ;;  %7277 = vmatprep.subr.bf16.mxu0 %v8337_v44  ;;  %v7842_v13 = vld [vmem:[#allocation12 + $0x60] ss:$8 sps:$4 sm:$0xff]  }
0x118a   :  { %v8084_v14 = vpop.eup %8083 }
0x118b   :  { %v8086_v15 = vpop.eup %8085  ;;  %v4202_v16 = vadd.f32 1.0, %v8084_v14  ;;  %v7845_v14 = vld [vmem:[#allocation10 + $0xf8] sm:$0xff]  }
0x118c   :  { %v4203_v17 = vadd.f32 1.0, %v8086_v15  ;;  %v7848_v15 = vld [vmem:[#allocation12 + $0x74] ss:$8 sps:$4 sm:$0xff]  }
0x118d   :  { %8087 = vrcp.f32 %v4202_v16  ;;  %v7851_v16 = vld [vmem:[#allocation13 + $0x4] ss:$8 sps:$4 sm:$0xff]  }
0x118e   :  { %8089 = vrcp.f32 %v4203_v17  ;;  %v7846_v17 = vld [vmem:[#allocation12 + $0x70] ss:$8 sps:$4 sm:$0xff]  }
0x1197   :  { %v8088_v18 = vpop.eup %8087 }
0x1198   :  { %v8090_v19 = vpop.eup %8089  ;;  %v4208_v21 = vmul.f32 %v8088_v18, %v4194_v9  ;;  %v7838_v9 = vld [vmem:[#allocation12 + $0x50] ss:$8 sps:$4 sm:$0xff]  }
0x1199   :  { %v4209_v23 = vmul.f32 %v8090_v19, %v4195_v11  ;;  %v7841_v11 = vld [vmem:[#allocation10 + $0xf0] sm:$0xff]  }
0x119a   :  { %v4210_v26 = vpack.c.bf16 %v4208_v21, %v4208_v21  ;;  %7278 = vmatpush3.bf16.msra.mxu0 %v7841_v11 }
0x119b   :  { %v4211_v25 = vpack.c.bf16 %v4209_v23, %v4209_v23  ;;  %7279 = vmatprep.subr.bf16.mxu0 %v8337_v44 }
0x119d   :  { %4373 = vmatprep.mubr.bf16.mxu1 %v4211_v25 }
0x119e   :  { %4374 = vmatmul.mubr.bf16.vlgmr.msra.gmra.mrb[52].mxu1 %v4210_v26  ;;  %7280 = vmatpush3.bf16.msra.mxu0 %v7845_v14 }
0x119f   :  { %7286 = vmatpush3.bf16.msra.mxu1 %v4541_v27  ;;  %7287 = vmatprep.mubr.msk.bf16.mxu1 %vm8338_vm0, %v8337_v44  ;;  %v7849_v27 = vld [vmem:[#allocation13] ss:$8 sps:$4 sm:$0xff]  }
0x11a0   :  { %4736 = vmatprep.subr.bf16.mxu1 %v7820_v35  ;;  %4857 = vmatprep.subr.bf16.mxu0 %v7851_v16  ;;  %v7852_v35 = vld [vmem:[#allocation13 + $0x10] ss:$8 sps:$4 sm:$0xff]  }
0x11a6   :  { %7288 = vmatmul.mubr.msk.bf16.vlgmr.msra.gmra.mrb[56].mxu1 %vm1858_vm3, %v4527_v30  ;;  %v7854_v30 = vld [vmem:[#allocation13 + $0x14] ss:$8 sps:$4 sm:$0xff]  }
0x11a7   :  { %4768 = vmatprep.mubr.bf16.mxu1 %v8339_v60  ;;  %4737 = vmatpush1.bf16.msra.mxu1 %v7818_v31 }
0x11a8   :  { %4738 = vmatprep.subr.bf16.mxu1 %v7824_v37  ;;  %v7857_v37 = vld [vmem:[#allocation13 + $0x24] ss:$8 sps:$4 sm:$0xff]  }
0x11ab   :  { %4739 = vmatpush1.bf16.msra.mxu1 %v7822_v40  ;;  %v7860_v40 = vld [vmem:[#allocation13 + $0x34] ss:$8 sps:$4 sm:$0xff]  }
0x11ac   :  { %4740 = vmatprep.subr.bf16.mxu1 %v7828_v38  ;;  %v7858_v38 = vld [vmem:[#allocation13 + $0x30] ss:$8 sps:$4 sm:$0xff]  }
0x11af   :  { %4741 = vmatpush1.bf16.msra.mxu1 %v7826_v42  ;;  %v7861_v42 = vld [vmem:[#allocation13 + $0x40] ss:$8 sps:$4 sm:$0xff]  }
0x11b0   :  { %4742 = vmatprep.subr.bf16.mxu1 %v7832_v5  ;;  %v7883_v5 = vld [vmem:[%s9889_s21 + $0x68] sm:$0xff]  }
0x11b3   :  { %4743 = vmatpush1.bf16.msra.mxu1 %v7830_v6  ;;  %v7884_v6 = vld [vmem:[%s9889_s21 + $0x28] sm:$0xff]  }
0x1271   :  { %v7109_v48 = vpop.f32.mrb[52].mxu1 }
0x1272   :  { %v7110_v49 = vpop.f32.mrb[53].mxu1 }
0x1273   :  { %v7111_v53 = vadd.f32 %v7110_v49, %v7109_v48  ;;  %v7112_v54 = vpop.f32.mrb[54].mxu1  ;;  %v7864_v48 = vld [vmem:[#allocation13 + $0x50] ss:$8 sps:$4 sm:$0xff]   ;;  %v7869_v49 = vld [vmem:[#allocation13 + $0x64] ss:$8 sps:$4 sm:$0xff]  }
0x1274   :  { %v7113_v55 = vpop.f32.mrb[55].mxu1  ;;  %v7870_v54 = vld [vmem:[#allocation13 + $0x70] ss:$8 sps:$4 sm:$0xff]  }
0x1275   :  { %v4389_v56 = vmul.f32 %v7111_v53, %v6654_v50  ;;  %v7867_v50 = vld [vmem:[#allocation13 + $0x60] ss:$8 sps:$4 sm:$0xff]   ;;  %v7872_v53 = vld [vmem:[#allocation13 + $0x74] ss:$8 sps:$4 sm:$0xff]  }
0x1276   :  { %v7873_v55 = vld [vmem:[%s9889_s21 + $0x40] sm:$0xff]  }
0x1277   :  { %v4390_v57 = vadd.f32 %v4389_v56, %v9289_v51  ;;  %v7836_v51 = vld [vmem:[#allocation12 + $0x44] ss:$8 sps:$4 sm:$0xff]  }
0x1278   :  { %4744 = vmatprep.subr.bf16.mxu1 %v7836_v51  ;;  %v7874_v56 = vld [vmem:[%s9889_s21] sm:$0xff]   ;;  %v7886_v51 = vld [vmem:[%s9889_s21 + $0x30] sm:$0xff]  }
0x1279   :  { %v4577_v59 = vpop.f32.mrb[56].mxu1  ;;  %v4391_v61 = vmul.f32 %v4390_v57, %v4390_v57  ;;  %4745 = vmatpush1.bf16.msra.mxu1 %v7834_v0  ;;  %v7887_v0 = vld [vmem:[%s9889_s21 + $0x78] sm:$0xff]  }
0x127a   :  { %v9455_v62 = vadd.f32 %v6664_v52, %v4577_v59  ;;  %v7289_v63 = vpop.f32.mrb[57].mxu1  ;;  %4746 = vmatprep.subr.bf16.mxu1 %v7840_v10  ;;  %v7875_v52 = vld [vmem:[%s9889_s21 + $0x48] sm:$0xff]   ;;  %v7877_v59 = vld [vmem:[%s9889_s21 + $0x50] sm:$0xff]  }
0x127b   :  { %v4580_v1 = vpop.f32.mrb[58].mxu1  ;;  %4392 = vadd.xlane.f32.xlu0 %v4391_v61  ;;  %v7878_v61 = vld [vmem:[%s9889_s21 + $0x10] sm:$0xff]   ;;  %v7879_v63 = vld [vmem:[%s9889_s21 + $0x58] sm:$0xff]  }
0x127c   :  { %v7290_v3 = vpop.f32.mrb[59].mxu1  ;;  %v4648_v4 = vmul.f32 %v9455_v62, %v9455_v62  ;;  %v7880_v1 = vld [vmem:[%s9889_s21 + $0x18] sm:$0xff]  }
0x127d   :  { %4747 = vmatpush1.bf16.msra.mxu1 %v7838_v9  ;;  %v7881_v3 = vld [vmem:[%s9889_s21 + $0x60] sm:$0xff]  }
0x127e   :  { %4649 = vadd.xlane.f32.xlu1 %v4648_v4  ;;  %4748 = vmatprep.subr.bf16.mxu1 %v7844_v12  ;;  %v7882_v4 = vld [vmem:[%s9889_s21 + $0x20] sm:$0xff]  }
0x127f   :  { %v7891_v9 = vld [vmem:[#allocation13 + $0x84] ss:$8 sps:$4 sm:$0xff]  }
0x1281   :  { %4749 = vmatpush1.bf16.msra.mxu1 %v7842_v13 }
0x1282   :  { %4750 = vmatprep.subr.bf16.mxu1 %v7848_v15 }
0x1285   :  { %4751 = vmatpush1.bf16.msra.mxu1 %v7846_v17 }
0x1286   :  { %7126 = vmatprep.subr.bf16.mxu1 %v7873_v55  ;;  %v7903_v55 = vld [vmem:[#allocation13 + $0xc4] ss:$8 sps:$4 sm:$0xff]  }
0x1308   :  { %v4393_v18 = vpop.xlane.xlu0 %4392 }
0x1309   :  { %v4394_v19 = vmul.f32 0.0078125, %v4393_v18 }
0x130b   :  { %v4395_v21 = vadd.f32 1e-06, %v4394_v19  ;;  %v4650_v22 = vpop.xlane.xlu1 %4649 }
0x130c   :  { %v4651_v23 = vmul.f32 0.0078125, %v4650_v22 }
0x130d   :  { %8091 = vrsqrt.f32 %v4395_v21 }
0x130e   :  { %v4652_v24 = vadd.f32 1e-06, %v4651_v23 }
0x1310   :  { %8093 = vrsqrt.f32 %v4652_v24 }
0x1317   :  { %v8092_v25 = vpop.eup %8091 }
0x1318   :  { %v4397_v26 = vmul.f32 %v8092_v25, %v4390_v57  ;;  %v7876_v57 = vld [vmem:[%s9889_s21 + $0x8] sm:$0xff]  }
0x131a   :  { %v8094_v28 = vpop.eup %8093  ;;  %v4398_v29 = vpack.c.bf16 %v4397_v26, %v4397_v26 }
0x131b   :  { %v4654_v43 = vmul.f32 %v8094_v28, %v9455_v62 }
0x131c   :  { %7282 = vmatmul.mubr.bf16.vlgmr.msra.gmra.mrb[52].mxu0 %v4398_v29 }
0x131d   :  { %4858 = vmatpush1.bf16.msra.mxu0 %v7849_v27  ;;  %v4655_v31 = vpack.c.bf16 %v4654_v43, %v4654_v43  ;;  %4889 = vmatprep.mubr.bf16.mxu0 %v8339_v60 }
0x131e   :  { %4859 = vmatprep.subr.bf16.mxu0 %v7854_v30 }
0x131f   :  { %4769 = vmatmul.mubr.bf16.vlgmr.msra.gmra.mrb[60].mxu1 %v4655_v31 }
0x1320   :  { %7127 = vmatpush3.bf16.msra.mxu1 %v7874_v56  ;;  %v7901_v56 = vld [vmem:[#allocation13 + $0xc0] ss:$8 sps:$4 sm:$0xff]  }
0x1321   :  { %4860 = vmatpush1.bf16.msra.mxu0 %v7852_v35  ;;  %7128 = vmatprep.subr.bf16.mxu1 %v7875_v52  ;;  %v7906_v52 = vld [vmem:[#allocation13 + $0xd4] ss:$8 sps:$4 sm:$0xff]  }
0x1322   :  { %4861 = vmatprep.subr.bf16.mxu0 %v7857_v37 }
0x1324   :  { %7129 = vmatpush3.bf16.msra.mxu1 %v7876_v57  ;;  %v7904_v57 = vld [vmem:[#allocation13 + $0xd0] ss:$8 sps:$4 sm:$0xff]  }
0x1325   :  { %4862 = vmatpush1.bf16.msra.mxu0 %v7855_v39  ;;  %7130 = vmatprep.subr.bf16.mxu1 %v7877_v59  ;;  %v7909_v59 = vld [vmem:[#allocation13 + $0xe4] ss:$8 sps:$4 sm:$0xff]  }
0x1326   :  { %4863 = vmatprep.subr.bf16.mxu0 %v7860_v40 }
0x1328   :  { %7131 = vmatpush3.bf16.msra.mxu1 %v7878_v61  ;;  %v7907_v61 = vld [vmem:[#allocation13 + $0xe0] ss:$8 sps:$4 sm:$0xff]  }
0x1329   :  { %4864 = vmatpush1.bf16.msra.mxu0 %v7858_v38  ;;  %7132 = vmatprep.subr.bf16.mxu1 %v7879_v63  ;;  %v7912_v63 = vld [vmem:[#allocation13 + $0xf4] ss:$8 sps:$4 sm:$0xff]  }
0x132a   :  { %4865 = vmatprep.subr.bf16.mxu0 %v7863_v41  ;;  %v7889_v41 = vld [vmem:[#allocation13 + $0x80] ss:$8 sps:$4 sm:$0xff]  }
0x132c   :  { %7133 = vmatpush3.bf16.msra.mxu1 %v7880_v1  ;;  %v7910_v1 = vld [vmem:[#allocation13 + $0xf0] ss:$8 sps:$4 sm:$0xff]  }
0x132d   :  { %4866 = vmatpush1.bf16.msra.mxu0 %v7861_v42  ;;  %7134 = vmatprep.subr.bf16.mxu1 %v7881_v3  ;;  %v7913_v3 = vld [vmem:[#allocation12 + $0x80] ss:$8 sps:$4 sm:$0xff]  }
0x132e   :  { %4867 = vmatprep.subr.bf16.mxu0 %v7866_v46  ;;  %v7894_v46 = vld [vmem:[#allocation13 + $0x94] ss:$8 sps:$4 sm:$0xff]  }
0x1330   :  { %7135 = vmatpush3.bf16.msra.mxu1 %v7882_v4  ;;  %v7915_v4 = vld [vmem:[#allocation12 + $0x84] ss:$8 sps:$4 sm:$0xff]  }
0x1331   :  { %4868 = vmatpush1.bf16.msra.mxu0 %v7864_v48  ;;  %7136 = vmatprep.subr.bf16.mxu1 %v7883_v5  ;;  %v7892_v48 = vld [vmem:[#allocation13 + $0x90] ss:$8 sps:$4 sm:$0xff]   ;;  %v7918_v5 = vld [vmem:[#allocation12 + $0x94] ss:$8 sps:$4 sm:$0xff]  }
0x1332   :  { %4869 = vmatprep.subr.bf16.mxu0 %v7869_v49  ;;  %v7897_v49 = vld [vmem:[#allocation13 + $0xa4] ss:$8 sps:$4 sm:$0xff]  }
0x1334   :  { %7137 = vmatpush3.bf16.msra.mxu1 %v7884_v6  ;;  %v7916_v6 = vld [vmem:[#allocation12 + $0x90] ss:$8 sps:$4 sm:$0xff]  }
0x1335   :  { %4870 = vmatpush1.bf16.msra.mxu0 %v7867_v50  ;;  %7138 = vmatprep.subr.bf16.mxu1 %v7885_v7  ;;  %v7895_v50 = vld [vmem:[#allocation13 + $0xa0] ss:$8 sps:$4 sm:$0xff]   ;;  %v7921_v7 = vld [vmem:[#allocation12 + $0xa4] ss:$8 sps:$4 sm:$0xff]  }
0x1336   :  { %4871 = vmatprep.subr.bf16.mxu0 %v7872_v53  ;;  %v7900_v53 = vld [vmem:[#allocation13 + $0xb4] ss:$8 sps:$4 sm:$0xff]  }
0x1338   :  { %7139 = vmatpush3.bf16.msra.mxu1 %v7886_v51  ;;  %v7919_v51 = vld [vmem:[#allocation12 + $0xa0] ss:$8 sps:$4 sm:$0xff]  }
0x1339   :  { %4872 = vmatpush1.bf16.msra.mxu0 %v7870_v54  ;;  %7140 = vmatprep.subr.bf16.mxu1 %v7887_v0  ;;  %v7898_v54 = vld [vmem:[#allocation13 + $0xb0] ss:$8 sps:$4 sm:$0xff]   ;;  %v7924_v0 = vld [vmem:[#allocation12 + $0xb4] ss:$8 sps:$4 sm:$0xff]  }
0x133a   :  { %5217 = vmatprep.subr.bf16.mxu0 %v7915_v4  ;;  %v7943_v4 = vld [vmem:[%s9889_s21 + $0xd8] sm:$0xff]  }
0x133c   :  { %4890 = vmatmul.mubr.bf16.vlgmr.msra.gmra.mrb[56].mxu0 %v8808_v2  ;;  %7141 = vmatpush3.bf16.msra.mxu1 %v7888_v8  ;;  %v7922_v8 = vld [vmem:[#allocation12 + $0xb0] ss:$8 sps:$4 sm:$0xff]  }
0x133d   :  { %5249 = vmatprep.mubr.bf16.mxu0 %v8339_v60  ;;  %5338 = vmatprep.subr.bf16.mxu1 %v7891_v9 }
0x133e   :  { %5218 = vmatpush1.bf16.msra.mxu0 %v7913_v3  ;;  %v7942_v3 = vld [vmem:[%s9889_s21 + $0x90] sm:$0xff]  }
0x133f   :  { %5219 = vmatprep.subr.bf16.mxu0 %v7918_v5  ;;  %v7944_v5 = vld [vmem:[%s9889_s21 + $0x98] sm:$0xff]  }
0x1342   :  { %5220 = vmatpush1.bf16.msra.mxu0 %v7916_v6  ;;  %v7945_v6 = vld [vmem:[%s9889_s21 + $0xe0] sm:$0xff]  }
0x1343   :  { %5221 = vmatprep.subr.bf16.mxu0 %v7921_v7  ;;  %v7946_v7 = vld [vmem:[%s9889_s21 + $0xa0] sm:$0xff]  }
0x1346   :  { %5222 = vmatpush1.bf16.msra.mxu0 %v7919_v51  ;;  %v7947_v51 = vld [vmem:[%s9889_s21 + $0xe8] sm:$0xff]  }
0x1347   :  { %5223 = vmatprep.subr.bf16.mxu0 %v7924_v0  ;;  %v7948_v0 = vld [vmem:[%s9889_s21 + $0xa8] sm:$0xff]  }
0x134a   :  { %5224 = vmatpush1.bf16.msra.mxu0 %v7922_v8  ;;  %v7949_v8 = vld [vmem:[%s9889_s21 + $0xf0] sm:$0xff]  }
0x13ef   :  { %v9514_v10 = vpop.f32.mrb[52].mxu0 }
0x13f0   :  { %v7283_v11 = vpop.f32.mrb[53].mxu0 }
0x13f1   :  { %v4501_v12 = vpop.f32.mrb[54].mxu0 }
0x13f2   :  { %v7284_v13 = vpop.f32.mrb[55].mxu0  ;;  %v4770_v14 = vpop.f32.mrb[60].mxu1 }
0x13f3   :  { %v4772_v15 = vpop.f32.mrb[61].mxu1 }
0x13f4   :  { %v4774_v16 = vpop.f32.mrb[62].mxu1 }
0x13f5   :  { %v4775_v17 = vpop.f32.mrb[63].mxu1 }
0x140f   :  { %v4891_v18 = vpop.f32.mrb[56].mxu0 }
0x1410   :  { %v4892_v19 = vadd.f32 1.0, %v4891_v18  ;;  %v4893_v21 = vpop.f32.mrb[57].mxu0  ;;  %v2687_v18 = vsel %vm2574_vm2, %v9069_v47, -1e+30 }
0x1411   :  { %v4894_v22 = vadd.f32 1.0, %v4893_v21  ;;  %v4895_v23 = vpop.f32.mrb[58].mxu0 }
0x1412   :  { %v4898_v24 = vmul.f32 %v4892_v19, %v4770_v14  ;;  %v4896_v25 = vpop.f32.mrb[59].mxu0  ;;  %v6271_v19 = vsel %vm1914_vm4, 1.0, %v8337_v44  ;;  %v7927_v23 = vld [vmem:[#allocation12 + $0xc4] ss:$8 sps:$4 sm:$0xff]  }
0x1413   :  { %v4899_v26 = vmul.f32 %v4894_v22, %v4772_v15  ;;  %v1917_v21 = vmul.f32 %v8871_v45, %v6271_v19  ;;  %5225 = vmatprep.subr.bf16.mxu0 %v7927_v23  ;;  %v7930_v25 = vld [vmem:[#allocation12 + $0xd4] ss:$8 sps:$4 sm:$0xff]  }
0x1414   :  { %v6698_v27 = vmul.f32 -1.442695, %v4898_v24 }
0x1415   :  { %v6699_v28 = vmul.f32 -1.442695, %v4899_v26  ;;  %v1918_v22 = vsel %vm1858_vm3, %v1917_v21, 0.0 }
0x1416   :  { %8095 = vpow2.f32 %v6698_v27 }
0x1417   :  { %8097 = vpow2.f32 %v6699_v28 }
0x1420   :  { %v8096_v29 = vpop.eup %8095 }
0x1421   :  { %v8098_v30 = vpop.eup %8097  ;;  %v4906_v43 = vadd.f32 1.0, %v8096_v29 }
0x1422   :  { %v4907_v31 = vadd.f32 1.0, %v8098_v30  ;;  %v7931_v30 = vld [vmem:[#allocation12 + $0xe0] ss:$8 sps:$4 sm:$0xff]  }
0x1423   :  { %8099 = vrcp.f32 %v4906_v43  ;;  %v7936_v43 = vld [vmem:[#allocation12 + $0xf4] ss:$8 sps:$4 sm:$0xff]  }
0x1424   :  { %8101 = vrcp.f32 %v4907_v31  ;;  %v7934_v31 = vld [vmem:[#allocation12 + $0xf0] ss:$8 sps:$4 sm:$0xff]  }
0x142d   :  { %v8100_v35 = vpop.eup %8099 }
0x142e   :  { %v8102_v37 = vpop.eup %8101  ;;  %v4912_v39 = vmul.f32 %v8100_v35, %v4898_v24  ;;  %v7925_v24 = vld [vmem:[#allocation12 + $0xc0] ss:$8 sps:$4 sm:$0xff]  }
0x142f   :  { %v4913_v40 = vmul.f32 %v8102_v37, %v4899_v26  ;;  %5226 = vmatpush1.bf16.msra.mxu0 %v7925_v24  ;;  %v7928_v26 = vld [vmem:[#allocation12 + $0xd0] ss:$8 sps:$4 sm:$0xff]  }
0x1430   :  { %v4914_v42 = vpack.c.bf16 %v4912_v39, %v4912_v39  ;;  %5227 = vmatprep.subr.bf16.mxu0 %v7930_v25 }
0x1431   :  { %v4915_v38 = vpack.c.bf16 %v4913_v40, %v4913_v40 }
0x1433   :  { %5044 = vmatprep.mubr.bf16.mxu1 %v4915_v38  ;;  %5228 = vmatpush1.bf16.msra.mxu0 %v7928_v26 }
0x1434   :  { %5045 = vmatmul.mubr.bf16.vlgmr.msra.gmra.mrb[64].mxu1 %v4914_v42 }
0x1435   :  { %5339 = vmatpush1.bf16.msra.mxu1 %v7889_v41  ;;  %5370 = vmatprep.mubr.bf16.mxu1 %v8339_v60 }
0x1436   :  { %5340 = vmatprep.subr.bf16.mxu1 %v7894_v46 }
0x1439   :  { %5341 = vmatpush1.bf16.msra.mxu1 %v7892_v48 }
0x143a   :  { %5342 = vmatprep.subr.bf16.mxu1 %v7897_v49 }
0x143d   :  { %5343 = vmatpush1.bf16.msra.mxu1 %v7895_v50 }
0x143e   :  { %5344 = vmatprep.subr.bf16.mxu1 %v7900_v53 }
0x1441   :  { %5345 = vmatpush1.bf16.msra.mxu1 %v7898_v54 }
0x1442   :  { %5346 = vmatprep.subr.bf16.mxu1 %v7903_v55 }
0x1445   :  { %5347 = vmatpush1.bf16.msra.mxu1 %v7901_v56  ;;  %v6347_v56 = vsel %vm2689_vm6, 1.0, %v8337_v44 }
0x1446   :  { %5348 = vmatprep.subr.bf16.mxu1 %v7906_v52  ;;  %v2702_v52 = vmul.f32 %v6347_v56, %v2687_v18  ;;  %v7971_v56 = vld [vmem:[%s9891_s23 + $0xa8] ss:$28 sps:$4 sm:$0xff]  }
0x1449   :  { %5349 = vmatpush1.bf16.msra.mxu1 %v7904_v57  ;;  %v6536_v57 = vsel %vm3899_vm13, 1.0, %v8337_v44 }
0x144a   :  { %5350 = vmatprep.subr.bf16.mxu1 %v7909_v59 }
0x144d   :  { %5351 = vmatpush1.bf16.msra.mxu1 %v7907_v61  ;;  %v7937_v61 = vld [vmem:[%s9889_s21 + $0xc0] sm:$0xff]  }
0x144e   :  { %5352 = vmatprep.subr.bf16.mxu1 %v7912_v63  ;;  %v7938_v63 = vld [vmem:[%s9889_s21 + $0x80] sm:$0xff]  }
0x1451   :  { %5353 = vmatpush1.bf16.msra.mxu1 %v7910_v1  ;;  %v7941_v1 = vld [vmem:[%s9889_s21 + $0xd0] sm:$0xff]  }
0x1454   :  { %5371 = vmatmul.mubr.bf16.vlgmr.msra.gmra.mrb[68].mxu1 %v8808_v2  ;;  %v6716_v2 = vld [vmem:[%s9890_s22] ss:$0 sm:$0xff] }
0x1455   :  { %5933 = vmatprep.mubr.bf16.mxu1 %v8339_v60 }
0x1507   :  { %v7142_v9 = vpop.f32.mrb[64].mxu1 }
0x1508   :  { %v7143_v11 = vpop.f32.mrb[65].mxu1 }
0x1509   :  { %v7144_v12 = vadd.f32 %v7143_v11, %v7142_v9  ;;  %v7145_v13 = vpop.f32.mrb[66].mxu1  ;;  %v7950_v9 = vld [vmem:[%s9889_s21 + $0xb0] sm:$0xff]   ;;  %v7952_v11 = vld [vmem:[%s9889_s21 + $0xb8] sm:$0xff]  }
0x150a   :  { %v7146_v14 = vpop.f32.mrb[67].mxu1 }
0x150b   :  { %v5058_v15 = vmul.f32 %v7144_v12, %v6716_v2  ;;  %v7951_v2 = vld [vmem:[%s9889_s21 + $0xf8] sm:$0xff]   ;;  %s9931_s21 = sld [smem:[#allocation30_spill]] }
0x150d   :  { %v9523_v16 = vadd.f32 %v5058_v15, %v9455_v62  ;;  %v3897_v62 = vsel %vm2574_vm2, %v9434_v20, -1e+30  ;;  %v7933_v20 = vld [vmem:[#allocation12 + $0xe4] ss:$8 sps:$4 sm:$0xff]  }
0x150e   :  { %5229 = vmatprep.subr.bf16.mxu0 %v7933_v20  ;;  %v3912_v59 = vmul.f32 %v6536_v57, %v3897_v62 }
0x150f   :  { %v5129_v17 = vmul.f32 %v9523_v16, %v9523_v16  ;;  %5230 = vmatpush1.bf16.msra.mxu0 %v7931_v30 }
0x1510   :  { %5231 = vmatprep.subr.bf16.mxu0 %v7936_v43  ;;  %v7953_v43 = vld [vmem:[%s9891_s23] ss:$28 sps:$4 sm:$0xff]  }
0x1511   :  { %5130 = vadd.xlane.f32.xlu0 %v5129_v17 }
0x1513   :  { %5232 = vmatpush1.bf16.msra.mxu0 %v7934_v31  ;;  %v7955_v31 = vld [vmem:[%s9891_s23 + $0x4] ss:$28 sps:$4 sm:$0xff]  }
0x1514   :  { %7148 = vmatprep.subr.bf16.mxu0 %v7937_v61  ;;  %5901 = vmatprep.subr.bf16.mxu1 %v7955_v31 }
0x1515   :  { %2692 = vmax.xlane.f32.xlu0 %v2687_v18  ;;  %5902 = vmatpush1.bf16.msra.mxu1 %v7953_v43 }
0x1519   :  { %3902 = vmax.xlane.f32.xlu0 %v3897_v62 }
0x151d   :  { %1919 = vadd.xlane.f32.xlu0 %v1918_v22 }
0x1527   :  { %v9538_v47 = vpop.f32.mrb[68].mxu1 }
0x1528   :  { %v9540_v27 = vpop.f32.mrb[69].mxu1  ;;  %v5373_v12 = vadd.f32 1.0, %v9538_v47 }
0x1529   :  { %v5376_v28 = vpop.f32.mrb[70].mxu1  ;;  %v5375_v13 = vadd.f32 1.0, %v9540_v27 }
0x152a   :  { %v5377_v29 = vpop.f32.mrb[71].mxu1 }
0x159e   :  { %v5131_v35 = vpop.xlane.xlu0 %5130 }
0x159f   :  { %v5132_v37 = vmul.f32 0.0078125, %v5131_v35  ;;  %v7956_v35 = vld [vmem:[%s9891_s23 + $0x8] ss:$28 sps:$4 sm:$0xff]  }
0x15a1   :  { %v5133_v39 = vadd.f32 1e-06, %v5132_v37  ;;  %v7958_v37 = vld [vmem:[%s9891_s23 + $0xc] ss:$28 sps:$4 sm:$0xff]  }
0x15a2   :  { %v9542_v40 = vpop.xlane.xlu0 %2692 }
0x15a3   :  { %8103 = vrsqrt.f32 %v5133_v39  ;;  %v2694_v38 = vsub.f32 %v2687_v18, %v9542_v40  ;;  %v7961_v39 = vld [vmem:[%s9891_s23 + $0x3c] ss:$28 sps:$4 sm:$0xff]  }
0x15a4   :  { %5903 = vmatprep.subr.bf16.mxu1 %v7961_v39  ;;  %v8001_v39 = vld [vmem:[%s9891_s23 + $0x10] ss:$28 sps:$4 sm:$0xff]  }
0x15a5   :  { %v2695_v41 = vmul.f32 1.442695, %v2694_v38  ;;  %v7964_v38 = vld [vmem:[%s9891_s23 + $0x44] ss:$28 sps:$4 sm:$0xff]  }
0x15a6   :  { %v9545_v42 = vpop.xlane.xlu0 %3902 }
0x15a7   :  { %8105 = vpow2.f32 %v2695_v41  ;;  %v3904_v46 = vsub.f32 %v3897_v62, %v9545_v42  ;;  %v7959_v41 = vld [vmem:[%s9891_s23 + $0x38] ss:$28 sps:$4 sm:$0xff]  }
0x15a8   :  { %5904 = vmatpush1.bf16.msra.mxu1 %v7959_v41 }
0x15a9   :  { %v3905_v48 = vmul.f32 1.442695, %v3904_v46  ;;  %v7962_v46 = vld [vmem:[%s9891_s23 + $0x40] ss:$28 sps:$4 sm:$0xff]  }
0x15ab   :  { %8107 = vpow2.f32 %v3905_v48  ;;  %v7967_v48 = vld [vmem:[%s9891_s23 + $0x74] ss:$28 sps:$4 sm:$0xff]  }
0x15ac   :  { %5905 = vmatprep.subr.bf16.mxu1 %v7967_v48  ;;  %v8007_v48 = vld [vmem:[%s9891_s23 + $0x4c] ss:$28 sps:$4 sm:$0xff]  }
0x15ad   :  { %v8104_v49 = vpop.eup %8103 }
0x15ae   :  { %v5135_v50 = vmul.f32 %v8104_v49, %v9523_v16  ;;  %v7970_v49 = vld [vmem:[%s9891_s23 + $0x7c] ss:$28 sps:$4 sm:$0xff]  }
0x15b0   :  { %v5136_v53 = vpack.c.bf16 %v5135_v50, %v5135_v50  ;;  %v7965_v50 = vld [vmem:[%s9891_s23 + $0x70] ss:$28 sps:$4 sm:$0xff]  }
0x15b1   :  { %v8106_v54 = vpop.eup %8105  ;;  %5906 = vmatpush1.bf16.msra.mxu1 %v7965_v50  ;;  %v8005_v50 = vld [vmem:[%s9891_s23 + $0x48] ss:$28 sps:$4 sm:$0xff]  }
0x15b2   :  { %5250 = vmatmul.mubr.bf16.vlgmr.msra.gmra.mrb[60].mxu0 %v5136_v53  ;;  %2697 = vadd.xlane.f32.xlu0 %v8106_v54  ;;  %v7968_v53 = vld [vmem:[%s9891_s23 + $0x78] ss:$28 sps:$4 sm:$0xff]   ;;  %v7973_v54 = vld [vmem:[%s9891_s23 + $0xac] ss:$28 sps:$4 sm:$0xff]  }
0x15b3   :  { %7149 = vmatpush3.bf16.msra.mxu0 %v7938_v63  ;;  %5907 = vmatprep.subr.bf16.mxu1 %v7973_v54 }
0x15b4   :  { %7150 = vmatprep.subr.bf16.mxu0 %v7939_v36 }
0x15b5   :  { %v8108_v55 = vpop.eup %8107  ;;  %5908 = vmatpush1.bf16.msra.mxu1 %v7971_v56 }
0x15b6   :  { %3907 = vadd.xlane.f32.xlu0 %v8108_v55  ;;  %v7976_v55 = vld [vmem:[%s9891_s23 + $0xb4] ss:$28 sps:$4 sm:$0xff]  }
0x15b7   :  { %7151 = vmatpush3.bf16.msra.mxu0 %v7940_v32 }
0x15b8   :  { %7152 = vmatprep.subr.bf16.mxu0 %v7941_v1 }
0x15ba   :  { %2703 = vadd.xlane.f32.xlu0 %v2702_v52  ;;  %v7974_v52 = vld [vmem:[%s9891_s23 + $0xb0] ss:$28 sps:$4 sm:$0xff]  }
0x15bb   :  { %7153 = vmatpush3.bf16.msra.mxu0 %v7942_v3 }
0x15bc   :  { %7154 = vmatprep.subr.bf16.mxu0 %v7943_v4 }
0x15be   :  { %3913 = vadd.xlane.f32.xlu0 %v3912_v59  ;;  %v6800_v59 = vld [vmem:[%s9890_s22 + $0x1] ss:$0 sm:$0xff] }
0x15bf   :  { %7155 = vmatpush3.bf16.msra.mxu0 %v7944_v5  ;;  %v9668_v5 = vsel %vm2574_vm2, %v9253_v58, -1e+30  ;;  %v7979_v58 = vld [vmem:[%s9891_s23 + $0xe4] ss:$28 sps:$4 sm:$0xff]  }
0x15c0   :  { %7156 = vmatprep.subr.bf16.mxu0 %v7945_v6  ;;  %v6270_v6 = vsel %vm1906_vm5, 1.0, %v8337_v44  ;;  %5909 = vmatprep.subr.bf16.mxu1 %v7979_v58  ;;  %v8031_v58 = vld [vmem:[%s9891_s23 + $0x19c] ss:$28 sps:$4 sm:$0xff]  }
0x15c3   :  { %7157 = vmatpush3.bf16.msra.mxu0 %v7946_v7  ;;  %v1909_v7 = vmul.f32 %v8871_v45, %v6270_v6  ;;  %v7980_v45 = vld [vmem:[%s9891_s23 + $0xe8] ss:$28 sps:$4 sm:$0xff]   ;;  %v8024_v6 = vld [vmem:[%s9891_s23 + $0x130] ss:$28 sps:$4 sm:$0xff]  }
0x15c4   :  { %7158 = vmatprep.subr.bf16.mxu0 %v7947_v51 }
0x15c5   :  { %v1910_v51 = vsel %vm1858_vm3, %v1909_v7, 0.0  ;;  %v8025_v7 = vld [vmem:[%s9891_s23 + $0x160] ss:$28 sps:$4 sm:$0xff]  }
0x15c7   :  { %7159 = vmatpush3.bf16.msra.mxu0 %v7948_v0  ;;  %v7982_v0 = vld [vmem:[%s9891_s23 + $0xec] ss:$28 sps:$4 sm:$0xff]  }
0x15c8   :  { %7160 = vmatprep.subr.bf16.mxu0 %v7949_v8  ;;  %v7985_v8 = vld [vmem:[%s9891_s23 + $0x11c] ss:$28 sps:$4 sm:$0xff]  }
0x15cb   :  { %7161 = vmatpush3.bf16.msra.mxu0 %v7950_v9  ;;  %v7988_v9 = vld [vmem:[%s9891_s23 + $0x124] ss:$28 sps:$4 sm:$0xff]  }
0x15cc   :  { %7162 = vmatprep.subr.bf16.mxu0 %v7951_v2  ;;  %v7983_v2 = vld [vmem:[%s9891_s23 + $0x118] ss:$28 sps:$4 sm:$0xff]  }
0x15cf   :  { %7163 = vmatpush3.bf16.msra.mxu0 %v7952_v11  ;;  %v7986_v11 = vld [vmem:[%s9891_s23 + $0x120] ss:$28 sps:$4 sm:$0xff]  }
0x15d0   :  { %5942 = vmatprep.subr.bf16.mxu0 %v7958_v37 }
0x1685   :  { %v5251_v14 = vpop.f32.mrb[60].mxu0 }
0x1686   :  { %v5379_v15 = vmul.f32 %v5373_v12, %v5251_v14  ;;  %v5253_v17 = vpop.f32.mrb[61].mxu0  ;;  %v7991_v12 = vld [vmem:[%s9891_s23 + $0x154] ss:$28 sps:$4 sm:$0xff]  }
0x1687   :  { %v5380_v18 = vmul.f32 %v5375_v13, %v5253_v17  ;;  %v5255_v19 = vpop.f32.mrb[62].mxu0  ;;  %v7994_v13 = vld [vmem:[%s9891_s23 + $0x15c] ss:$28 sps:$4 sm:$0xff]   ;;  %v7989_v14 = vld [vmem:[%s9891_s23 + $0x150] ss:$28 sps:$4 sm:$0xff]  }
0x1688   :  { %v6782_v62 = vmul.f32 -1.442695, %v5379_v15  ;;  %v5256_v21 = vpop.f32.mrb[63].mxu0  ;;  %v7997_v17 = vld [vmem:[%s9891_s23 + $0x18c] ss:$28 sps:$4 sm:$0xff]  }
0x1689   :  { %v6783_v22 = vmul.f32 -1.442695, %v5380_v18  ;;  %v7995_v19 = vld [vmem:[%s9891_s23 + $0x188] ss:$28 sps:$4 sm:$0xff]   ;;  %v8003_v21 = vld [vmem:[%s9891_s23 + $0x14] ss:$28 sps:$4 sm:$0xff]  }
0x168a   :  { %8109 = vpow2.f32 %v6782_v62  ;;  %v7998_v62 = vld [vmem:[%s9891_s23 + $0x190] ss:$28 sps:$4 sm:$0xff]  }
0x168b   :  { %8111 = vpow2.f32 %v6783_v22 }
0x1694   :  { %v8110_v23 = vpop.eup %8109 }
0x1695   :  { %v8112_v24 = vpop.eup %8111  ;;  %v5387_v25 = vadd.f32 1.0, %v8110_v23 }
0x1696   :  { %v5388_v26 = vadd.f32 1.0, %v8112_v24 }
0x1697   :  { %8113 = vrcp.f32 %v5387_v25 }
0x1698   :  { %8115 = vrcp.f32 %v5388_v26 }
0x16a1   :  { %v8114_v28 = vpop.eup %8113 }
0x16a2   :  { %v8116_v47 = vpop.eup %8115  ;;  %v5393_v20 = vmul.f32 %v8114_v28, %v5379_v15  ;;  %v7992_v15 = vld [vmem:[%s9891_s23 + $0x158] ss:$28 sps:$4 sm:$0xff]  }
0x16a3   :  { %v5394_v27 = vmul.f32 %v8116_v47, %v5380_v18  ;;  %v8000_v18 = vld [vmem:[%s9891_s23 + $0x194] ss:$28 sps:$4 sm:$0xff]  }
0x16a4   :  { %v5395_v30 = vpack.c.bf16 %v5393_v20, %v5393_v20  ;;  %v1920_v20 = vpop.xlane.xlu0 %1919 }
0x16a5   :  { %v5396_v29 = vpack.c.bf16 %v5394_v27, %v5394_v27 }
0x16a7   :  { %5525 = vmatprep.mubr.bf16.mxu0 %v5396_v29 }
0x16a8   :  { %5526 = vmatmul.mubr.bf16.vlgmr.msra.gmra.mrb[64].mxu0 %v5395_v30  ;;  %v1921_v30 = vmul.f32 4.0, %v1920_v20 }
0x16a9   :  { %5974 = vmatprep.mubr.bf16.mxu0 %v8339_v60  ;;  %5943 = vmatpush1.bf16.msra.mxu0 %v7956_v35 }
0x16aa   :  { %5944 = vmatprep.subr.bf16.mxu0 %v7964_v38  ;;  %v8004_v38 = vld [vmem:[%s9891_s23 + $0x18] ss:$28 sps:$4 sm:$0xff]  }
0x16ad   :  { %5945 = vmatpush1.bf16.msra.mxu0 %v7962_v46 }
0x16ae   :  { %5946 = vmatprep.subr.bf16.mxu0 %v7970_v49 }
0x16b1   :  { %5947 = vmatpush1.bf16.msra.mxu0 %v7968_v53  ;;  %v8008_v53 = vld [vmem:[%s9891_s23 + $0x50] ss:$28 sps:$4 sm:$0xff]  }
0x16b2   :  { %5948 = vmatprep.subr.bf16.mxu0 %v7976_v55  ;;  %v8011_v55 = vld [vmem:[%s9891_s23 + $0x84] ss:$28 sps:$4 sm:$0xff]  }
0x16b5   :  { %5949 = vmatpush1.bf16.msra.mxu0 %v7974_v52  ;;  %v8009_v52 = vld [vmem:[%s9891_s23 + $0x80] ss:$28 sps:$4 sm:$0xff]  }
0x16b6   :  { %5950 = vmatprep.subr.bf16.mxu0 %v7982_v0  ;;  %v8029_v0 = vld [vmem:[%s9891_s23 + $0x198] ss:$28 sps:$4 sm:$0xff]  }
0x16b9   :  { %5951 = vmatpush1.bf16.msra.mxu0 %v7980_v45  ;;  %v2698_v45 = vpop.xlane.xlu0 %2697 }
0x16ba   :  { %5952 = vmatprep.subr.bf16.mxu0 %v7988_v9 }
0x16bd   :  { %5953 = vmatpush1.bf16.msra.mxu0 %v7986_v11 }
0x16be   :  { %5954 = vmatprep.subr.bf16.mxu0 %v7994_v13 }
0x16c1   :  { %5955 = vmatpush1.bf16.msra.mxu0 %v7992_v15 }
0x16c2   :  { %5956 = vmatprep.subr.bf16.mxu0 %v8000_v18 }
0x16c5   :  { %5957 = vmatpush1.bf16.msra.mxu0 %v7998_v62 }
0x16c6   :  { %7291 = vmatprep.subr.bf16.mxu0 %v8337_v44 }
0x177b   :  { %v7164_v57 = vpop.f32.mrb[64].mxu0 }
0x177c   :  { %v7165_v61 = vpop.f32.mrb[65].mxu0 }
0x177d   :  { %v7166_v63 = vadd.f32 %v7165_v61, %v7164_v57  ;;  %v7167_v36 = vpop.f32.mrb[66].mxu0  ;;  %v8012_v57 = vld [vmem:[%s9891_s23 + $0x88] ss:$28 sps:$4 sm:$0xff]  }
0x177e   :  { %v7168_v32 = vpop.f32.mrb[67].mxu0  ;;  %v8016_v36 = vld [vmem:[%s9891_s23 + $0xc0] ss:$28 sps:$4 sm:$0xff]  }
0x177f   :  { %v5539_v1 = vmul.f32 %v7166_v63, %v6800_v59  ;;  %v8015_v59 = vld [vmem:[%s9891_s23 + $0xbc] ss:$28 sps:$4 sm:$0xff]  }
0x1780   :  { %v8013_v63 = vld [vmem:[%s9891_s23 + $0xb8] ss:$28 sps:$4 sm:$0xff]  }
0x1781   :  { %v9660_v3 = vadd.f32 %v5539_v1, %v9523_v16  ;;  %v9675_v16 = vsel %vm2574_vm2, %v9514_v10, -1e+30  ;;  %v7977_v10 = vld [vmem:[%s9891_s23 + $0xe0] ss:$28 sps:$4 sm:$0xff]   ;;  %v8017_v1 = vld [vmem:[%s9891_s23 + $0xf0] ss:$28 sps:$4 sm:$0xff]  }
0x1782   :  { %5910 = vmatpush1.bf16.msra.mxu1 %v7977_v10  ;;  %v8032_v10 = vld [vmem:[%s9891_s23 + $0x1a0] ss:$28 sps:$4 sm:$0xff]  }
0x1783   :  { %v5541_v4 = vmul.f32 %v9660_v3, %v9660_v3  ;;  %5911 = vmatprep.subr.bf16.mxu1 %v7985_v8  ;;  %v3908_v8 = vpop.xlane.xlu0 %3907 }
0x1785   :  { %5542 = vadd.xlane.f32.xlu1 %v5541_v4  ;;  %v8023_v4 = vld [vmem:[%s9891_s23 + $0x12c] ss:$28 sps:$4 sm:$0xff]  }
0x1786   :  { %5912 = vmatpush1.bf16.msra.mxu1 %v7983_v2 }
0x1787   :  { %5913 = vmatprep.subr.bf16.mxu1 %v7991_v12 }
0x1789   :  { %3295 = vmax.xlane.f32.xlu1 %v9668_v5 }
0x178a   :  { %5914 = vmatpush1.bf16.msra.mxu1 %v7989_v14 }
0x178b   :  { %5915 = vmatprep.subr.bf16.mxu1 %v7997_v17 }
0x178d   :  { %4509 = vmax.xlane.f32.xlu1 %v9675_v16 }
0x178e   :  { %5916 = vmatpush1.bf16.msra.mxu1 %v7995_v19 }
0x178f   :  { %5983 = vmatprep.subr.bf16.mxu1 %v8003_v21 }
0x1791   :  { %1911 = vadd.xlane.f32.xlu1 %v1910_v51  ;;  %v8028_v51 = vld [vmem:[%s9891_s23 + $0x168] ss:$28 sps:$4 sm:$0xff]  }
0x1812   :  { %v5543_v22 = vpop.xlane.xlu1 %5542 }
0x1813   :  { %v5544_v23 = vmul.f32 0.0078125, %v5543_v22 }
0x1815   :  { %v5545_v24 = vadd.f32 1e-06, %v5544_v23 }
0x1816   :  { %v9732_v25 = vpop.xlane.xlu1 %3295 }
0x1817   :  { %8117 = vrsqrt.f32 %v5545_v24  ;;  %v3297_v26 = vsub.f32 %v9668_v5, %v9732_v25 }
0x1819   :  { %v3298_v28 = vmul.f32 1.442695, %v3297_v26 }
0x181a   :  { %v9736_v47 = vpop.xlane.xlu1 %4509 }
0x181b   :  { %8119 = vpow2.f32 %v3298_v28  ;;  %v4511_v27 = vsub.f32 %v9675_v16, %v9736_v47 }
0x181d   :  { %v4512_v29 = vmul.f32 1.442695, %v4511_v27 }
0x181e   :  { %v1912_v43 = vpop.xlane.xlu1 %1911 }
0x181f   :  { %8121 = vpow2.f32 %v4512_v29  ;;  %v1922_v31 = vadd.f32 %v1921_v30, %v1912_v43 }
0x1820   :  { %8123 = vlog2.f32 %v2698_v45 }
0x1821   :  { %v8118_v35 = vpop.eup %8117  ;;  %v7318_v41 = vtrunc.f32 %v1922_v31  ;;  %8125 = vlog2.f32 %v3908_v8 }
0x1822   :  { %v5547_v37 = vmul.f32 %v8118_v35, %v9660_v3  ;;  %v8020_v3 = vld [vmem:[%s9891_s23 + $0xf8] ss:$28 sps:$4 sm:$0xff]   ;;  %v8132_v35 = vld [vmem:[%s9926_s20] sm:$0xff] }
0x1823   :  { %v7319_v54 = vcvt.f32.s32 %v7318_v41 }
0x1824   :  { %v9747_v46 = vpack.c.bf16 %v5547_v37, %v5547_v37 }
0x1825   :  { %v8120_v49 = vpop.eup %8119  ;;  %vm4506_vm3 = vcmp.eq.s32.totalorder %v8865_v34, %v7319_v54  ;;  %v8019_v34 = vld [vmem:[%s9891_s23 + $0xf4] ss:$28 sps:$4 sm:$0xff]  }
0x1826   :  { %5934 = vmatmul.mubr.bf16.vlgmr.msra.gmra.mrb[72].mxu1 %v9747_v46  ;;  %5975 = vmatmul.mubr.bf16.vlgmr.msra.gmra.mrb[68].mxu0 %v9747_v46  ;;  %v6663_v32 = vsel %vm4506_vm3, 1.0, %v8337_v44 }
0x1827   :  { %5984 = vmatpush1.bf16.msra.mxu1 %v8001_v39  ;;  %7292 = vmatpush3.bf16.msra.mxu0 %v8004_v38  ;;  %v4519_v33 = vmul.f32 %v6663_v32, %v9675_v16  ;;  %v8027_v16 = vld [vmem:[%s9891_s23 + $0x164] ss:$28 sps:$4 sm:$0xff]  }
0x1828   :  { %3300 = vadd.xlane.f32.xlu1 %v8120_v49  ;;  %5985 = vmatprep.subr.bf16.mxu1 %v8007_v48 }
0x1829   :  { %v8122_v56 = vpop.eup %8121  ;;  %7293 = vmatprep.subr.bf16.mxu0 %v8337_v44  ;;  %6015 = vmatprep.mubr.bf16.mxu1 %v8339_v60  ;;  %v6409_v60 = vsel %vm3292_vm10, 1.0, %v8337_v44 }
0x182a   :  { %7307 = vmatprep.mubr.msk.bf16.mxu0 %vm8338_vm0, %v8337_v44  ;;  %v3305_v61 = vmul.f32 %v6409_v60, %v9668_v5  ;;  %v8021_v5 = vld [vmem:[%s9891_s23 + $0x128] ss:$28 sps:$4 sm:$0xff]   ;;  %v8124_v11 = vpop.eup %8123  ;;  %vm4524_vm0 = vcmask 7168  }
0x182b   :  { %5986 = vmatpush1.bf16.msra.mxu1 %v8005_v50  ;;  %7294 = vmatpush3.bf16.msra.mxu0 %v8008_v53  ;;  %v8126_v12 = vpop.eup %8125  ;;  %v2700_v13 = vmul.f32 0.6931472, %v8124_v11 }
0x182c   :  { %4514 = vadd.xlane.f32.xlu1 %v8122_v56  ;;  %5987 = vmatprep.subr.bf16.mxu1 %v8011_v55  ;;  %v3910_v14 = vmul.f32 0.6931472, %v8126_v12 }
0x182d   :  { %7295 = vmatprep.subr.bf16.mxu0 %v8337_v44  ;;  %v2701_v17 = vadd.f32 %v2700_v13, %v9542_v40 }
0x182e   :  { %v3911_v62 = vadd.f32 %v3910_v14, %v9545_v42 }
0x182f   :  { %5988 = vmatpush1.bf16.msra.mxu1 %v8009_v52  ;;  %7296 = vmatpush3.bf16.msra.mxu0 %v8012_v57  ;;  %v8135_v52 = vld [vmem:[%s9926_s20 + $0x18] sm:$0xff] }
0x1830   :  { %3306 = vadd.xlane.f32.xlu1 %v3305_v61  ;;  %5989 = vmatprep.subr.bf16.mxu1 %v8015_v59 }
0x1831   :  { %7297 = vmatprep.subr.bf16.mxu0 %v8337_v44 }
0x1833   :  { %5990 = vmatpush1.bf16.msra.mxu1 %v8013_v63  ;;  %7298 = vmatpush3.bf16.msra.mxu0 %v8016_v36 }
0x1834   :  { %4520 = vadd.xlane.f32.xlu1 %v4519_v33  ;;  %5991 = vmatprep.subr.bf16.mxu1 %v8019_v34  ;;  %v8136_v33 = vld [vmem:[%s9926_s20 + $0x20] sm:$0xff] }
0x1835   :  { %7299 = vmatprep.subr.bf16.mxu0 %v8337_v44 }
0x1837   :  { %5992 = vmatpush1.bf16.msra.mxu1 %v8017_v1  ;;  %7300 = vmatpush3.bf16.msra.mxu0 %v8020_v3  ;;  %v8137_v3 = vld [vmem:[%s9926_s20 + $0x30] sm:$0xff] }
0x1838   :  { %5993 = vmatprep.subr.bf16.mxu1 %v8023_v4  ;;  %7301 = vmatprep.subr.bf16.mxu0 %v8337_v44 }
0x183b   :  { %5994 = vmatpush1.bf16.msra.mxu1 %v8021_v5  ;;  %7302 = vmatpush3.bf16.msra.mxu0 %v8024_v6 }
0x183c   :  { %5995 = vmatprep.subr.bf16.mxu1 %v8027_v16  ;;  %7303 = vmatprep.subr.bf16.mxu0 %v8337_v44  ;;  %v8138_v16 = vld [vmem:[%s9926_s20 + $0x28] sm:$0xff] }
0x183f   :  { %5996 = vmatpush1.bf16.msra.mxu1 %v8025_v7  ;;  %7304 = vmatpush3.bf16.msra.mxu0 %v8028_v51 }
0x1840   :  { %5997 = vmatprep.subr.bf16.mxu1 %v8031_v58  ;;  %7305 = vmatprep.subr.bf16.mxu0 %v8337_v44  ;;  %v2704_v44 = vpop.xlane.xlu0 %2703 }
0x1841   :  { %v2705_v23 = vsub.f32 %v2701_v17, %v2704_v44 }
0x1843   :  { %5998 = vmatpush1.bf16.msra.mxu1 %v8029_v0  ;;  %7306 = vmatpush3.bf16.msra.mxu0 %v8032_v10 }
0x1844   :  { %v3914_v28 = vpop.xlane.xlu0 %3913 }
0x1845   :  { %v3915_v20 = vsub.f32 %v3911_v62, %v3914_v28 }
0x1846   :  { %6016 = vmatmul.mubr.bf16.vlgmr.msra.gmra.mrb[76].mxu1 %v9747_v46  ;;  %7308 = vmatmul.mubr.bf16.vlgmr.msra.gmra.mrb[72].mxu0 %v9747_v46  ;;  %v8134_v46 = vld [vmem:[%s9926_s20 + $0x8] sm:$0xff] }
0x18b5   :  { %v3301_v9 = vpop.xlane.xlu1 %3300 }
0x18b6   :  { %8127 = vlog2.f32 %v3301_v9 }
0x18b9   :  { %v4515_v2 = vpop.xlane.xlu1 %4514 }
0x18ba   :  { %8129 = vlog2.f32 %v4515_v2 }
0x18bd   :  { %v3307_v19 = vpop.xlane.xlu1 %3306 }
0x18c0   :  { %v8128_v15 = vpop.eup %8127 }
0x18c1   :  { %v3303_v18 = vmul.f32 0.6931472, %v8128_v15  ;;  %v4521_v30 = vpop.xlane.xlu1 %4520 }
0x18c3   :  { %v3304_v21 = vadd.f32 %v3303_v18, %v9732_v25 }
0x18c4   :  { %v8130_v22 = vpop.eup %8129 }
0x18c5   :  { %v4517_v24 = vmul.f32 0.6931472, %v8130_v22  ;;  %v3308_v26 = vsub.f32 %v3304_v21, %v3307_v19 }
0x18c7   :  { %v3309_v27 = vadd.f32 %v3308_v26, %v2705_v23  ;;  %v4518_v29 = vadd.f32 %v4517_v24, %v9736_v47  ;;  %v8133_v47 = vld [vmem:[%s9926_s20 + $0x10] sm:$0xff] }
0x18c9   :  { %v3916_v43 = vadd.f32 %v3915_v20, %v3309_v27  ;;  %v4522_v31 = vsub.f32 %v4518_v29, %v4521_v30 }
0x18cb   :  { %v4523_v40 = vadd.f32 %v4522_v31, %v3916_v43 }
0x18cd   :  { %4525 = vst.msk [vmem:[%s9931_s21] sm:$0xff] %vm4524_vm0, %v4523_v40 }
0x18f9   :  { %v5935_v42 = vpop.f32.mrb[72].mxu1  ;;  %v5976_v25 = vpop.f32.mrb[68].mxu0 }
0x18fa   :  { %v6064_v37 = vsub.f32 %v8132_v35, %v5935_v42  ;;  %v5937_v39 = vpop.f32.mrb[73].mxu1  ;;  %v5978_v38 = vpop.f32.mrb[69].mxu0  ;;  %v6066_v41 = vsub.f32 %v8133_v47, %v5976_v25 }
0x18fb   :  { %v6065_v48 = vsub.f32 %v8134_v46, %v5937_v39  ;;  %v5939_v49 = vpop.f32.mrb[74].mxu1  ;;  %v5980_v50 = vpop.f32.mrb[70].mxu0  ;;  %v6067_v57 = vsub.f32 %v8135_v52, %v5978_v38 }
0x18fc   :  { %v6071_v53 = vmul.f32 %v6064_v37, %v6064_v37  ;;  %v5940_v54 = vpop.f32.mrb[75].mxu1  ;;  %v5981_v55 = vpop.f32.mrb[71].mxu0  ;;  %v6073_v59 = vmul.f32 %v6066_v41, %v6066_v41 }
0x18fd   :  { %v6072_v56 = vmul.f32 %v6065_v48, %v6065_v48  ;;  %v6074_v61 = vmul.f32 %v6067_v57, %v6067_v57 }
0x18ff   :  { %v6078_v60 = vadd.f32 %v6072_v56, %v6071_v53 }
0x1901   :  { %v6079_v63 = vadd.f32 %v6078_v60, %v6073_v59 }
0x1903   :  { %v6080_v36 = vadd.f32 %v6079_v63, %v6074_v61 }
0x1919   :  { %v6017_v32 = vpop.f32.mrb[76].mxu1  ;;  %v6058_v34 = vpop.f32.mrb[72].mxu0 }
0x191a   :  { %v6068_v1 = vsub.f32 %v8136_v33, %v6017_v32  ;;  %v6070_v4 = vsub.f32 %v8137_v3, %v6058_v34  ;;  %v6019_v5 = vpop.f32.mrb[77].mxu1  ;;  %v7309_v6 = vpop.f32.mrb[73].mxu0 }
0x191b   :  { %v6069_v7 = vsub.f32 %v8138_v16, %v6019_v5  ;;  %v6021_v51 = vpop.f32.mrb[78].mxu1  ;;  %v6061_v58 = vpop.f32.mrb[74].mxu0 }
0x191c   :  { %v6075_v0 = vmul.f32 %v6068_v1, %v6068_v1  ;;  %v6022_v10 = vpop.f32.mrb[79].mxu1  ;;  %v7310_v45 = vpop.f32.mrb[75].mxu0  ;;  %v6077_v8 = vmul.f32 %v6070_v4, %v6070_v4 }
0x191d   :  { %v6076_v9 = vmul.f32 %v6069_v7, %v6069_v7 }
0x191e   :  { %v6081_v2 = vadd.f32 %v6080_v36, %v6075_v0  ;;  %v6083_v12 = vsel %vm612_vm1, %v6077_v8, 0.0 }
0x1920   :  { %v6082_v11 = vadd.f32 %v6081_v2, %v6076_v9 }
0x1922   :  { %v6084_v13 = vadd.f32 %v6083_v12, %v6082_v11 }
0x1924   :  { %6085 = vadd.xlane.f32.xlu0 %v6084_v13 }
0x19b1   :  { %v6086_v14 = vpop.xlane.xlu0 %6085 }
0x19b2   :  { %6087 = vst.msk [vmem:[%s9932_s16] sm:$0xff] %vm4524_vm0, %v6086_v14 }
0x19b3   :  { %6096 = vsyncpa [#allocation3], 1 }
0x19b4   :  { %6097 = vsyncpa [#allocation5], 1 }
0x19b5   :  { %6098 = vsyncpa [#allocation8], 1 }
0x19b6   :  { %6099 = vsyncpa [#allocation11], 1 }
0x19b7   :  { %6100 = vsyncpa [#allocation14], 1 }

</bundles_post_ra>
